<compile_context>
chip_gen: v5e
topology: v5e:2x2
jax: 0.10.0
libtpu: 0.0.40
codegen_flags: <defaults>
</compile_context>

<pallas_src>
import functools

import jax
import jax.numpy as jnp
from jax.experimental import pallas as pl
from jax.experimental.pallas import tpu as pltpu


# ---------------------------------------------------------------------------
# Kernel 1: fused channel-concat + 1x1 conv (matmul) + folded-BN shift + ReLU
# ---------------------------------------------------------------------------
def _concat_mm_bn_relu_kernel(x1_ref, x2_ref, w1_ref, w2_ref, shift_ref, o_ref):
    acc = jnp.dot(x1_ref[...], w1_ref[...], preferred_element_type=jnp.float32)
    acc = acc + jnp.dot(x2_ref[...], w2_ref[...], preferred_element_type=jnp.float32)
    y = acc + shift_ref[...]
    o_ref[...] = jnp.maximum(y, 0.0).astype(o_ref.dtype)


def concat_matmul_bn_relu(x1, x2, w1, w2, shift, *, tm=512):
    """relu(concat([x1, x2], -1) @ concat([w1, w2], 0) + shift), concat fused away.

    x1: (M, K1), x2: (M, K2), w1: (K1, Cout), w2: (K2, Cout) (BN scale pre-folded),
    shift: (Cout,) f32.  Returns (M, Cout) f32.
    """
    M, K1 = x1.shape
    K2 = x2.shape[1]
    Cout = w1.shape[1]
    # Fixed row tile; ragged last block is handled by Pallas.  Only fall back to a
    # single block when the whole problem is smaller than one tile.
    tm = tm if M >= tm else M
    grid = (pl.cdiv(M, tm),)
    flops = 2 * M * (K1 + K2) * Cout
    bytes_accessed = 4 * (M * (K1 + K2) + (K1 + K2) * Cout + M * Cout)
    return pl.pallas_call(
        _concat_mm_bn_relu_kernel,
        out_shape=jax.ShapeDtypeStruct((M, Cout), jnp.float32),
        grid=grid,
        in_specs=[
            pl.BlockSpec((tm, K1), lambda i: (i, 0)),
            pl.BlockSpec((tm, K2), lambda i: (i, 0)),
            pl.BlockSpec((K1, Cout), lambda i: (0, 0)),
            pl.BlockSpec((K2, Cout), lambda i: (0, 0)),
            pl.BlockSpec((1, Cout), lambda i: (0, 0)),
        ],
        out_specs=pl.BlockSpec((tm, Cout), lambda i: (i, 0)),
        compiler_params=pltpu.CompilerParams(dimension_semantics=("parallel",)),
        cost_estimate=pl.CostEstimate(flops=flops, transcendentals=0,
                                      bytes_accessed=bytes_accessed),
    )(x1, x2, w1, w2, shift.reshape(1, Cout))


# ---------------------------------------------------------------------------
# Kernel 2: fused 3x3 conv (stride 1, pad 1, no bias) + folded-BN shift + ReLU.
# No im2col in HBM: the 9 taps are 9 shifted matmuls accumulated in-kernel.
# ---------------------------------------------------------------------------
def _conv3x3_bn_relu_kernel(xp_ref, w_ref, shift_ref, o_ref):
    # xp_ref: (1, H+2, W+2, Cin)  zero-padded activations
    # w_ref : (9, Cin, C2)        weights, tap order (kh, kw), BN scale folded
    H, W, C2 = o_ref.shape[1], o_ref.shape[2], o_ref.shape[3]
    Cin = xp_ref.shape[3]
    x = xp_ref[0]                                   # (H+2, W+2, Cin)
    acc = jnp.zeros((H * W, C2), jnp.float32)
    tap = 0
    for dy in range(3):
        for dx in range(3):
            patch = x[dy:dy + H, dx:dx + W, :].reshape(H * W, Cin)
            acc = acc + jnp.dot(patch, w_ref[tap],
                                preferred_element_type=jnp.float32)
            tap += 1
    y = jnp.maximum(acc + shift_ref[...], 0.0)
    o_ref[0] = y.reshape(H, W, C2).astype(o_ref.dtype)


def conv3x3_bn_relu(x, w, shift):
    """x: (N, H, W, Cin) NHWC, w: (9, Cin, C2) (BN scale folded), shift: (C2,)."""
    N, H, W, Cin = x.shape
    C2 = w.shape[2]
    xp = jnp.pad(x, ((0, 0), (1, 1), (1, 1), (0, 0)))   # conv padding=1 (zeros)
    flops = 2 * N * H * W * 9 * Cin * C2
    bytes_accessed = 4 * (N * (H + 2) * (W + 2) * Cin + 9 * Cin * C2 + N * H * W * C2)
    return pl.pallas_call(
        _conv3x3_bn_relu_kernel,
        out_shape=jax.ShapeDtypeStruct((N, H, W, C2), jnp.float32),
        grid=(N,),
        in_specs=[
            pl.BlockSpec((1, H + 2, W + 2, Cin), lambda n: (n, 0, 0, 0)),
            pl.BlockSpec((9, Cin, C2), lambda n: (0, 0, 0)),
            pl.BlockSpec((1, C2), lambda n: (0, 0)),
        ],
        out_specs=pl.BlockSpec((1, H, W, C2), lambda n: (n, 0, 0, 0)),
        compiler_params=pltpu.CompilerParams(dimension_semantics=("parallel",)),
        cost_estimate=pl.CostEstimate(flops=flops, transcendentals=0,
                                      bytes_accessed=bytes_accessed),
    )(xp, w, shift.reshape(1, C2))


# ---------------------------------------------------------------------------
# Kernel 3: bilinear 2x upsample (align_corners=False) with fused parity
# interleave.  Input is edge-padded by 1 (edge replicate == PyTorch coord clamp).
# Separable form: vertical blend (0.75/0.25), then horizontal blend.
# Output block (1, H, 2, W, 2C) is row-major-identical to (1, 2H, 2W, C), so the
# post-call reshape is free (no HBM pass, no XLA interleave).
# ---------------------------------------------------------------------------
def _up2x_kernel(xe_ref, o_ref):
    H, W = o_ref.shape[1], o_ref.shape[3]
    x = xe_ref[0]                                   # (H+2, W+2, C)
    xc = x[1:H + 1, :, :]
    xu = x[0:H, :, :]
    xd = x[2:H + 2, :, :]
    v0 = 0.75 * xc + 0.25 * xu                      # even output rows, (H, W+2, C)
    v1 = 0.75 * xc + 0.25 * xd                      # odd output rows
    v0c, v0l, v0r = v0[:, 1:W + 1, :], v0[:, 0:W, :], v0[:, 2:W + 2, :]
    v1c, v1l, v1r = v1[:, 1:W + 1, :], v1[:, 0:W, :], v1[:, 2:W + 2, :]
    ee = 0.75 * v0c + 0.25 * v0l
    eo = 0.75 * v0c + 0.25 * v0r
    oe = 0.75 * v1c + 0.25 * v1l
    oo = 0.75 * v1c + 0.25 * v1r
    o_ref[0, :, 0, :, :] = jnp.concatenate([ee, eo], axis=-1).astype(o_ref.dtype)
    o_ref[0, :, 1, :, :] = jnp.concatenate([oe, oo], axis=-1).astype(o_ref.dtype)


def bilinear_up2x(x):
    """x: (N, H, W, C) NHWC -> (N, 2H, 2W, C); matches F.interpolate(scale=2,
    mode='bilinear', align_corners=False)."""
    N, H, W, C = x.shape
    xe = jnp.pad(x, ((0, 0), (1, 1), (1, 1), (0, 0)), mode="edge")
    flops = 8 * N * H * W * C
    bytes_accessed = 4 * (N * (H + 2) * (W + 2) * C + 4 * N * H * W * C)
    out = pl.pallas_call(
        _up2x_kernel,
        out_shape=jax.ShapeDtypeStruct((N, H, 2, W, 2 * C), x.dtype),
        grid=(N,),
        in_specs=[pl.BlockSpec((1, H + 2, W + 2, C), lambda n: (n, 0, 0, 0))],
        out_specs=pl.BlockSpec((1, H, 2, W, 2 * C), lambda n: (n, 0, 0, 0, 0)),
        compiler_params=pltpu.CompilerParams(dimension_semantics=("parallel",)),
        cost_estimate=pl.CostEstimate(flops=flops, transcendentals=0,
                                      bytes_accessed=bytes_accessed),
    )(xe)
    return out.reshape(N, 2 * H, 2 * W, C)   # free: row-major layouts coincide


# ---------------------------------------------------------------------------
# ConcatUpConv forward
# ---------------------------------------------------------------------------
def init_params(key, inplanes, outplanes, upsample=True):
    k1, k3 = jax.random.split(key)
    eps = 1e-5
    # BN eval-mode defaults: gamma=1, beta=0, running_mean=0, running_var=1.
    s1 = jnp.ones((outplanes,), jnp.float32) / jnp.sqrt(1.0 + eps)
    b1 = jnp.zeros((outplanes,), jnp.float32)
    # con_1x1: kaiming_uniform_(a=1) -> bound = sqrt(3 / fan_in), fan_in = inplanes
    bound1 = (3.0 / inplanes) ** 0.5
    w1_t = jax.random.uniform(k1, (outplanes, inplanes, 1, 1),
                              minval=-bound1, maxval=bound1, dtype=jnp.float32)
    w1 = w1_t[:, :, 0, 0].T * s1[None, :]          # (Cin, Cout), BN scale folded
    params = {"w1": w1, "b1": b1}
    if upsample:
        c2 = outplanes // 2
        s3 = jnp.ones((c2,), jnp.float32) / jnp.sqrt(1.0 + eps)
        b3 = jnp.zeros((c2,), jnp.float32)
        bound3 = (3.0 / (outplanes * 9)) ** 0.5
        w3_t = jax.random.uniform(k3, (c2, outplanes, 3, 3),
                                  minval=-bound3, maxval=bound3, dtype=jnp.float32)
        # torch (C2, Cin, 3, 3) -> (kh, kw, Cin, C2) -> (9, Cin, C2), scale folded.
        w3 = jnp.transpose(w3_t, (2, 3, 1, 0)).reshape(9, outplanes, c2) * s3
        params.update({"w3": w3, "b3": b3})
    return params


@functools.partial(jax.jit, static_argnames=("upsample", "matmul_dtype"))
def concat_up_conv(params, x1, x2, upsample=True, matmul_dtype=jnp.float32):
    # x1, x2: NCHW, like the PyTorch module.
    N, C1, H, W = x1.shape
    C2_in = x2.shape[1]
    Cout = params["w1"].shape[1]

    # NCHW -> NHWC (channels on the lane dim).  The channel concat is fused into
    # the matmul kernel, so the concatenated tensor is never written to HBM.
    x1n = jnp.transpose(x1, (0, 2, 3, 1)).reshape(N * H * W, C1)
    x2n = jnp.transpose(x2, (0, 2, 3, 1)).reshape(N * H * W, C2_in)
    w1a = params["w1"][:C1]
    w1b = params["w1"][C1:]

    # 1x1 conv + folded BN + ReLU (Pallas matmul kernel).
    out1 = concat_matmul_bn_relu(
        x1n.astype(matmul_dtype), x2n.astype(matmul_dtype),
        w1a.astype(matmul_dtype), w1b.astype(matmul_dtype), params["b1"])
    out1 = out1.reshape(N, H, W, Cout)

    out = None
    if upsample:
        # Fused 3x3 conv + folded BN + ReLU (no im2col HBM intermediate).
        out3 = conv3x3_bn_relu(out1.astype(matmul_dtype),
                               params["w3"].astype(matmul_dtype), params["b3"])
        # Bilinear 2x upsample with fused parity interleave.
        out = bilinear_up2x(out3)
        out = jnp.transpose(out, (0, 3, 1, 2))       # -> NCHW (module contract)

    out1_nchw = jnp.transpose(out1, (0, 3, 1, 2))    # -> NCHW (module contract)
    return out, out1_nchw


if __name__ == "__main__":
    key = jax.random.PRNGKey(0)
    kp, kx1, kx2 = jax.random.split(key, 3)

    # Small shapes: x1, x2 each (N=2, C=4, H=16, W=16) NCHW; inplanes=8, outplanes=8.
    N, C1, C2, H, W = 2, 4, 4, 16, 16
    inplanes, outplanes = C1 + C2, 8

    x1 = jax.random.normal(kx1, (N, C1, H, W), dtype=jnp.float32)
    x2 = jax.random.normal(kx2, (N, C2, H, W), dtype=jnp.float32)

    params = init_params(kp, inplanes, outplanes, upsample=True)
    # Set matmul_dtype=jnp.bfloat16 on v6e/v7x for 2x MXU throughput and half the
    # activation HBM traffic (epilogue stays f32); f32 here to keep exact semantics.
    out, out_1 = concat_up_conv(params, x1, x2, upsample=True,
                                matmul_dtype=jnp.float32)
    jax.block_until_ready((out, out_1))

    assert out_1.shape == (N, outplanes, H, W), out_1.shape
    assert out.shape == (N, outplanes // 2, 2 * H, 2 * W), out.shape
    assert jnp.all(jnp.isfinite(out_1)) and jnp.all(jnp.isfinite(out))
    print("KERNEL_OK")
</pallas_src>

<mosaic_0001>
module attributes {stable_mosaic.version = 11 : i64} {
  func.func @_concat_mm_bn_relu_kernel(%arg0: i32, %arg1: memref<512x4xf32, #tpu.memory_space<vmem>>, %arg2: memref<512x4xf32, #tpu.memory_space<vmem>>, %arg3: memref<4x8xf32, #tpu.memory_space<vmem>>, %arg4: memref<4x8xf32, #tpu.memory_space<vmem>>, %arg5: memref<1x8xf32, #tpu.memory_space<vmem>>, %arg6: memref<512x8xf32, #tpu.memory_space<vmem>>) attributes {dimension_semantics = [#tpu.dimension_semantics<parallel>], iteration_bounds = array<i64: 1>, scalar_prefetch = 0 : i64, scratch_operands = 0 : i64, tpu.core_type = #tpu.core_type<tc>, window_params = [{transform_indices = @transform_0, window_bounds = array<i64: 512, 4>}, {transform_indices = @transform_1, window_bounds = array<i64: 512, 4>}, {pipeline_mode = #tpu.pipeline_mode<synchronous>, transform_indices = @transform_2, window_bounds = array<i64: 4, 8>}, {pipeline_mode = #tpu.pipeline_mode<synchronous>, transform_indices = @transform_3, window_bounds = array<i64: 4, 8>}, {pipeline_mode = #tpu.pipeline_mode<synchronous>, transform_indices = @transform_4, window_bounds = array<i64: 1, 8>}, {transform_indices = @transform_5, window_bounds = array<i64: 512, 8>}]} {
    %c0 = arith.constant 0 : index
    %c0_0 = arith.constant 0 : index
    %0 = vector.load %arg1[%c0, %c0_0] : memref<512x4xf32, #tpu.memory_space<vmem>>, vector<512x4xf32>
    %c0_1 = arith.constant 0 : index
    %c0_2 = arith.constant 0 : index
    %1 = vector.load %arg3[%c0_1, %c0_2] : memref<4x8xf32, #tpu.memory_space<vmem>>, vector<4x8xf32>
    %cst = arith.constant dense<0.000000e+00> : vector<512x8xf32>
    %2 = tpu.matmul %0, %1, %cst {dimension_numbers = #tpu.dot_dimension_numbers<[1], [0], [0], [1], [0, 0, 1, 1], [], []>} : vector<512x4xf32>, vector<4x8xf32>, vector<512x8xf32> -> vector<512x8xf32>
    %c0_3 = arith.constant 0 : index
    %c0_4 = arith.constant 0 : index
    %3 = vector.load %arg2[%c0_3, %c0_4] : memref<512x4xf32, #tpu.memory_space<vmem>>, vector<512x4xf32>
    %c0_5 = arith.constant 0 : index
    %c0_6 = arith.constant 0 : index
    %4 = vector.load %arg4[%c0_5, %c0_6] : memref<4x8xf32, #tpu.memory_space<vmem>>, vector<4x8xf32>
    %cst_7 = arith.constant dense<0.000000e+00> : vector<512x8xf32>
    %5 = tpu.matmul %3, %4, %cst_7 {dimension_numbers = #tpu.dot_dimension_numbers<[1], [0], [0], [1], [0, 0, 1, 1], [], []>} : vector<512x4xf32>, vector<4x8xf32>, vector<512x8xf32> -> vector<512x8xf32>
    %6 = arith.addf %2, %5 : vector<512x8xf32>
    %c0_8 = arith.constant 0 : index
    %c0_9 = arith.constant 0 : index
    %7 = vector.load %arg5[%c0_8, %c0_9] : memref<1x8xf32, #tpu.memory_space<vmem>>, vector<1x8xf32>
    %8 = vector.broadcast %7 : vector<1x8xf32> to vector<512x8xf32>
    %9 = arith.addf %6, %8 : vector<512x8xf32>
    %cst_10 = arith.constant 0.000000e+00 : f32
    %10 = vector.broadcast %cst_10 : f32 to vector<512x8xf32>
    %11 = arith.maximumf %9, %10 : vector<512x8xf32>
    %c0_11 = arith.constant 0 : index
    %c0_12 = arith.constant 0 : index
    %12 = vector.load %arg6[%c0_11, %c0_12] : memref<512x8xf32, #tpu.memory_space<vmem>>, vector<512x8xf32>
    tpu.vector_store %arg6[%c0_11, %c0_12], %11 {strides = array<i32>} : memref<512x8xf32, #tpu.memory_space<vmem>>, vector<512x8xf32>,
    return
  }
  func.func @transform_0(%arg0: i32) -> (i32, i32) {
    %c0_i32 = arith.constant 0 : i32
    %c0_i32_0 = arith.constant 0 : i32
    return %arg0, %c0_i32 : i32, i32
  }
  func.func @transform_1(%arg0: i32) -> (i32, i32) {
    %c0_i32 = arith.constant 0 : i32
    %c0_i32_0 = arith.constant 0 : i32
    return %arg0, %c0_i32 : i32, i32
  }
  func.func @transform_2(%arg0: i32) -> (i32, i32) {
    %c0_i32 = arith.constant 0 : i32
    %c0_i32_0 = arith.constant 0 : i32
    %c0_i32_1 = arith.constant 0 : i32
    return %c0_i32, %c0_i32_0 : i32, i32
  }
  func.func @transform_3(%arg0: i32) -> (i32, i32) {
    %c0_i32 = arith.constant 0 : i32
    %c0_i32_0 = arith.constant 0 : i32
    %c0_i32_1 = arith.constant 0 : i32
    return %c0_i32, %c0_i32_0 : i32, i32
  }
  func.func @transform_4(%arg0: i32) -> (i32, i32) {
    %c0_i32 = arith.constant 0 : i32
    %c0_i32_0 = arith.constant 0 : i32
    %c0_i32_1 = arith.constant 0 : i32
    return %c0_i32, %c0_i32_0 : i32, i32
  }
  func.func @transform_5(%arg0: i32) -> (i32, i32) {
    %c0_i32 = arith.constant 0 : i32
    %c0_i32_0 = arith.constant 0 : i32
    return %arg0, %c0_i32 : i32, i32
  }
}

module attributes {stable_mosaic.version = 11 : i64} {
  func.func @_conv3x3_bn_relu_kernel(%arg0: i32, %arg1: memref<1x18x18x8xf32, #tpu.memory_space<vmem>>, %arg2: memref<9x8x4xf32, #tpu.memory_space<vmem>>, %arg3: memref<1x4xf32, #tpu.memory_space<vmem>>, %arg4: memref<1x16x16x4xf32, #tpu.memory_space<vmem>>) attributes {dimension_semantics = [#tpu.dimension_semantics<parallel>], iteration_bounds = array<i64: 2>, scalar_prefetch = 0 : i64, scratch_operands = 0 : i64, tpu.core_type = #tpu.core_type<tc>, window_params = [{transform_indices = @transform_0, window_bounds = array<i64: 1, 18, 18, 8>}, {pipeline_mode = #tpu.pipeline_mode<synchronous>, transform_indices = @transform_1, window_bounds = array<i64: 9, 8, 4>}, {pipeline_mode = #tpu.pipeline_mode<synchronous>, transform_indices = @transform_2, window_bounds = array<i64: 1, 4>}, {transform_indices = @transform_3, window_bounds = array<i64: 1, 16, 16, 4>}]} {
    %c0 = arith.constant 0 : index
    %c0_0 = arith.constant 0 : index
    %c0_1 = arith.constant 0 : index
    %c0_2 = arith.constant 0 : index
    %0 = vector.load %arg1[%c0, %c0_0, %c0_1, %c0_2] : memref<1x18x18x8xf32, #tpu.memory_space<vmem>>, vector<1x18x18x8xf32>
    %1 = vector.shape_cast %0 : vector<1x18x18x8xf32> to vector<18x18x8xf32>
    %cst = arith.constant 0.000000e+00 : f32
    %2 = vector.broadcast %cst : f32 to vector<256x4xf32>
    %3 = vector.extract_strided_slice %1 {offsets = [0, 0, 0], sizes = [16, 16, 8], strides = [1, 1, 1]} : vector<18x18x8xf32> to vector<16x16x8xf32>
    %4 = vector.shape_cast %3 : vector<16x16x8xf32> to vector<256x8xf32>
    %c0_3 = arith.constant 0 : index
    %c0_4 = arith.constant 0 : index
    %c0_5 = arith.constant 0 : index
    %5 = vector.load %arg2[%c0_3, %c0_4, %c0_5] : memref<9x8x4xf32, #tpu.memory_space<vmem>>, vector<1x8x4xf32>
    %6 = vector.shape_cast %5 : vector<1x8x4xf32> to vector<8x4xf32>
    %cst_6 = arith.constant dense<0.000000e+00> : vector<256x4xf32>
    %7 = tpu.matmul %4, %6, %cst_6 {dimension_numbers = #tpu.dot_dimension_numbers<[1], [0], [0], [1], [0, 0, 1, 1], [], []>} : vector<256x8xf32>, vector<8x4xf32>, vector<256x4xf32> -> vector<256x4xf32>
    %8 = arith.addf %2, %7 : vector<256x4xf32>
    %9 = vector.extract_strided_slice %1 {offsets = [0, 1, 0], sizes = [16, 16, 8], strides = [1, 1, 1]} : vector<18x18x8xf32> to vector<16x16x8xf32>
    %10 = vector.shape_cast %9 : vector<16x16x8xf32> to vector<256x8xf32>
    %c1 = arith.constant 1 : index
    %c0_7 = arith.constant 0 : index
    %c0_8 = arith.constant 0 : index
    %11 = vector.load %arg2[%c1, %c0_7, %c0_8] : memref<9x8x4xf32, #tpu.memory_space<vmem>>, vector<1x8x4xf32>
    %12 = vector.shape_cast %11 : vector<1x8x4xf32> to vector<8x4xf32>
    %cst_9 = arith.constant dense<0.000000e+00> : vector<256x4xf32>
    %13 = tpu.matmul %10, %12, %cst_9 {dimension_numbers = #tpu.dot_dimension_numbers<[1], [0], [0], [1], [0, 0, 1, 1], [], []>} : vector<256x8xf32>, vector<8x4xf32>, vector<256x4xf32> -> vector<256x4xf32>
    %14 = arith.addf %8, %13 : vector<256x4xf32>
    %15 = vector.extract_strided_slice %1 {offsets = [0, 2, 0], sizes = [16, 16, 8], strides = [1, 1, 1]} : vector<18x18x8xf32> to vector<16x16x8xf32>
    %16 = vector.shape_cast %15 : vector<16x16x8xf32> to vector<256x8xf32>
    %c2 = arith.constant 2 : index
    %c0_10 = arith.constant 0 : index
    %c0_11 = arith.constant 0 : index
    %17 = vector.load %arg2[%c2, %c0_10, %c0_11] : memref<9x8x4xf32, #tpu.memory_space<vmem>>, vector<1x8x4xf32>
    %18 = vector.shape_cast %17 : vector<1x8x4xf32> to vector<8x4xf32>
    %cst_12 = arith.constant dense<0.000000e+00> : vector<256x4xf32>
    %19 = tpu.matmul %16, %18, %cst_12 {dimension_numbers = #tpu.dot_dimension_numbers<[1], [0], [0], [1], [0, 0, 1, 1], [], []>} : vector<256x8xf32>, vector<8x4xf32>, vector<256x4xf32> -> vector<256x4xf32>
    %20 = arith.addf %14, %19 : vector<256x4xf32>
    %21 = vector.extract_strided_slice %1 {offsets = [1, 0, 0], sizes = [16, 16, 8], strides = [1, 1, 1]} : vector<18x18x8xf32> to vector<16x16x8xf32>
    %22 = vector.shape_cast %21 : vector<16x16x8xf32> to vector<256x8xf32>
    %c3 = arith.constant 3 : index
    %c0_13 = arith.constant 0 : index
    %c0_14 = arith.constant 0 : index
    %23 = vector.load %arg2[%c3, %c0_13, %c0_14] : memref<9x8x4xf32, #tpu.memory_space<vmem>>, vector<1x8x4xf32>
    %24 = vector.shape_cast %23 : vector<1x8x4xf32> to vector<8x4xf32>
    %cst_15 = arith.constant dense<0.000000e+00> : vector<256x4xf32>
    %25 = tpu.matmul %22, %24, %cst_15 {dimension_numbers = #tpu.dot_dimension_numbers<[1], [0], [0], [1], [0, 0, 1, 1], [], []>} : vector<256x8xf32>, vector<8x4xf32>, vector<256x4xf32> -> vector<256x4xf32>
    %26 = arith.addf %20, %25 : vector<256x4xf32>
    %27 = vector.extract_strided_slice %1 {offsets = [1, 1, 0], sizes = [16, 16, 8], strides = [1, 1, 1]} : vector<18x18x8xf32> to vector<16x16x8xf32>
    %28 = vector.shape_cast %27 : vector<16x16x8xf32> to vector<256x8xf32>
    %c4 = arith.constant 4 : index
    %c0_16 = arith.constant 0 : index
    %c0_17 = arith.constant 0 : index
    %29 = vector.load %arg2[%c4, %c0_16, %c0_17] : memref<9x8x4xf32, #tpu.memory_space<vmem>>, vector<1x8x4xf32>
    %30 = vector.shape_cast %29 : vector<1x8x4xf32> to vector<8x4xf32>
    %cst_18 = arith.constant dense<0.000000e+00> : vector<256x4xf32>
    %31 = tpu.matmul %28, %30, %cst_18 {dimension_numbers = #tpu.dot_dimension_numbers<[1], [0], [0], [1], [0, 0, 1, 1], [], []>} : vector<256x8xf32>, vector<8x4xf32>, vector<256x4xf32> -> vector<256x4xf32>
    %32 = arith.addf %26, %31 : vector<256x4xf32>
    %33 = vector.extract_strided_slice %1 {offsets = [1, 2, 0], sizes = [16, 16, 8], strides = [1, 1, 1]} : vector<18x18x8xf32> to vector<16x16x8xf32>
    %34 = vector.shape_cast %33 : vector<16x16x8xf32> to vector<256x8xf32>
    %c5 = arith.constant 5 : index
    %c0_19 = arith.constant 0 : index
    %c0_20 = arith.constant 0 : index
    %35 = vector.load %arg2[%c5, %c0_19, %c0_20] : memref<9x8x4xf32, #tpu.memory_space<vmem>>, vector<1x8x4xf32>
    %36 = vector.shape_cast %35 : vector<1x8x4xf32> to vector<8x4xf32>
    %cst_21 = arith.constant dense<0.000000e+00> : vector<256x4xf32>
    %37 = tpu.matmul %34, %36, %cst_21 {dimension_numbers = #tpu.dot_dimension_numbers<[1], [0], [0], [1], [0, 0, 1, 1], [], []>} : vector<256x8xf32>, vector<8x4xf32>, vector<256x4xf32> -> vector<256x4xf32>
    %38 = arith.addf %32, %37 : vector<256x4xf32>
    %39 = vector.extract_strided_slice %1 {offsets = [2, 0, 0], sizes = [16, 16, 8], strides = [1, 1, 1]} : vector<18x18x8xf32> to vector<16x16x8xf32>
    %40 = vector.shape_cast %39 : vector<16x16x8xf32> to vector<256x8xf32>
    %c6 = arith.constant 6 : index
    %c0_22 = arith.constant 0 : index
    %c0_23 = arith.constant 0 : index
    %41 = vector.load %arg2[%c6, %c0_22, %c0_23] : memref<9x8x4xf32, #tpu.memory_space<vmem>>, vector<1x8x4xf32>
    %42 = vector.shape_cast %41 : vector<1x8x4xf32> to vector<8x4xf32>
    %cst_24 = arith.constant dense<0.000000e+00> : vector<256x4xf32>
    %43 = tpu.matmul %40, %42, %cst_24 {dimension_numbers = #tpu.dot_dimension_numbers<[1], [0], [0], [1], [0, 0, 1, 1], [], []>} : vector<256x8xf32>, vector<8x4xf32>, vector<256x4xf32> -> vector<256x4xf32>
    %44 = arith.addf %38, %43 : vector<256x4xf32>
    %45 = vector.extract_strided_slice %1 {offsets = [2, 1, 0], sizes = [16, 16, 8], strides = [1, 1, 1]} : vector<18x18x8xf32> to vector<16x16x8xf32>
    %46 = vector.shape_cast %45 : vector<16x16x8xf32> to vector<256x8xf32>
    %c7 = arith.constant 7 : index
    %c0_25 = arith.constant 0 : index
    %c0_26 = arith.constant 0 : index
    %47 = vector.load %arg2[%c7, %c0_25, %c0_26] : memref<9x8x4xf32, #tpu.memory_space<vmem>>, vector<1x8x4xf32>
    %48 = vector.shape_cast %47 : vector<1x8x4xf32> to vector<8x4xf32>
    %cst_27 = arith.constant dense<0.000000e+00> : vector<256x4xf32>
    %49 = tpu.matmul %46, %48, %cst_27 {dimension_numbers = #tpu.dot_dimension_numbers<[1], [0], [0], [1], [0, 0, 1, 1], [], []>} : vector<256x8xf32>, vector<8x4xf32>, vector<256x4xf32> -> vector<256x4xf32>
    %50 = arith.addf %44, %49 : vector<256x4xf32>
    %51 = vector.extract_strided_slice %1 {offsets = [2, 2, 0], sizes = [16, 16, 8], strides = [1, 1, 1]} : vector<18x18x8xf32> to vector<16x16x8xf32>
    %52 = vector.shape_cast %51 : vector<16x16x8xf32> to vector<256x8xf32>
    %c8 = arith.constant 8 : index
    %c0_28 = arith.constant 0 : index
    %c0_29 = arith.constant 0 : index
    %53 = vector.load %arg2[%c8, %c0_28, %c0_29] : memref<9x8x4xf32, #tpu.memory_space<vmem>>, vector<1x8x4xf32>
    %54 = vector.shape_cast %53 : vector<1x8x4xf32> to vector<8x4xf32>
    %cst_30 = arith.constant dense<0.000000e+00> : vector<256x4xf32>
    %55 = tpu.matmul %52, %54, %cst_30 {dimension_numbers = #tpu.dot_dimension_numbers<[1], [0], [0], [1], [0, 0, 1, 1], [], []>} : vector<256x8xf32>, vector<8x4xf32>, vector<256x4xf32> -> vector<256x4xf32>
    %56 = arith.addf %50, %55 : vector<256x4xf32>
    %c0_31 = arith.constant 0 : index
    %c0_32 = arith.constant 0 : index
    %57 = vector.load %arg3[%c0_31, %c0_32] : memref<1x4xf32, #tpu.memory_space<vmem>>, vector<1x4xf32>
    %58 = vector.broadcast %57 : vector<1x4xf32> to vector<256x4xf32>
    %59 = arith.addf %56, %58 : vector<256x4xf32>
    %cst_33 = arith.constant 0.000000e+00 : f32
    %60 = vector.broadcast %cst_33 : f32 to vector<256x4xf32>
    %61 = arith.maximumf %59, %60 : vector<256x4xf32>
    %62 = vector.shape_cast %61 : vector<256x4xf32> to vector<16x16x4xf32>
    %c0_34 = arith.constant 0 : index
    %c0_35 = arith.constant 0 : index
    %c0_36 = arith.constant 0 : index
    %c0_37 = arith.constant 0 : index
    %63 = vector.load %arg4[%c0_34, %c0_35, %c0_36, %c0_37] : memref<1x16x16x4xf32, #tpu.memory_space<vmem>>, vector<1x16x16x4xf32>
    %64 = vector.shape_cast %63 : vector<1x16x16x4xf32> to vector<16x16x4xf32>
    %65 = vector.shape_cast %62 : vector<16x16x4xf32> to vector<1x16x16x4xf32>
    tpu.vector_store %arg4[%c0_34, %c0_35, %c0_36, %c0_37], %65 {strides = array<i32>} : memref<1x16x16x4xf32, #tpu.memory_space<vmem>>, vector<1x16x16x4xf32>,
    return
  }
  func.func @transform_0(%arg0: i32) -> (i32, i32, i32, i32) {
    %c0_i32 = arith.constant 0 : i32
    %c0_i32_0 = arith.constant 0 : i32
    %c0_i32_1 = arith.constant 0 : i32
    %c0_i32_2 = arith.constant 0 : i32
    return %arg0, %c0_i32, %c0_i32_0, %c0_i32_1 : i32, i32, i32, i32
  }
  func.func @transform_1(%arg0: i32) -> (i32, i32, i32) {
    %c0_i32 = arith.constant 0 : i32
    %c0_i32_0 = arith.constant 0 : i32
    %c0_i32_1 = arith.constant 0 : i32
    %c0_i32_2 = arith.constant 0 : i32
    return %c0_i32, %c0_i32_0, %c0_i32_1 : i32, i32, i32
  }
  func.func @transform_2(%arg0: i32) -> (i32, i32) {
    %c0_i32 = arith.constant 0 : i32
    %c0_i32_0 = arith.constant 0 : i32
    %c0_i32_1 = arith.constant 0 : i32
    return %c0_i32, %c0_i32_0 : i32, i32
  }
  func.func @transform_3(%arg0: i32) -> (i32, i32, i32, i32) {
    %c0_i32 = arith.constant 0 : i32
    %c0_i32_0 = arith.constant 0 : i32
    %c0_i32_1 = arith.constant 0 : i32
    %c0_i32_2 = arith.constant 0 : i32
    return %arg0, %c0_i32, %c0_i32_0, %c0_i32_1 : i32, i32, i32, i32
  }
}

module attributes {stable_mosaic.version = 11 : i64} {
  func.func @_up2x_kernel(%arg0: i32, %arg1: memref<1x18x18x4xf32, #tpu.memory_space<vmem>>, %arg2: memref<1x16x2x16x8xf32, #tpu.memory_space<vmem>>) attributes {dimension_semantics = [#tpu.dimension_semantics<parallel>], iteration_bounds = array<i64: 2>, scalar_prefetch = 0 : i64, scratch_operands = 0 : i64, tpu.core_type = #tpu.core_type<tc>, window_params = [{transform_indices = @transform_0, window_bounds = array<i64: 1, 18, 18, 4>}, {transform_indices = @transform_1, window_bounds = array<i64: 1, 16, 2, 16, 8>}]} {
    %c0 = arith.constant 0 : index
    %c0_0 = arith.constant 0 : index
    %c0_1 = arith.constant 0 : index
    %c0_2 = arith.constant 0 : index
    %0 = vector.load %arg1[%c0, %c0_0, %c0_1, %c0_2] : memref<1x18x18x4xf32, #tpu.memory_space<vmem>>, vector<1x18x18x4xf32>
    %1 = vector.shape_cast %0 : vector<1x18x18x4xf32> to vector<18x18x4xf32>
    %2 = vector.extract_strided_slice %1 {offsets = [1, 0, 0], sizes = [16, 18, 4], strides = [1, 1, 1]} : vector<18x18x4xf32> to vector<16x18x4xf32>
    %3 = vector.extract_strided_slice %1 {offsets = [0, 0, 0], sizes = [16, 18, 4], strides = [1, 1, 1]} : vector<18x18x4xf32> to vector<16x18x4xf32>
    %4 = vector.extract_strided_slice %1 {offsets = [2, 0, 0], sizes = [16, 18, 4], strides = [1, 1, 1]} : vector<18x18x4xf32> to vector<16x18x4xf32>
    %cst = arith.constant 7.500000e-01 : f32
    %5 = vector.broadcast %cst : f32 to vector<16x18x4xf32>
    %6 = arith.mulf %5, %2 : vector<16x18x4xf32>
    %cst_3 = arith.constant 2.500000e-01 : f32
    %7 = vector.broadcast %cst_3 : f32 to vector<16x18x4xf32>
    %8 = arith.mulf %7, %3 : vector<16x18x4xf32>
    %9 = arith.addf %6, %8 : vector<16x18x4xf32>
    %cst_4 = arith.constant 7.500000e-01 : f32
    %10 = vector.broadcast %cst_4 : f32 to vector<16x18x4xf32>
    %11 = arith.mulf %10, %2 : vector<16x18x4xf32>
    %cst_5 = arith.constant 2.500000e-01 : f32
    %12 = vector.broadcast %cst_5 : f32 to vector<16x18x4xf32>
    %13 = arith.mulf %12, %4 : vector<16x18x4xf32>
    %14 = arith.addf %11, %13 : vector<16x18x4xf32>
    %15 = vector.extract_strided_slice %9 {offsets = [0, 1, 0], sizes = [16, 16, 4], strides = [1, 1, 1]} : vector<16x18x4xf32> to vector<16x16x4xf32>
    %16 = vector.extract_strided_slice %9 {offsets = [0, 0, 0], sizes = [16, 16, 4], strides = [1, 1, 1]} : vector<16x18x4xf32> to vector<16x16x4xf32>
    %17 = vector.extract_strided_slice %9 {offsets = [0, 2, 0], sizes = [16, 16, 4], strides = [1, 1, 1]} : vector<16x18x4xf32> to vector<16x16x4xf32>
    %18 = vector.extract_strided_slice %14 {offsets = [0, 1, 0], sizes = [16, 16, 4], strides = [1, 1, 1]} : vector<16x18x4xf32> to vector<16x16x4xf32>
    %19 = vector.extract_strided_slice %14 {offsets = [0, 0, 0], sizes = [16, 16, 4], strides = [1, 1, 1]} : vector<16x18x4xf32> to vector<16x16x4xf32>
    %20 = vector.extract_strided_slice %14 {offsets = [0, 2, 0], sizes = [16, 16, 4], strides = [1, 1, 1]} : vector<16x18x4xf32> to vector<16x16x4xf32>
    %cst_6 = arith.constant 7.500000e-01 : f32
    %21 = vector.broadcast %cst_6 : f32 to vector<16x16x4xf32>
    %22 = arith.mulf %21, %15 : vector<16x16x4xf32>
    %cst_7 = arith.constant 2.500000e-01 : f32
    %23 = vector.broadcast %cst_7 : f32 to vector<16x16x4xf32>
    %24 = arith.mulf %23, %16 : vector<16x16x4xf32>
    %25 = arith.addf %22, %24 : vector<16x16x4xf32>
    %cst_8 = arith.constant 7.500000e-01 : f32
    %26 = vector.broadcast %cst_8 : f32 to vector<16x16x4xf32>
    %27 = arith.mulf %26, %15 : vector<16x16x4xf32>
    %cst_9 = arith.constant 2.500000e-01 : f32
    %28 = vector.broadcast %cst_9 : f32 to vector<16x16x4xf32>
    %29 = arith.mulf %28, %17 : vector<16x16x4xf32>
    %30 = arith.addf %27, %29 : vector<16x16x4xf32>
    %cst_10 = arith.constant 7.500000e-01 : f32
    %31 = vector.broadcast %cst_10 : f32 to vector<16x16x4xf32>
    %32 = arith.mulf %31, %18 : vector<16x16x4xf32>
    %cst_11 = arith.constant 2.500000e-01 : f32
    %33 = vector.broadcast %cst_11 : f32 to vector<16x16x4xf32>
    %34 = arith.mulf %33, %19 : vector<16x16x4xf32>
    %35 = arith.addf %32, %34 : vector<16x16x4xf32>
    %cst_12 = arith.constant 7.500000e-01 : f32
    %36 = vector.broadcast %cst_12 : f32 to vector<16x16x4xf32>
    %37 = arith.mulf %36, %18 : vector<16x16x4xf32>
    %cst_13 = arith.constant 2.500000e-01 : f32
    %38 = vector.broadcast %cst_13 : f32 to vector<16x16x4xf32>
    %39 = arith.mulf %38, %20 : vector<16x16x4xf32>
    %40 = arith.addf %37, %39 : vector<16x16x4xf32>
    %41 = tpu.concatenate %25, %30 in 2 : vector<16x16x4xf32>, vector<16x16x4xf32> -> vector<16x16x8xf32>
    %c0_14 = arith.constant 0 : index
    %c0_15 = arith.constant 0 : index
    %c0_16 = arith.constant 0 : index
    %c0_17 = arith.constant 0 : index
    %c0_18 = arith.constant 0 : index
    %42 = vector.load %arg2[%c0_14, %c0_15, %c0_16, %c0_17, %c0_18] : memref<1x16x2x16x8xf32, #tpu.memory_space<vmem>>, vector<1x16x1x16x8xf32>
    %43 = vector.shape_cast %42 : vector<1x16x1x16x8xf32> to vector<16x16x8xf32>
    %44 = vector.shape_cast %41 : vector<16x16x8xf32> to vector<1x16x1x16x8xf32>
    tpu.vector_store %arg2[%c0_14, %c0_15, %c0_16, %c0_17, %c0_18], %44 {strides = array<i32>} : memref<1x16x2x16x8xf32, #tpu.memory_space<vmem>>, vector<1x16x1x16x8xf32>,
    %45 = tpu.concatenate %35, %40 in 2 : vector<16x16x4xf32>, vector<16x16x4xf32> -> vector<16x16x8xf32>
    %c0_19 = arith.constant 0 : index
    %c0_20 = arith.constant 0 : index
    %c1 = arith.constant 1 : index
    %c0_21 = arith.constant 0 : index
    %c0_22 = arith.constant 0 : index
    %46 = vector.load %arg2[%c0_19, %c0_20, %c1, %c0_21, %c0_22] : memref<1x16x2x16x8xf32, #tpu.memory_space<vmem>>, vector<1x16x1x16x8xf32>
    %47 = vector.shape_cast %46 : vector<1x16x1x16x8xf32> to vector<16x16x8xf32>
    %48 = vector.shape_cast %45 : vector<16x16x8xf32> to vector<1x16x1x16x8xf32>
    tpu.vector_store %arg2[%c0_19, %c0_20, %c1, %c0_21, %c0_22], %48 {strides = array<i32>} : memref<1x16x2x16x8xf32, #tpu.memory_space<vmem>>, vector<1x16x1x16x8xf32>,
    return
  }
  func.func @transform_0(%arg0: i32) -> (i32, i32, i32, i32) {
    %c0_i32 = arith.constant 0 : i32
    %c0_i32_0 = arith.constant 0 : i32
    %c0_i32_1 = arith.constant 0 : i32
    %c0_i32_2 = arith.constant 0 : i32
    return %arg0, %c0_i32, %c0_i32_0, %c0_i32_1 : i32, i32, i32, i32
  }
  func.func @transform_1(%arg0: i32) -> (i32, i32, i32, i32, i32) {
    %c0_i32 = arith.constant 0 : i32
    %c0_i32_0 = arith.constant 0 : i32
    %c0_i32_1 = arith.constant 0 : i32
    %c0_i32_2 = arith.constant 0 : i32
    %c0_i32_3 = arith.constant 0 : i32
    return %arg0, %c0_i32, %c0_i32_0, %c0_i32_1, %c0_i32_2 : i32, i32, i32, i32, i32
  }
}

</mosaic_0001>

<bundles_post_ra>
// kernel: concat_up_conv.3
= control target key start
LH: loop header
LB: loop body
LE: loop exit
PB: predicated region body
PF: predicated region fallthrough
CT: control target
= control target key end

     0   :  { %vm343_vm0 = vcmask 1043456   ;;  %vm150_vm1 = vcmask 31744   ;;  %vm1092_vm2 = vcmask 64512   ;;  %s2171_s3 = inlined_call_operand.vmem [shape: f32[4,8], index: 3, kind: input, shape index: {}]   ;;  %s2172_s2 = inlined_call_operand.vmem [shape: f32[4,8], index: 2, kind: input, shape index: {}]   ;;  %s2173_s1 = inlined_call_operand.vmem [shape: f32[512,4], index: 1, kind: input, shape index: {}]   ;;  %s2174_s0 = inlined_call_operand.vmem [shape: f32[512,4], index: 0, kind: input, shape index: {}]   ;;  %s2175_s4 = inlined_call_operand.vmem [shape: f32[1,8], index: 4, kind: input, shape index: {}]   ;;  %s2176_s5 = inlined_call_operand.vmem [shape: f32[512,8], index: 5, kind: output, shape index: {}]  }
   0x1   :  { %v149_v0 = vld [vmem:[%s2171_s3] sm:$0xf]  ;;  %v118_v6 = vld [vmem:[%s2173_s1 + $0x108] sm:$0xff]  ;;  %v119_v10 = vld [vmem:[%s2173_s1 + $0x110] sm:$0xff] }
   0x2   :  { %v84_v1 = vld [vmem:[%s2172_s2] sm:$0xf]  ;;  %1291 = vmatpush.msk.msra.mxu2 %vm343_vm0, %v149_v0  ;;  %1161 = vmatpush.msk.msra.mxu0 %vm343_vm0, %v149_v0  ;;  %v53_v7 = vld [vmem:[%s2174_s0 + $0x108] sm:$0xff]  ;;  %v54_v11 = vld [vmem:[%s2174_s0 + $0x110] sm:$0xff] }
   0x3   :  { %v117_v2 = vld [vmem:[%s2173_s1 + $0x100] sm:$0xff]  ;;  %1292 = vmatpush.msk.msra.mxu3 %vm343_vm0, %v84_v1  ;;  %1226 = vmatpush.msk.msra.mxu1 %vm343_vm0, %v84_v1  ;;  %v86_v8 = vld [vmem:[%s2173_s1 + $0x8] sm:$0xff]  ;;  %v87_v12 = vld [vmem:[%s2173_s1 + $0x10] sm:$0xff] }
   0x4   :  { %v52_v3 = vld [vmem:[%s2174_s0 + $0x100] sm:$0xff]  ;;  %1194 = vmatmul.msk.f32.vlgmr.msra.gmra.mxu2 %vm150_vm1, %v117_v2  ;;  %v21_v9 = vld [vmem:[%s2174_s0 + $0x8] sm:$0xff]  ;;  %v22_v13 = vld [vmem:[%s2174_s0 + $0x10] sm:$0xff] }
   0x5   :  { %v85_v4 = vld [vmem:[%s2173_s1] sm:$0xff]  ;;  %1259 = vmatmul.msk.f32.vlgmr.msra.gmra.mxu3 %vm150_vm1, %v52_v3  ;;  %v120_v14 = vld [vmem:[%s2173_s1 + $0x118] sm:$0xff]  ;;  %v122_v22 = vld [vmem:[%s2173_s1 + $0x128] sm:$0xff] }
   0x6   :  { %v20_v5 = vld [vmem:[%s2174_s0] sm:$0xff]  ;;  %1162 = vmatmul.msk.f32.vlgmr.msra.gmra.mxu0 %vm150_vm1, %v85_v4  ;;  %v55_v15 = vld [vmem:[%s2174_s0 + $0x118] sm:$0xff]  ;;  %v57_v23 = vld [vmem:[%s2174_s0 + $0x128] sm:$0xff] }
   0x7   :  { %1227 = vmatmul.msk.f32.vlgmr.msra.gmra.mxu1 %vm150_vm1, %v20_v5  ;;  %v88_v16 = vld [vmem:[%s2173_s1 + $0x18] sm:$0xff]  ;;  %v121_v18 = vld [vmem:[%s2173_s1 + $0x120] sm:$0xff]  ;;  %v90_v24 = vld [vmem:[%s2173_s1 + $0x28] sm:$0xff] }
   0x8   :  { %v23_v17 = vld [vmem:[%s2174_s0 + $0x18] sm:$0xff]  ;;  %v56_v19 = vld [vmem:[%s2174_s0 + $0x120] sm:$0xff]  ;;  %v25_v25 = vld [vmem:[%s2174_s0 + $0x28] sm:$0xff] }
   0x9   :  { %v89_v20 = vld [vmem:[%s2173_s1 + $0x20] sm:$0xff]  ;;  %v123_v26 = vld [vmem:[%s2173_s1 + $0x130] sm:$0xff]  ;;  %v124_v30 = vld [vmem:[%s2173_s1 + $0x138] sm:$0xff] }
   0xa   :  { %v24_v21 = vld [vmem:[%s2174_s0 + $0x20] sm:$0xff]  ;;  %v58_v27 = vld [vmem:[%s2174_s0 + $0x130] sm:$0xff]  ;;  %v59_v31 = vld [vmem:[%s2174_s0 + $0x138] sm:$0xff] }
   0xb   :  { %v91_v28 = vld [vmem:[%s2173_s1 + $0x30] sm:$0xff]  ;;  %v92_v32 = vld [vmem:[%s2173_s1 + $0x38] sm:$0xff]  ;;  %v125_v34 = vld [vmem:[%s2173_s1 + $0x140] sm:$0xff] }
   0xc   :  { %1195 = vmatmul.msk.f32.gmra.mxu2 %vm150_vm1, %v118_v6  ;;  %v26_v29 = vld [vmem:[%s2174_s0 + $0x30] sm:$0xff]  ;;  %v27_v33 = vld [vmem:[%s2174_s0 + $0x38] sm:$0xff]  ;;  %v60_v35 = vld [vmem:[%s2174_s0 + $0x140] sm:$0xff] }
   0xd   :  { %1260 = vmatmul.msk.f32.gmra.mxu3 %vm150_vm1, %v53_v7  ;;  %v93_v36 = vld [vmem:[%s2173_s1 + $0x40] sm:$0xff]  ;;  %v126_v38 = vld [vmem:[%s2173_s1 + $0x148] sm:$0xff]  ;;  %v127_v42 = vld [vmem:[%s2173_s1 + $0x150] sm:$0xff] }
   0xe   :  { %1163 = vmatmul.msk.f32.gmra.mxu0 %vm150_vm1, %v86_v8  ;;  %v28_v37 = vld [vmem:[%s2174_s0 + $0x40] sm:$0xff]  ;;  %v61_v39 = vld [vmem:[%s2174_s0 + $0x148] sm:$0xff]  ;;  %v62_v43 = vld [vmem:[%s2174_s0 + $0x150] sm:$0xff] }
   0xf   :  { %1228 = vmatmul.msk.f32.gmra.mxu1 %vm150_vm1, %v21_v9  ;;  %v94_v40 = vld [vmem:[%s2173_s1 + $0x48] sm:$0xff]  ;;  %v95_v44 = vld [vmem:[%s2173_s1 + $0x50] sm:$0xff]  ;;  %v128_v46 = vld [vmem:[%s2173_s1 + $0x158] sm:$0xff] }
  0x10   :  { %v29_v41 = vld [vmem:[%s2174_s0 + $0x48] sm:$0xff]  ;;  %v30_v45 = vld [vmem:[%s2174_s0 + $0x50] sm:$0xff]  ;;  %v63_v47 = vld [vmem:[%s2174_s0 + $0x158] sm:$0xff] }
  0x11   :  { %v96_v48 = vld [vmem:[%s2173_s1 + $0x58] sm:$0xff]  ;;  %v129_v50 = vld [vmem:[%s2173_s1 + $0x160] sm:$0xff]  ;;  %v130_v54 = vld [vmem:[%s2173_s1 + $0x168] sm:$0xff] }
  0x12   :  { %v31_v49 = vld [vmem:[%s2174_s0 + $0x58] sm:$0xff]  ;;  %v64_v51 = vld [vmem:[%s2174_s0 + $0x160] sm:$0xff]  ;;  %v65_v55 = vld [vmem:[%s2174_s0 + $0x168] sm:$0xff] }
  0x13   :  { %v97_v52 = vld [vmem:[%s2173_s1 + $0x60] sm:$0xff]  ;;  %v98_v56 = vld [vmem:[%s2173_s1 + $0x68] sm:$0xff]  ;;  %v131_v58 = vld [vmem:[%s2173_s1 + $0x170] sm:$0xff] }
  0x14   :  { %1196 = vmatmul.msk.f32.gmra.mxu2 %vm150_vm1, %v119_v10  ;;  %v32_v53 = vld [vmem:[%s2174_s0 + $0x60] sm:$0xff]  ;;  %v33_v57 = vld [vmem:[%s2174_s0 + $0x68] sm:$0xff]  ;;  %v66_v59 = vld [vmem:[%s2174_s0 + $0x170] sm:$0xff] }
  0x15   :  { %1261 = vmatmul.msk.f32.gmra.mxu3 %vm150_vm1, %v54_v11  ;;  %v99_v60 = vld [vmem:[%s2173_s1 + $0x70] sm:$0xff]  ;;  %v132_v62 = vld [vmem:[%s2173_s1 + $0x178] sm:$0xff]  ;;  %v133_v2 = vld [vmem:[%s2173_s1 + $0x180] sm:$0xff] }
  0x16   :  { %1164 = vmatmul.msk.f32.gmra.mxu0 %vm150_vm1, %v87_v12  ;;  %v34_v61 = vld [vmem:[%s2174_s0 + $0x70] sm:$0xff]  ;;  %v67_v63 = vld [vmem:[%s2174_s0 + $0x178] sm:$0xff]  ;;  %v68_v3 = vld [vmem:[%s2174_s0 + $0x180] sm:$0xff] }
  0x17   :  { %1229 = vmatmul.msk.f32.gmra.mxu1 %vm150_vm1, %v22_v13  ;;  %v100_v0 = vld [vmem:[%s2173_s1 + $0x78] sm:$0xff]  ;;  %v1599_v4 = vld [vmem:[%s2175_s4] ss:$0 sm:$0xff] }
  0x18   :  { %v35_v1 = vld [vmem:[%s2174_s0 + $0x78] sm:$0xff]  ;;  %v101_v7 = vld [vmem:[%s2173_s1 + $0x80] sm:$0xff] }
  0x19   :  { %v36_v8 = vld [vmem:[%s2174_s0 + $0x80] sm:$0xff] }
  0x1c   :  { %1197 = vmatmul.msk.f32.gmra.mxu2 %vm150_vm1, %v120_v14 }
  0x1d   :  { %1262 = vmatmul.msk.f32.gmra.mxu3 %vm150_vm1, %v55_v15  ;;  %v134_v15 = vld [vmem:[%s2173_s1 + $0x188] sm:$0xff] }
  0x1e   :  { %1165 = vmatmul.msk.f32.gmra.mxu0 %vm150_vm1, %v88_v16  ;;  %v69_v16 = vld [vmem:[%s2174_s0 + $0x188] sm:$0xff] }
  0x1f   :  { %1230 = vmatmul.msk.f32.gmra.mxu1 %vm150_vm1, %v23_v17 }
  0x24   :  { %1198 = vmatmul.msk.f32.gmra.mxu2 %vm150_vm1, %v121_v18 }
  0x25   :  { %1263 = vmatmul.msk.f32.gmra.mxu3 %vm150_vm1, %v56_v19 }
  0x26   :  { %1166 = vmatmul.msk.f32.gmra.mxu0 %vm150_vm1, %v89_v20  ;;  %v102_v20 = vld [vmem:[%s2173_s1 + $0x88] sm:$0xff] }
  0x27   :  { %1231 = vmatmul.msk.f32.gmra.mxu1 %vm150_vm1, %v24_v21  ;;  %v37_v21 = vld [vmem:[%s2174_s0 + $0x88] sm:$0xff] }
  0x2c   :  { %1199 = vmatmul.msk.f32.gmra.mxu2 %vm150_vm1, %v122_v22 }
  0x2d   :  { %1264 = vmatmul.msk.f32.gmra.mxu3 %vm150_vm1, %v57_v23 }
  0x2e   :  { %1167 = vmatmul.msk.f32.gmra.mxu0 %vm150_vm1, %v90_v24 }
  0x2f   :  { %1232 = vmatmul.msk.f32.gmra.mxu1 %vm150_vm1, %v25_v25 }
  0x34   :  { %1200 = vmatmul.msk.f32.gmra.mxu2 %vm150_vm1, %v123_v26 }
  0x35   :  { %1265 = vmatmul.msk.f32.gmra.mxu3 %vm150_vm1, %v58_v27 }
  0x36   :  { %1168 = vmatmul.msk.f32.gmra.mxu0 %vm150_vm1, %v91_v28 }
  0x37   :  { %1233 = vmatmul.msk.f32.gmra.mxu1 %vm150_vm1, %v26_v29  ;;  %v135_v29 = vld [vmem:[%s2173_s1 + $0x190] sm:$0xff] }
  0x3c   :  { %1201 = vmatmul.msk.f32.gmra.mxu2 %vm150_vm1, %v124_v30  ;;  %v70_v30 = vld [vmem:[%s2174_s0 + $0x190] sm:$0xff] }
  0x3d   :  { %1266 = vmatmul.msk.f32.gmra.mxu3 %vm150_vm1, %v59_v31 }
  0x3e   :  { %1169 = vmatmul.msk.f32.gmra.mxu0 %vm150_vm1, %v92_v32 }
  0x3f   :  { %1234 = vmatmul.msk.f32.gmra.mxu1 %vm150_vm1, %v27_v33 }
  0x44   :  { %1202 = vmatmul.msk.f32.gmra.mxu2 %vm150_vm1, %v125_v34  ;;  %v103_v34 = vld [vmem:[%s2173_s1 + $0x90] sm:$0xff] }
  0x45   :  { %1267 = vmatmul.msk.f32.gmra.mxu3 %vm150_vm1, %v60_v35  ;;  %v38_v35 = vld [vmem:[%s2174_s0 + $0x90] sm:$0xff] }
  0x46   :  { %1170 = vmatmul.msk.f32.gmra.mxu0 %vm150_vm1, %v93_v36 }
  0x47   :  { %1235 = vmatmul.msk.f32.gmra.mxu1 %vm150_vm1, %v28_v37 }
  0x4c   :  { %1203 = vmatmul.msk.f32.gmra.mxu2 %vm150_vm1, %v126_v38 }
  0x4d   :  { %1268 = vmatmul.msk.f32.gmra.mxu3 %vm150_vm1, %v61_v39 }
  0x4e   :  { %1171 = vmatmul.msk.f32.gmra.mxu0 %vm150_vm1, %v94_v40 }
  0x4f   :  { %1236 = vmatmul.msk.f32.gmra.mxu1 %vm150_vm1, %v29_v41 }
  0x54   :  { %1204 = vmatmul.msk.f32.gmra.mxu2 %vm150_vm1, %v127_v42 }
  0x55   :  { %1269 = vmatmul.msk.f32.gmra.mxu3 %vm150_vm1, %v62_v43  ;;  %v136_v43 = vld [vmem:[%s2173_s1 + $0x198] sm:$0xff] }
  0x56   :  { %1172 = vmatmul.msk.f32.gmra.mxu0 %vm150_vm1, %v95_v44  ;;  %v71_v44 = vld [vmem:[%s2174_s0 + $0x198] sm:$0xff] }
  0x57   :  { %1237 = vmatmul.msk.f32.gmra.mxu1 %vm150_vm1, %v30_v45 }
  0x5c   :  { %1205 = vmatmul.msk.f32.gmra.mxu2 %vm150_vm1, %v128_v46 }
  0x5d   :  { %1270 = vmatmul.msk.f32.gmra.mxu3 %vm150_vm1, %v63_v47 }
  0x5e   :  { %1173 = vmatmul.msk.f32.gmra.mxu0 %vm150_vm1, %v96_v48  ;;  %v104_v48 = vld [vmem:[%s2173_s1 + $0x98] sm:$0xff] }
  0x5f   :  { %1238 = vmatmul.msk.f32.gmra.mxu1 %vm150_vm1, %v31_v49  ;;  %v39_v49 = vld [vmem:[%s2174_s0 + $0x98] sm:$0xff] }
  0x64   :  { %1206 = vmatmul.msk.f32.gmra.mxu2 %vm150_vm1, %v129_v50 }
  0x65   :  { %1271 = vmatmul.msk.f32.gmra.mxu3 %vm150_vm1, %v64_v51 }
  0x66   :  { %1174 = vmatmul.msk.f32.gmra.mxu0 %vm150_vm1, %v97_v52 }
  0x67   :  { %1239 = vmatmul.msk.f32.gmra.mxu1 %vm150_vm1, %v32_v53 }
  0x6c   :  { %1207 = vmatmul.msk.f32.gmra.mxu2 %vm150_vm1, %v130_v54 }
  0x6d   :  { %1272 = vmatmul.msk.f32.gmra.mxu3 %vm150_vm1, %v65_v55 }
  0x6e   :  { %1175 = vmatmul.msk.f32.gmra.mxu0 %vm150_vm1, %v98_v56 }
  0x6f   :  { %1240 = vmatmul.msk.f32.gmra.mxu1 %vm150_vm1, %v33_v57  ;;  %v137_v57 = vld [vmem:[%s2173_s1 + $0x1a0] sm:$0xff] }
  0x74   :  { %1208 = vmatmul.msk.f32.gmra.mxu2 %vm150_vm1, %v131_v58  ;;  %v72_v58 = vld [vmem:[%s2174_s0 + $0x1a0] sm:$0xff] }
  0x75   :  { %1273 = vmatmul.msk.f32.gmra.mxu3 %vm150_vm1, %v66_v59 }
  0x76   :  { %1176 = vmatmul.msk.f32.gmra.mxu0 %vm150_vm1, %v99_v60 }
  0x77   :  { %1241 = vmatmul.msk.f32.gmra.mxu1 %vm150_vm1, %v34_v61 }
  0x7c   :  { %1209 = vmatmul.msk.f32.gmra.mxu2 %vm150_vm1, %v132_v62  ;;  %v105_v62 = vld [vmem:[%s2173_s1 + $0xa0] sm:$0xff] }
  0x7d   :  { %1274 = vmatmul.msk.f32.gmra.mxu3 %vm150_vm1, %v67_v63  ;;  %v40_v63 = vld [vmem:[%s2174_s0 + $0xa0] sm:$0xff] }
  0x7e   :  { %1177 = vmatmul.msk.f32.gmra.mxu0 %vm150_vm1, %v100_v0 }
  0x7f   :  { %1242 = vmatmul.msk.f32.gmra.mxu1 %vm150_vm1, %v35_v1 }
  0x83   :  { %v364_v5 = vpop.f32.mrf.mxu0 }
  0x84   :  { %v768_v6 = vpop.f32.mrf.mxu1  ;;  %1210 = vmatmul.msk.f32.gmra.mxu2 %vm150_vm1, %v133_v2 }
  0x85   :  { %1275 = vmatmul.msk.f32.gmra.mxu3 %vm150_vm1, %v68_v3  ;;  %v769_v9 = vadd.f32 %v768_v6, %v364_v5 }
  0x86   :  { %1178 = vmatmul.msk.f32.gmra.mxu0 %vm150_vm1, %v101_v7 }
  0x87   :  { %v964_v10 = vadd.f32 %v1599_v4, %v769_v9  ;;  %1243 = vmatmul.msk.f32.gmra.mxu1 %vm150_vm1, %v36_v8  ;;  %v460_v11 = vpop.f32.mrf.mxu2  ;;  %v138_v8 = vld [vmem:[%s2173_s1 + $0x1a8] sm:$0xff] }
  0x88   :  { %v864_v12 = vpop.f32.mrf.mxu3  ;;  %v73_v9 = vld [vmem:[%s2174_s0 + $0x1a8] sm:$0xff] }
  0x89   :  { %v1028_v13 = vmax.f32 %v964_v10, 0.0  ;;  %v865_v14 = vadd.f32 %v864_v12, %v460_v11 }
  0x8b   :  { %1093 = vst.msk [vmem:[%s2176_s5] sm:$0xff] %vm1092_vm2, %v1028_v13  ;;  %v996_v17 = vadd.f32 %v1599_v4, %v865_v14  ;;  %v367_v18 = vpop.f32.mrf.mxu0  ;;  %v106_v13 = vld [vmem:[%s2173_s1 + $0xa8] sm:$0xff] }
  0x8c   :  { %v771_v19 = vpop.f32.mrf.mxu1  ;;  %1211 = vmatmul.msk.f32.gmra.mxu2 %vm150_vm1, %v134_v15  ;;  %v41_v14 = vld [vmem:[%s2174_s0 + $0xa8] sm:$0xff] }
  0x8d   :  { %v1060_v22 = vmax.f32 %v996_v17, 0.0  ;;  %1276 = vmatmul.msk.f32.gmra.mxu3 %vm150_vm1, %v69_v16  ;;  %v772_v23 = vadd.f32 %v771_v19, %v367_v18 }
  0x8e   :  { %1179 = vmatmul.msk.f32.gmra.mxu0 %vm150_vm1, %v102_v20 }
  0x8f   :  { %1125 = vst.msk [vmem:[%s2176_s5 + $0x100] sm:$0xff] %vm1092_vm2, %v1060_v22  ;;  %v965_v24 = vadd.f32 %v1599_v4, %v772_v23  ;;  %1244 = vmatmul.msk.f32.gmra.mxu1 %vm150_vm1, %v37_v21  ;;  %v463_v25 = vpop.f32.mrf.mxu2  ;;  %v139_v22 = vld [vmem:[%s2173_s1 + $0x1b0] sm:$0xff] }
  0x90   :  { %v867_v26 = vpop.f32.mrf.mxu3  ;;  %v74_v23 = vld [vmem:[%s2174_s0 + $0x1b0] sm:$0xff] }
  0x91   :  { %v1029_v27 = vmax.f32 %v965_v24, 0.0  ;;  %v868_v28 = vadd.f32 %v867_v26, %v463_v25 }
  0x93   :  { %1094 = vst.msk [vmem:[%s2176_s5 + $0x8] sm:$0xff] %vm1092_vm2, %v1029_v27  ;;  %v997_v31 = vadd.f32 %v1599_v4, %v868_v28  ;;  %v370_v32 = vpop.f32.mrf.mxu0  ;;  %v107_v27 = vld [vmem:[%s2173_s1 + $0xb0] sm:$0xff] }
  0x94   :  { %v774_v33 = vpop.f32.mrf.mxu1  ;;  %1212 = vmatmul.msk.f32.gmra.mxu2 %vm150_vm1, %v135_v29  ;;  %v42_v28 = vld [vmem:[%s2174_s0 + $0xb0] sm:$0xff] }
  0x95   :  { %v1061_v36 = vmax.f32 %v997_v31, 0.0  ;;  %1277 = vmatmul.msk.f32.gmra.mxu3 %vm150_vm1, %v70_v30  ;;  %v775_v37 = vadd.f32 %v774_v33, %v370_v32 }
  0x96   :  { %1180 = vmatmul.msk.f32.gmra.mxu0 %vm150_vm1, %v103_v34 }
  0x97   :  { %1126 = vst.msk [vmem:[%s2176_s5 + $0x108] sm:$0xff] %vm1092_vm2, %v1061_v36  ;;  %v966_v38 = vadd.f32 %v1599_v4, %v775_v37  ;;  %1245 = vmatmul.msk.f32.gmra.mxu1 %vm150_vm1, %v38_v35  ;;  %v466_v39 = vpop.f32.mrf.mxu2  ;;  %v140_v36 = vld [vmem:[%s2173_s1 + $0x1b8] sm:$0xff] }
  0x98   :  { %v870_v40 = vpop.f32.mrf.mxu3  ;;  %v75_v37 = vld [vmem:[%s2174_s0 + $0x1b8] sm:$0xff] }
  0x99   :  { %v1030_v41 = vmax.f32 %v966_v38, 0.0  ;;  %v871_v42 = vadd.f32 %v870_v40, %v466_v39 }
  0x9b   :  { %1095 = vst.msk [vmem:[%s2176_s5 + $0x10] sm:$0xff] %vm1092_vm2, %v1030_v41  ;;  %v998_v45 = vadd.f32 %v1599_v4, %v871_v42  ;;  %v373_v46 = vpop.f32.mrf.mxu0  ;;  %v108_v41 = vld [vmem:[%s2173_s1 + $0xb8] sm:$0xff] }
  0x9c   :  { %v777_v47 = vpop.f32.mrf.mxu1  ;;  %1213 = vmatmul.msk.f32.gmra.mxu2 %vm150_vm1, %v136_v43  ;;  %v43_v42 = vld [vmem:[%s2174_s0 + $0xb8] sm:$0xff] }
  0x9d   :  { %v1062_v50 = vmax.f32 %v998_v45, 0.0  ;;  %1278 = vmatmul.msk.f32.gmra.mxu3 %vm150_vm1, %v71_v44  ;;  %v778_v51 = vadd.f32 %v777_v47, %v373_v46 }
  0x9e   :  { %1181 = vmatmul.msk.f32.gmra.mxu0 %vm150_vm1, %v104_v48 }
  0x9f   :  { %1127 = vst.msk [vmem:[%s2176_s5 + $0x110] sm:$0xff] %vm1092_vm2, %v1062_v50  ;;  %v967_v52 = vadd.f32 %v1599_v4, %v778_v51  ;;  %1246 = vmatmul.msk.f32.gmra.mxu1 %vm150_vm1, %v39_v49  ;;  %v469_v53 = vpop.f32.mrf.mxu2  ;;  %v141_v50 = vld [vmem:[%s2173_s1 + $0x1c0] sm:$0xff] }
  0xa0   :  { %v873_v54 = vpop.f32.mrf.mxu3  ;;  %v76_v51 = vld [vmem:[%s2174_s0 + $0x1c0] sm:$0xff] }
  0xa1   :  { %v1031_v55 = vmax.f32 %v967_v52, 0.0  ;;  %v874_v56 = vadd.f32 %v873_v54, %v469_v53 }
  0xa3   :  { %1096 = vst.msk [vmem:[%s2176_s5 + $0x18] sm:$0xff] %vm1092_vm2, %v1031_v55  ;;  %v999_v59 = vadd.f32 %v1599_v4, %v874_v56  ;;  %v376_v60 = vpop.f32.mrf.mxu0  ;;  %v109_v55 = vld [vmem:[%s2173_s1 + $0xc0] sm:$0xff] }
  0xa4   :  { %v780_v61 = vpop.f32.mrf.mxu1  ;;  %1214 = vmatmul.msk.f32.gmra.mxu2 %vm150_vm1, %v137_v57  ;;  %v44_v56 = vld [vmem:[%s2174_s0 + $0xc0] sm:$0xff] }
  0xa5   :  { %v1063_v0 = vmax.f32 %v999_v59, 0.0  ;;  %1279 = vmatmul.msk.f32.gmra.mxu3 %vm150_vm1, %v72_v58  ;;  %v781_v1 = vadd.f32 %v780_v61, %v376_v60 }
  0xa6   :  { %1182 = vmatmul.msk.f32.gmra.mxu0 %vm150_vm1, %v105_v62 }
  0xa7   :  { %1128 = vst.msk [vmem:[%s2176_s5 + $0x118] sm:$0xff] %vm1092_vm2, %v1063_v0  ;;  %v968_v2 = vadd.f32 %v1599_v4, %v781_v1  ;;  %1247 = vmatmul.msk.f32.gmra.mxu1 %vm150_vm1, %v40_v63  ;;  %v472_v3 = vpop.f32.mrf.mxu2  ;;  %v142_v0 = vld [vmem:[%s2173_s1 + $0x1c8] sm:$0xff] }
  0xa8   :  { %v876_v5 = vpop.f32.mrf.mxu3  ;;  %v77_v1 = vld [vmem:[%s2174_s0 + $0x1c8] sm:$0xff] }
  0xa9   :  { %v1032_v6 = vmax.f32 %v968_v2, 0.0  ;;  %v877_v7 = vadd.f32 %v876_v5, %v472_v3 }
  0xab   :  { %1097 = vst.msk [vmem:[%s2176_s5 + $0x20] sm:$0xff] %vm1092_vm2, %v1032_v6  ;;  %v1000_v10 = vadd.f32 %v1599_v4, %v877_v7  ;;  %v379_v11 = vpop.f32.mrf.mxu0  ;;  %v110_v6 = vld [vmem:[%s2173_s1 + $0xc8] sm:$0xff] }
  0xac   :  { %v783_v12 = vpop.f32.mrf.mxu1  ;;  %1215 = vmatmul.msk.f32.gmra.mxu2 %vm150_vm1, %v138_v8  ;;  %v45_v7 = vld [vmem:[%s2174_s0 + $0xc8] sm:$0xff] }
  0xad   :  { %v1064_v15 = vmax.f32 %v1000_v10, 0.0  ;;  %1280 = vmatmul.msk.f32.gmra.mxu3 %vm150_vm1, %v73_v9  ;;  %v784_v16 = vadd.f32 %v783_v12, %v379_v11 }
  0xae   :  { %1183 = vmatmul.msk.f32.gmra.mxu0 %vm150_vm1, %v106_v13 }
  0xaf   :  { %1129 = vst.msk [vmem:[%s2176_s5 + $0x120] sm:$0xff] %vm1092_vm2, %v1064_v15  ;;  %v969_v17 = vadd.f32 %v1599_v4, %v784_v16  ;;  %1248 = vmatmul.msk.f32.gmra.mxu1 %vm150_vm1, %v41_v14  ;;  %v475_v18 = vpop.f32.mrf.mxu2  ;;  %v143_v15 = vld [vmem:[%s2173_s1 + $0x1d0] sm:$0xff] }
  0xb0   :  { %v879_v19 = vpop.f32.mrf.mxu3  ;;  %v78_v16 = vld [vmem:[%s2174_s0 + $0x1d0] sm:$0xff] }
  0xb1   :  { %v1033_v20 = vmax.f32 %v969_v17, 0.0  ;;  %v880_v21 = vadd.f32 %v879_v19, %v475_v18 }
  0xb3   :  { %1098 = vst.msk [vmem:[%s2176_s5 + $0x28] sm:$0xff] %vm1092_vm2, %v1033_v20  ;;  %v1001_v24 = vadd.f32 %v1599_v4, %v880_v21  ;;  %v382_v25 = vpop.f32.mrf.mxu0  ;;  %v111_v20 = vld [vmem:[%s2173_s1 + $0xd0] sm:$0xff] }
  0xb4   :  { %v786_v26 = vpop.f32.mrf.mxu1  ;;  %1216 = vmatmul.msk.f32.gmra.mxu2 %vm150_vm1, %v139_v22  ;;  %v46_v21 = vld [vmem:[%s2174_s0 + $0xd0] sm:$0xff] }
  0xb5   :  { %v1065_v29 = vmax.f32 %v1001_v24, 0.0  ;;  %1281 = vmatmul.msk.f32.gmra.mxu3 %vm150_vm1, %v74_v23  ;;  %v787_v30 = vadd.f32 %v786_v26, %v382_v25 }
  0xb6   :  { %1184 = vmatmul.msk.f32.gmra.mxu0 %vm150_vm1, %v107_v27 }
  0xb7   :  { %1130 = vst.msk [vmem:[%s2176_s5 + $0x128] sm:$0xff] %vm1092_vm2, %v1065_v29  ;;  %v970_v31 = vadd.f32 %v1599_v4, %v787_v30  ;;  %1249 = vmatmul.msk.f32.gmra.mxu1 %vm150_vm1, %v42_v28  ;;  %v478_v32 = vpop.f32.mrf.mxu2  ;;  %v144_v29 = vld [vmem:[%s2173_s1 + $0x1d8] sm:$0xff] }
  0xb8   :  { %v882_v33 = vpop.f32.mrf.mxu3  ;;  %v79_v30 = vld [vmem:[%s2174_s0 + $0x1d8] sm:$0xff] }
  0xb9   :  { %v1034_v34 = vmax.f32 %v970_v31, 0.0  ;;  %v883_v35 = vadd.f32 %v882_v33, %v478_v32 }
  0xbb   :  { %1099 = vst.msk [vmem:[%s2176_s5 + $0x30] sm:$0xff] %vm1092_vm2, %v1034_v34  ;;  %v1002_v38 = vadd.f32 %v1599_v4, %v883_v35  ;;  %v385_v39 = vpop.f32.mrf.mxu0  ;;  %v112_v34 = vld [vmem:[%s2173_s1 + $0xd8] sm:$0xff] }
  0xbc   :  { %v789_v40 = vpop.f32.mrf.mxu1  ;;  %1217 = vmatmul.msk.f32.gmra.mxu2 %vm150_vm1, %v140_v36  ;;  %v47_v35 = vld [vmem:[%s2174_s0 + $0xd8] sm:$0xff] }
  0xbd   :  { %v1066_v43 = vmax.f32 %v1002_v38, 0.0  ;;  %1282 = vmatmul.msk.f32.gmra.mxu3 %vm150_vm1, %v75_v37  ;;  %v790_v44 = vadd.f32 %v789_v40, %v385_v39 }
  0xbe   :  { %1185 = vmatmul.msk.f32.gmra.mxu0 %vm150_vm1, %v108_v41 }
  0xbf   :  { %1131 = vst.msk [vmem:[%s2176_s5 + $0x130] sm:$0xff] %vm1092_vm2, %v1066_v43  ;;  %v971_v45 = vadd.f32 %v1599_v4, %v790_v44  ;;  %1250 = vmatmul.msk.f32.gmra.mxu1 %vm150_vm1, %v43_v42  ;;  %v481_v46 = vpop.f32.mrf.mxu2  ;;  %v145_v43 = vld [vmem:[%s2173_s1 + $0x1e0] sm:$0xff] }
  0xc0   :  { %v885_v47 = vpop.f32.mrf.mxu3  ;;  %v80_v44 = vld [vmem:[%s2174_s0 + $0x1e0] sm:$0xff] }
  0xc1   :  { %v1035_v48 = vmax.f32 %v971_v45, 0.0  ;;  %v886_v49 = vadd.f32 %v885_v47, %v481_v46 }
  0xc3   :  { %1100 = vst.msk [vmem:[%s2176_s5 + $0x38] sm:$0xff] %vm1092_vm2, %v1035_v48  ;;  %v1003_v52 = vadd.f32 %v1599_v4, %v886_v49  ;;  %v388_v53 = vpop.f32.mrf.mxu0  ;;  %v113_v48 = vld [vmem:[%s2173_s1 + $0xe0] sm:$0xff] }
  0xc4   :  { %v792_v54 = vpop.f32.mrf.mxu1  ;;  %1218 = vmatmul.msk.f32.gmra.mxu2 %vm150_vm1, %v141_v50  ;;  %v48_v49 = vld [vmem:[%s2174_s0 + $0xe0] sm:$0xff] }
  0xc5   :  { %v1067_v57 = vmax.f32 %v1003_v52, 0.0  ;;  %1283 = vmatmul.msk.f32.gmra.mxu3 %vm150_vm1, %v76_v51  ;;  %v793_v58 = vadd.f32 %v792_v54, %v388_v53 }
  0xc6   :  { %1186 = vmatmul.msk.f32.gmra.mxu0 %vm150_vm1, %v109_v55 }
  0xc7   :  { %1132 = vst.msk [vmem:[%s2176_s5 + $0x138] sm:$0xff] %vm1092_vm2, %v1067_v57  ;;  %v972_v59 = vadd.f32 %v1599_v4, %v793_v58  ;;  %1251 = vmatmul.msk.f32.gmra.mxu1 %vm150_vm1, %v44_v56  ;;  %v484_v60 = vpop.f32.mrf.mxu2  ;;  %v146_v57 = vld [vmem:[%s2173_s1 + $0x1e8] sm:$0xff] }
  0xc8   :  { %v888_v61 = vpop.f32.mrf.mxu3  ;;  %v81_v58 = vld [vmem:[%s2174_s0 + $0x1e8] sm:$0xff] }
  0xc9   :  { %v1036_v62 = vmax.f32 %v972_v59, 0.0  ;;  %v889_v63 = vadd.f32 %v888_v61, %v484_v60 }
  0xcb   :  { %1101 = vst.msk [vmem:[%s2176_s5 + $0x40] sm:$0xff] %vm1092_vm2, %v1036_v62  ;;  %v1004_v2 = vadd.f32 %v1599_v4, %v889_v63  ;;  %v391_v3 = vpop.f32.mrf.mxu0  ;;  %v114_v62 = vld [vmem:[%s2173_s1 + $0xe8] sm:$0xff] }
  0xcc   :  { %v795_v5 = vpop.f32.mrf.mxu1  ;;  %1219 = vmatmul.msk.f32.gmra.mxu2 %vm150_vm1, %v142_v0  ;;  %v49_v63 = vld [vmem:[%s2174_s0 + $0xe8] sm:$0xff] }
  0xcd   :  { %v1068_v8 = vmax.f32 %v1004_v2, 0.0  ;;  %1284 = vmatmul.msk.f32.gmra.mxu3 %vm150_vm1, %v77_v1  ;;  %v796_v9 = vadd.f32 %v795_v5, %v391_v3 }
  0xce   :  { %1187 = vmatmul.msk.f32.gmra.mxu0 %vm150_vm1, %v110_v6 }
  0xcf   :  { %1133 = vst.msk [vmem:[%s2176_s5 + $0x140] sm:$0xff] %vm1092_vm2, %v1068_v8  ;;  %v973_v10 = vadd.f32 %v1599_v4, %v796_v9  ;;  %1252 = vmatmul.msk.f32.gmra.mxu1 %vm150_vm1, %v45_v7  ;;  %v487_v11 = vpop.f32.mrf.mxu2  ;;  %v147_v8 = vld [vmem:[%s2173_s1 + $0x1f0] sm:$0xff] }
  0xd0   :  { %v891_v12 = vpop.f32.mrf.mxu3  ;;  %v82_v9 = vld [vmem:[%s2174_s0 + $0x1f0] sm:$0xff] }
  0xd1   :  { %v1037_v13 = vmax.f32 %v973_v10, 0.0  ;;  %v892_v14 = vadd.f32 %v891_v12, %v487_v11 }
  0xd3   :  { %1102 = vst.msk [vmem:[%s2176_s5 + $0x48] sm:$0xff] %vm1092_vm2, %v1037_v13  ;;  %v1005_v17 = vadd.f32 %v1599_v4, %v892_v14  ;;  %v394_v18 = vpop.f32.mrf.mxu0  ;;  %v115_v13 = vld [vmem:[%s2173_s1 + $0xf0] sm:$0xff] }
  0xd4   :  { %v798_v19 = vpop.f32.mrf.mxu1  ;;  %1220 = vmatmul.msk.f32.gmra.mxu2 %vm150_vm1, %v143_v15  ;;  %v50_v14 = vld [vmem:[%s2174_s0 + $0xf0] sm:$0xff] }
  0xd5   :  { %v1069_v22 = vmax.f32 %v1005_v17, 0.0  ;;  %1285 = vmatmul.msk.f32.gmra.mxu3 %vm150_vm1, %v78_v16  ;;  %v799_v23 = vadd.f32 %v798_v19, %v394_v18 }
  0xd6   :  { %1188 = vmatmul.msk.f32.gmra.mxu0 %vm150_vm1, %v111_v20 }
  0xd7   :  { %1134 = vst.msk [vmem:[%s2176_s5 + $0x148] sm:$0xff] %vm1092_vm2, %v1069_v22  ;;  %v974_v24 = vadd.f32 %v1599_v4, %v799_v23  ;;  %1253 = vmatmul.msk.f32.gmra.mxu1 %vm150_vm1, %v46_v21  ;;  %v490_v25 = vpop.f32.mrf.mxu2  ;;  %v148_v22 = vld [vmem:[%s2173_s1 + $0x1f8] sm:$0xff] }
  0xd8   :  { %v894_v26 = vpop.f32.mrf.mxu3  ;;  %v83_v23 = vld [vmem:[%s2174_s0 + $0x1f8] sm:$0xff] }
  0xd9   :  { %v1038_v27 = vmax.f32 %v974_v24, 0.0  ;;  %v895_v28 = vadd.f32 %v894_v26, %v490_v25 }
  0xdb   :  { %1103 = vst.msk [vmem:[%s2176_s5 + $0x50] sm:$0xff] %vm1092_vm2, %v1038_v27  ;;  %v1006_v31 = vadd.f32 %v1599_v4, %v895_v28  ;;  %v397_v32 = vpop.f32.mrf.mxu0  ;;  %v116_v27 = vld [vmem:[%s2173_s1 + $0xf8] sm:$0xff] }
  0xdc   :  { %v801_v33 = vpop.f32.mrf.mxu1  ;;  %1221 = vmatmul.msk.f32.gmra.mxu2 %vm150_vm1, %v144_v29  ;;  %v51_v28 = vld [vmem:[%s2174_s0 + $0xf8] sm:$0xff] }
  0xdd   :  { %v1070_v36 = vmax.f32 %v1006_v31, 0.0  ;;  %1286 = vmatmul.msk.f32.gmra.mxu3 %vm150_vm1, %v79_v30  ;;  %v802_v37 = vadd.f32 %v801_v33, %v397_v32 }
  0xde   :  { %1189 = vmatmul.msk.f32.gmra.mxu0 %vm150_vm1, %v112_v34 }
  0xdf   :  { %1135 = vst.msk [vmem:[%s2176_s5 + $0x150] sm:$0xff] %vm1092_vm2, %v1070_v36  ;;  %v975_v38 = vadd.f32 %v1599_v4, %v802_v37  ;;  %1254 = vmatmul.msk.f32.gmra.mxu1 %vm150_vm1, %v47_v35  ;;  %v493_v39 = vpop.f32.mrf.mxu2 }
  0xe0   :  { %v897_v40 = vpop.f32.mrf.mxu3 }
  0xe1   :  { %v1039_v41 = vmax.f32 %v975_v38, 0.0  ;;  %v898_v42 = vadd.f32 %v897_v40, %v493_v39 }
  0xe3   :  { %1104 = vst.msk [vmem:[%s2176_s5 + $0x58] sm:$0xff] %vm1092_vm2, %v1039_v41  ;;  %v1007_v45 = vadd.f32 %v1599_v4, %v898_v42  ;;  %v400_v46 = vpop.f32.mrf.mxu0 }
  0xe4   :  { %v804_v47 = vpop.f32.mrf.mxu1  ;;  %1222 = vmatmul.msk.f32.gmra.mxu2 %vm150_vm1, %v145_v43 }
  0xe5   :  { %v1071_v50 = vmax.f32 %v1007_v45, 0.0  ;;  %1287 = vmatmul.msk.f32.gmra.mxu3 %vm150_vm1, %v80_v44  ;;  %v805_v51 = vadd.f32 %v804_v47, %v400_v46 }
  0xe6   :  { %1190 = vmatmul.msk.f32.gmra.mxu0 %vm150_vm1, %v113_v48 }
  0xe7   :  { %1136 = vst.msk [vmem:[%s2176_s5 + $0x158] sm:$0xff] %vm1092_vm2, %v1071_v50  ;;  %v976_v52 = vadd.f32 %v1599_v4, %v805_v51  ;;  %1255 = vmatmul.msk.f32.gmra.mxu1 %vm150_vm1, %v48_v49  ;;  %v496_v53 = vpop.f32.mrf.mxu2 }
  0xe8   :  { %v900_v54 = vpop.f32.mrf.mxu3 }
  0xe9   :  { %v1040_v55 = vmax.f32 %v976_v52, 0.0  ;;  %v901_v56 = vadd.f32 %v900_v54, %v496_v53 }
  0xeb   :  { %1105 = vst.msk [vmem:[%s2176_s5 + $0x60] sm:$0xff] %vm1092_vm2, %v1040_v55  ;;  %v1008_v59 = vadd.f32 %v1599_v4, %v901_v56  ;;  %v403_v60 = vpop.f32.mrf.mxu0 }
  0xec   :  { %v807_v61 = vpop.f32.mrf.mxu1  ;;  %1223 = vmatmul.msk.f32.gmra.mxu2 %vm150_vm1, %v146_v57 }
  0xed   :  { %v1072_v0 = vmax.f32 %v1008_v59, 0.0  ;;  %1288 = vmatmul.msk.f32.gmra.mxu3 %vm150_vm1, %v81_v58  ;;  %v808_v1 = vadd.f32 %v807_v61, %v403_v60 }
  0xee   :  { %1191 = vmatmul.msk.f32.gmra.mxu0 %vm150_vm1, %v114_v62 }
  0xef   :  { %1137 = vst.msk [vmem:[%s2176_s5 + $0x160] sm:$0xff] %vm1092_vm2, %v1072_v0  ;;  %v977_v2 = vadd.f32 %v1599_v4, %v808_v1  ;;  %1256 = vmatmul.msk.f32.gmra.mxu1 %vm150_vm1, %v49_v63  ;;  %v499_v3 = vpop.f32.mrf.mxu2 }
  0xf0   :  { %v903_v5 = vpop.f32.mrf.mxu3 }
  0xf1   :  { %v1041_v6 = vmax.f32 %v977_v2, 0.0  ;;  %v904_v7 = vadd.f32 %v903_v5, %v499_v3 }
  0xf3   :  { %1106 = vst.msk [vmem:[%s2176_s5 + $0x68] sm:$0xff] %vm1092_vm2, %v1041_v6  ;;  %v1009_v10 = vadd.f32 %v1599_v4, %v904_v7  ;;  %v406_v11 = vpop.f32.mrf.mxu0 }
  0xf4   :  { %v810_v12 = vpop.f32.mrf.mxu1  ;;  %1224 = vmatmul.msk.f32.gmra.mxu2 %vm150_vm1, %v147_v8 }
  0xf5   :  { %v1073_v15 = vmax.f32 %v1009_v10, 0.0  ;;  %1289 = vmatmul.msk.f32.gmra.mxu3 %vm150_vm1, %v82_v9  ;;  %v811_v16 = vadd.f32 %v810_v12, %v406_v11 }
  0xf6   :  { %1192 = vmatmul.msk.f32.gmra.mxu0 %vm150_vm1, %v115_v13 }
  0xf7   :  { %1138 = vst.msk [vmem:[%s2176_s5 + $0x168] sm:$0xff] %vm1092_vm2, %v1073_v15  ;;  %v978_v17 = vadd.f32 %v1599_v4, %v811_v16  ;;  %1257 = vmatmul.msk.f32.gmra.mxu1 %vm150_vm1, %v50_v14  ;;  %v502_v18 = vpop.f32.mrf.mxu2 }
  0xf8   :  { %v906_v19 = vpop.f32.mrf.mxu3 }
  0xf9   :  { %v1042_v20 = vmax.f32 %v978_v17, 0.0  ;;  %v907_v21 = vadd.f32 %v906_v19, %v502_v18 }
  0xfb   :  { %1107 = vst.msk [vmem:[%s2176_s5 + $0x70] sm:$0xff] %vm1092_vm2, %v1042_v20  ;;  %v1010_v24 = vadd.f32 %v1599_v4, %v907_v21  ;;  %v409_v25 = vpop.f32.mrf.mxu0 }
  0xfc   :  { %v813_v26 = vpop.f32.mrf.mxu1  ;;  %1225 = vmatmul.msk.f32.gmra.mxu2 %vm150_vm1, %v148_v22 }
  0xfd   :  { %v1074_v29 = vmax.f32 %v1010_v24, 0.0  ;;  %1290 = vmatmul.msk.f32.gmra.mxu3 %vm150_vm1, %v83_v23  ;;  %v814_v30 = vadd.f32 %v813_v26, %v409_v25 }
  0xfe   :  { %1193 = vmatmul.msk.f32.gmra.mxu0 %vm150_vm1, %v116_v27 }
  0xff   :  { %1139 = vst.msk [vmem:[%s2176_s5 + $0x170] sm:$0xff] %vm1092_vm2, %v1074_v29  ;;  %v979_v31 = vadd.f32 %v1599_v4, %v814_v30  ;;  %1258 = vmatmul.msk.f32.gmra.mxu1 %vm150_vm1, %v51_v28  ;;  %v505_v32 = vpop.f32.mrf.mxu2 }
 0x100   :  { %v909_v33 = vpop.f32.mrf.mxu3 }
 0x101   :  { %v1043_v34 = vmax.f32 %v979_v31, 0.0  ;;  %v910_v35 = vadd.f32 %v909_v33, %v505_v32 }
 0x103   :  { %1108 = vst.msk [vmem:[%s2176_s5 + $0x78] sm:$0xff] %vm1092_vm2, %v1043_v34  ;;  %v1011_v36 = vadd.f32 %v1599_v4, %v910_v35  ;;  %v412_v37 = vpop.f32.mrf.mxu0 }
 0x104   :  { %v816_v38 = vpop.f32.mrf.mxu1 }
 0x105   :  { %v1075_v39 = vmax.f32 %v1011_v36, 0.0  ;;  %v817_v40 = vadd.f32 %v816_v38, %v412_v37 }
 0x107   :  { %1140 = vst.msk [vmem:[%s2176_s5 + $0x178] sm:$0xff] %vm1092_vm2, %v1075_v39  ;;  %v980_v41 = vadd.f32 %v1599_v4, %v817_v40  ;;  %v508_v42 = vpop.f32.mrf.mxu2 }
 0x108   :  { %v912_v43 = vpop.f32.mrf.mxu3 }
 0x109   :  { %v1044_v44 = vmax.f32 %v980_v41, 0.0  ;;  %v913_v45 = vadd.f32 %v912_v43, %v508_v42 }
 0x10b   :  { %1109 = vst.msk [vmem:[%s2176_s5 + $0x80] sm:$0xff] %vm1092_vm2, %v1044_v44  ;;  %v1012_v46 = vadd.f32 %v1599_v4, %v913_v45  ;;  %v415_v47 = vpop.f32.mrf.mxu0 }
 0x10c   :  { %v819_v48 = vpop.f32.mrf.mxu1 }
 0x10d   :  { %v1076_v49 = vmax.f32 %v1012_v46, 0.0  ;;  %v820_v50 = vadd.f32 %v819_v48, %v415_v47 }
 0x10f   :  { %1141 = vst.msk [vmem:[%s2176_s5 + $0x180] sm:$0xff] %vm1092_vm2, %v1076_v49  ;;  %v981_v51 = vadd.f32 %v1599_v4, %v820_v50  ;;  %v511_v52 = vpop.f32.mrf.mxu2 }
 0x110   :  { %v915_v53 = vpop.f32.mrf.mxu3 }
 0x111   :  { %v1045_v54 = vmax.f32 %v981_v51, 0.0  ;;  %v916_v55 = vadd.f32 %v915_v53, %v511_v52 }
 0x113   :  { %1110 = vst.msk [vmem:[%s2176_s5 + $0x88] sm:$0xff] %vm1092_vm2, %v1045_v54  ;;  %v1013_v56 = vadd.f32 %v1599_v4, %v916_v55  ;;  %v418_v57 = vpop.f32.mrf.mxu0 }
 0x114   :  { %v822_v58 = vpop.f32.mrf.mxu1 }
 0x115   :  { %v1077_v59 = vmax.f32 %v1013_v56, 0.0  ;;  %v823_v60 = vadd.f32 %v822_v58, %v418_v57 }
 0x117   :  { %1142 = vst.msk [vmem:[%s2176_s5 + $0x188] sm:$0xff] %vm1092_vm2, %v1077_v59  ;;  %v982_v61 = vadd.f32 %v1599_v4, %v823_v60  ;;  %v514_v62 = vpop.f32.mrf.mxu2 }
 0x118   :  { %v918_v63 = vpop.f32.mrf.mxu3 }
 0x119   :  { %v1046_v0 = vmax.f32 %v982_v61, 0.0  ;;  %v919_v1 = vadd.f32 %v918_v63, %v514_v62 }
 0x11b   :  { %1111 = vst.msk [vmem:[%s2176_s5 + $0x90] sm:$0xff] %vm1092_vm2, %v1046_v0  ;;  %v1014_v2 = vadd.f32 %v1599_v4, %v919_v1  ;;  %v421_v3 = vpop.f32.mrf.mxu0 }
 0x11c   :  { %v825_v5 = vpop.f32.mrf.mxu1 }
 0x11d   :  { %v1078_v6 = vmax.f32 %v1014_v2, 0.0  ;;  %v826_v7 = vadd.f32 %v825_v5, %v421_v3 }
 0x11f   :  { %1143 = vst.msk [vmem:[%s2176_s5 + $0x190] sm:$0xff] %vm1092_vm2, %v1078_v6  ;;  %v983_v8 = vadd.f32 %v1599_v4, %v826_v7  ;;  %v517_v9 = vpop.f32.mrf.mxu2 }
 0x120   :  { %v921_v10 = vpop.f32.mrf.mxu3 }
 0x121   :  { %v1047_v11 = vmax.f32 %v983_v8, 0.0  ;;  %v922_v12 = vadd.f32 %v921_v10, %v517_v9 }
 0x123   :  { %1112 = vst.msk [vmem:[%s2176_s5 + $0x98] sm:$0xff] %vm1092_vm2, %v1047_v11  ;;  %v1015_v13 = vadd.f32 %v1599_v4, %v922_v12  ;;  %v424_v14 = vpop.f32.mrf.mxu0 }
 0x124   :  { %v828_v15 = vpop.f32.mrf.mxu1 }
 0x125   :  { %v1079_v16 = vmax.f32 %v1015_v13, 0.0  ;;  %v829_v17 = vadd.f32 %v828_v15, %v424_v14 }
 0x127   :  { %1144 = vst.msk [vmem:[%s2176_s5 + $0x198] sm:$0xff] %vm1092_vm2, %v1079_v16  ;;  %v984_v18 = vadd.f32 %v1599_v4, %v829_v17  ;;  %v520_v19 = vpop.f32.mrf.mxu2 }
 0x128   :  { %v924_v20 = vpop.f32.mrf.mxu3 }
 0x129   :  { %v1048_v21 = vmax.f32 %v984_v18, 0.0  ;;  %v925_v22 = vadd.f32 %v924_v20, %v520_v19 }
 0x12b   :  { %1113 = vst.msk [vmem:[%s2176_s5 + $0xa0] sm:$0xff] %vm1092_vm2, %v1048_v21  ;;  %v1016_v23 = vadd.f32 %v1599_v4, %v925_v22  ;;  %v427_v24 = vpop.f32.mrf.mxu0 }
 0x12c   :  { %v831_v25 = vpop.f32.mrf.mxu1 }
 0x12d   :  { %v1080_v26 = vmax.f32 %v1016_v23, 0.0  ;;  %v832_v27 = vadd.f32 %v831_v25, %v427_v24 }
 0x12f   :  { %1145 = vst.msk [vmem:[%s2176_s5 + $0x1a0] sm:$0xff] %vm1092_vm2, %v1080_v26  ;;  %v985_v28 = vadd.f32 %v1599_v4, %v832_v27  ;;  %v523_v29 = vpop.f32.mrf.mxu2 }
 0x130   :  { %v927_v30 = vpop.f32.mrf.mxu3 }
 0x131   :  { %v1049_v31 = vmax.f32 %v985_v28, 0.0  ;;  %v928_v32 = vadd.f32 %v927_v30, %v523_v29 }
 0x133   :  { %1114 = vst.msk [vmem:[%s2176_s5 + $0xa8] sm:$0xff] %vm1092_vm2, %v1049_v31  ;;  %v1017_v33 = vadd.f32 %v1599_v4, %v928_v32  ;;  %v430_v34 = vpop.f32.mrf.mxu0 }
 0x134   :  { %v834_v35 = vpop.f32.mrf.mxu1 }
 0x135   :  { %v1081_v36 = vmax.f32 %v1017_v33, 0.0  ;;  %v835_v37 = vadd.f32 %v834_v35, %v430_v34 }
 0x137   :  { %1146 = vst.msk [vmem:[%s2176_s5 + $0x1a8] sm:$0xff] %vm1092_vm2, %v1081_v36  ;;  %v986_v38 = vadd.f32 %v1599_v4, %v835_v37  ;;  %v526_v39 = vpop.f32.mrf.mxu2 }
 0x138   :  { %v930_v40 = vpop.f32.mrf.mxu3 }
 0x139   :  { %v1050_v41 = vmax.f32 %v986_v38, 0.0  ;;  %v931_v42 = vadd.f32 %v930_v40, %v526_v39 }
 0x13b   :  { %1115 = vst.msk [vmem:[%s2176_s5 + $0xb0] sm:$0xff] %vm1092_vm2, %v1050_v41  ;;  %v1018_v43 = vadd.f32 %v1599_v4, %v931_v42  ;;  %v433_v44 = vpop.f32.mrf.mxu0 }
 0x13c   :  { %v837_v45 = vpop.f32.mrf.mxu1 }
 0x13d   :  { %v1082_v46 = vmax.f32 %v1018_v43, 0.0  ;;  %v838_v47 = vadd.f32 %v837_v45, %v433_v44 }
 0x13f   :  { %1147 = vst.msk [vmem:[%s2176_s5 + $0x1b0] sm:$0xff] %vm1092_vm2, %v1082_v46  ;;  %v987_v48 = vadd.f32 %v1599_v4, %v838_v47  ;;  %v529_v49 = vpop.f32.mrf.mxu2 }
 0x140   :  { %v933_v50 = vpop.f32.mrf.mxu3 }
 0x141   :  { %v1051_v51 = vmax.f32 %v987_v48, 0.0  ;;  %v934_v52 = vadd.f32 %v933_v50, %v529_v49 }
 0x143   :  { %1116 = vst.msk [vmem:[%s2176_s5 + $0xb8] sm:$0xff] %vm1092_vm2, %v1051_v51  ;;  %v1019_v53 = vadd.f32 %v1599_v4, %v934_v52  ;;  %v436_v54 = vpop.f32.mrf.mxu0 }
 0x144   :  { %v840_v55 = vpop.f32.mrf.mxu1 }
 0x145   :  { %v1083_v56 = vmax.f32 %v1019_v53, 0.0  ;;  %v841_v57 = vadd.f32 %v840_v55, %v436_v54 }
 0x147   :  { %1148 = vst.msk [vmem:[%s2176_s5 + $0x1b8] sm:$0xff] %vm1092_vm2, %v1083_v56  ;;  %v988_v58 = vadd.f32 %v1599_v4, %v841_v57  ;;  %v532_v59 = vpop.f32.mrf.mxu2 }
 0x148   :  { %v936_v60 = vpop.f32.mrf.mxu3 }
 0x149   :  { %v1052_v61 = vmax.f32 %v988_v58, 0.0  ;;  %v937_v62 = vadd.f32 %v936_v60, %v532_v59 }
 0x14b   :  { %1117 = vst.msk [vmem:[%s2176_s5 + $0xc0] sm:$0xff] %vm1092_vm2, %v1052_v61  ;;  %v1020_v63 = vadd.f32 %v1599_v4, %v937_v62  ;;  %v439_v0 = vpop.f32.mrf.mxu0 }
 0x14c   :  { %v843_v1 = vpop.f32.mrf.mxu1 }
 0x14d   :  { %v1084_v2 = vmax.f32 %v1020_v63, 0.0  ;;  %v844_v3 = vadd.f32 %v843_v1, %v439_v0 }
 0x14f   :  { %1149 = vst.msk [vmem:[%s2176_s5 + $0x1c0] sm:$0xff] %vm1092_vm2, %v1084_v2  ;;  %v989_v5 = vadd.f32 %v1599_v4, %v844_v3  ;;  %v535_v6 = vpop.f32.mrf.mxu2 }
 0x150   :  { %v939_v7 = vpop.f32.mrf.mxu3 }
 0x151   :  { %v1053_v8 = vmax.f32 %v989_v5, 0.0  ;;  %v940_v9 = vadd.f32 %v939_v7, %v535_v6 }
 0x153   :  { %1118 = vst.msk [vmem:[%s2176_s5 + $0xc8] sm:$0xff] %vm1092_vm2, %v1053_v8  ;;  %v1021_v10 = vadd.f32 %v1599_v4, %v940_v9  ;;  %v442_v11 = vpop.f32.mrf.mxu0 }
 0x154   :  { %v846_v12 = vpop.f32.mrf.mxu1 }
 0x155   :  { %v1085_v13 = vmax.f32 %v1021_v10, 0.0  ;;  %v847_v14 = vadd.f32 %v846_v12, %v442_v11 }
 0x157   :  { %1150 = vst.msk [vmem:[%s2176_s5 + $0x1c8] sm:$0xff] %vm1092_vm2, %v1085_v13  ;;  %v990_v15 = vadd.f32 %v1599_v4, %v847_v14  ;;  %v538_v16 = vpop.f32.mrf.mxu2 }
 0x158   :  { %v942_v17 = vpop.f32.mrf.mxu3 }
 0x159   :  { %v1054_v18 = vmax.f32 %v990_v15, 0.0  ;;  %v943_v19 = vadd.f32 %v942_v17, %v538_v16 }
 0x15b   :  { %1119 = vst.msk [vmem:[%s2176_s5 + $0xd0] sm:$0xff] %vm1092_vm2, %v1054_v18  ;;  %v1022_v20 = vadd.f32 %v1599_v4, %v943_v19  ;;  %v445_v21 = vpop.f32.mrf.mxu0 }
 0x15c   :  { %v849_v22 = vpop.f32.mrf.mxu1 }
 0x15d   :  { %v1086_v23 = vmax.f32 %v1022_v20, 0.0  ;;  %v850_v24 = vadd.f32 %v849_v22, %v445_v21 }
 0x15f   :  { %1151 = vst.msk [vmem:[%s2176_s5 + $0x1d0] sm:$0xff] %vm1092_vm2, %v1086_v23  ;;  %v991_v25 = vadd.f32 %v1599_v4, %v850_v24  ;;  %v541_v26 = vpop.f32.mrf.mxu2 }
 0x160   :  { %v945_v27 = vpop.f32.mrf.mxu3 }
 0x161   :  { %v1055_v28 = vmax.f32 %v991_v25, 0.0  ;;  %v946_v29 = vadd.f32 %v945_v27, %v541_v26 }
 0x163   :  { %1120 = vst.msk [vmem:[%s2176_s5 + $0xd8] sm:$0xff] %vm1092_vm2, %v1055_v28  ;;  %v1023_v30 = vadd.f32 %v1599_v4, %v946_v29  ;;  %v448_v31 = vpop.f32.mrf.mxu0 }
 0x164   :  { %v852_v32 = vpop.f32.mrf.mxu1 }
 0x165   :  { %v1087_v33 = vmax.f32 %v1023_v30, 0.0  ;;  %v853_v34 = vadd.f32 %v852_v32, %v448_v31 }
 0x167   :  { %1152 = vst.msk [vmem:[%s2176_s5 + $0x1d8] sm:$0xff] %vm1092_vm2, %v1087_v33  ;;  %v992_v35 = vadd.f32 %v1599_v4, %v853_v34  ;;  %v544_v36 = vpop.f32.mrf.mxu2 }
 0x168   :  { %v948_v37 = vpop.f32.mrf.mxu3 }
 0x169   :  { %v1056_v38 = vmax.f32 %v992_v35, 0.0  ;;  %v949_v39 = vadd.f32 %v948_v37, %v544_v36 }
 0x16b   :  { %1121 = vst.msk [vmem:[%s2176_s5 + $0xe0] sm:$0xff] %vm1092_vm2, %v1056_v38  ;;  %v1024_v40 = vadd.f32 %v1599_v4, %v949_v39  ;;  %v451_v41 = vpop.f32.mrf.mxu0 }
 0x16c   :  { %v855_v42 = vpop.f32.mrf.mxu1 }
 0x16d   :  { %v1088_v43 = vmax.f32 %v1024_v40, 0.0  ;;  %v856_v44 = vadd.f32 %v855_v42, %v451_v41 }
 0x16f   :  { %1153 = vst.msk [vmem:[%s2176_s5 + $0x1e0] sm:$0xff] %vm1092_vm2, %v1088_v43  ;;  %v993_v45 = vadd.f32 %v1599_v4, %v856_v44  ;;  %v547_v46 = vpop.f32.mrf.mxu2 }
 0x170   :  { %v951_v47 = vpop.f32.mrf.mxu3 }
 0x171   :  { %v1057_v48 = vmax.f32 %v993_v45, 0.0  ;;  %v952_v49 = vadd.f32 %v951_v47, %v547_v46 }
 0x173   :  { %1122 = vst.msk [vmem:[%s2176_s5 + $0xe8] sm:$0xff] %vm1092_vm2, %v1057_v48  ;;  %v1025_v50 = vadd.f32 %v1599_v4, %v952_v49  ;;  %v454_v51 = vpop.f32.mrf.mxu0 }
 0x174   :  { %v858_v52 = vpop.f32.mrf.mxu1 }
 0x175   :  { %v1089_v53 = vmax.f32 %v1025_v50, 0.0  ;;  %v859_v54 = vadd.f32 %v858_v52, %v454_v51 }
 0x177   :  { %1154 = vst.msk [vmem:[%s2176_s5 + $0x1e8] sm:$0xff] %vm1092_vm2, %v1089_v53  ;;  %v994_v55 = vadd.f32 %v1599_v4, %v859_v54  ;;  %v550_v56 = vpop.f32.mrf.mxu2 }
 0x178   :  { %v954_v57 = vpop.f32.mrf.mxu3 }
 0x179   :  { %v1058_v58 = vmax.f32 %v994_v55, 0.0  ;;  %v955_v59 = vadd.f32 %v954_v57, %v550_v56 }
 0x17b   :  { %1123 = vst.msk [vmem:[%s2176_s5 + $0xf0] sm:$0xff] %vm1092_vm2, %v1058_v58  ;;  %v1026_v60 = vadd.f32 %v1599_v4, %v955_v59  ;;  %v457_v61 = vpop.f32.mrf.mxu0 }
 0x17c   :  { %v861_v62 = vpop.f32.mrf.mxu1 }
 0x17d   :  { %v1090_v63 = vmax.f32 %v1026_v60, 0.0  ;;  %v862_v0 = vadd.f32 %v861_v62, %v457_v61 }
 0x17f   :  { %1155 = vst.msk [vmem:[%s2176_s5 + $0x1f0] sm:$0xff] %vm1092_vm2, %v1090_v63  ;;  %v995_v1 = vadd.f32 %v1599_v4, %v862_v0  ;;  %v553_v2 = vpop.f32.mrf.mxu2 }
 0x180   :  { %v957_v3 = vpop.f32.mrf.mxu3 }
 0x181   :  { %v1059_v5 = vmax.f32 %v995_v1, 0.0  ;;  %v958_v6 = vadd.f32 %v957_v3, %v553_v2 }
 0x183   :  { %1124 = vst.msk [vmem:[%s2176_s5 + $0xf8] sm:$0xff] %vm1092_vm2, %v1059_v5  ;;  %v1027_v7 = vadd.f32 %v1599_v4, %v958_v6 }
 0x185   :  { %v1091_v8 = vmax.f32 %v1027_v7, 0.0 }
 0x187   :  { %1156 = vst.msk [vmem:[%s2176_s5 + $0x1f8] sm:$0xff] %vm1092_vm2, %v1091_v8 }

// kernel: concat_up_conv.4
= control target key start
LH: loop header
LB: loop body
LE: loop exit
PB: predicated region body
PF: predicated region fallthrough
CT: control target
= control target key end

     0   :  { %s2464_s12 = smov 0   ;;  %s3825_s0 = inlined_call_operand.vmem [shape: f32[2,18,18,8], index: 0, kind: input, shape index: {}]   ;;  %s3826_s1 = inlined_call_operand.vmem [shape: f32[9,8,4], index: 1, kind: input, shape index: {}]   ;;  %s3827_s2 = inlined_call_operand.vmem [shape: f32[1,4], index: 2, kind: input, shape index: {}]   ;;  %s3828_s3 = inlined_call_operand.vmem [shape: f32[2,16,16,4], index: 3, kind: output, shape index: {}]  }
   0x1 LB: > { %s2092_s13 = sadd.s32 4294967295, %s2442_s12   ;;  %p2096_p0 = scmp.ge.s32.totalorder %s2442_s12, 1  ;;  %s2442_s12 = sphi %s2464_s12, %s13_s12  }
   0x2   : > { %p137_p1 = scmp.lt.s32.totalorder %s2442_s12, 3 }
   0x4   : > { %p138_p2 = pnand %p2096_p0, %p137_p1 }
   0x6   : > { %141 = sbr.rel (%p138_p2) target bundleno = 733 (0x2dd), region = 32 }
   0xb   : > { %v2100_v0 = vld [vmem:[%s3826_s1 + $0x8] sm:$0xff]  ;;  %p161_p3 = scmp.lt.s32.totalorder %s2092_s13, 1  ;;  %v2165_v1 = vld [vmem:[%s3826_s1 + $0x10] sm:$0xff]  ;;  %v2198_v2 = vld [vmem:[%s3826_s1 + $0x18] sm:$0xff]  ;;  %vm274_vm0 = vcmask 1046528   ;;  %vm357_vm1 = vcmask 64512  }
   0xc   : > { %2399 = vmatpush.msra.mxu1 %v2100_v0  ;;  %2400 = vmatpush.msra.mxu2 %v2100_v0  ;;  %v225_v3 = vld [vmem:[%s3826_s1] sm:$0xff]  ;;  %vm712_vm2 = vcmask 1045504   ;;  %vm2004_vm3 = vcmask 31744  }
   0xd   : > { %s4043_s13 = smov (!%p161_p3, %s2092_s13), 1  ;;  %2401 = vmatpush.msra.mxu3 %v2100_v0  ;;  %v2231_v4 = vld [vmem:[%s3826_s1 + $0x20] sm:$0xff]  ;;  %437 = vmatpush.msra.mxu0 %v2100_v0 }
   0xe   : > { %874 = vmatpush.msrb.mxu2 %v2165_v1  ;;  %614 = vmatpush.msrb.mxu1 %v225_v3  ;;  %s2402_s24 = smul.u32 432, %s4043_s13  ;;  %s2398_s11 = sshll.u32 %s4043_s13, 8 }
   0xf   : > { %1027 = vmatpush.msrb.mxu3 %v2198_v2  ;;  %1184 = vmatpush.msrb.mxu0 %v2231_v4  ;;  %s3581_s16 = scalar_lea.vmem %s3828_s3, %s2398_s11 }
  0x10   : > { %s2493_s27 = scalar_lea.vmem %s3825_s0, %s2402_s24 }
  0x11   : > { %v2496_v5 = vld [vmem:[%s2493_s27 + $0x60] sm:$0xff]  ;;  %v2499_v6 = vld [vmem:[%s2493_s27 + $0x68] sm:$0xff]  ;;  %v2520_v17 = vld [vmem:[%s2493_s27 + $0x70] sm:$0x3] }
  0x12   : > { %v2502_v7 = vld [vmem:[%s2493_s27 + $0xc0] sm:$0xff]  ;;  %v295_v8 = vrot.slane %v2496_v5, 1  ;;  %v296_v9 = vrot.slane %v2499_v6, 1  ;;  %v2507_v10 = vld [vmem:[%s2493_s27 + $0xc8] sm:$0xff]  ;;  %v2529_v20 = vld [vmem:[%s2493_s27 + $0xd0] sm:$0x3] }
  0x13   : > { %v315_v11 = vrot.slane %v2502_v7, 1  ;;  %v2511_v12 = vld [vmem:[%s2493_s27 + $0x120] sm:$0xff]  ;;  %v2514_v13 = vld [vmem:[%s2493_s27 + $0x128] sm:$0xff]  ;;  %v316_v14 = vrot.slane %v2507_v10, 1  ;;  %v2545_v26 = vld [vmem:[%s2493_s27 + $0x130] sm:$0x3] }
  0x14   : > { %3904 = vst [vmem:[#allocation2_spill] sm:$0xff] %v2511_v12  ;;  %v335_v15 = vrot.slane %v2511_v12, 1  ;;  %v336_v16 = vrot.slane %v2514_v13, 1  ;;  %v2523_v18 = vld [vmem:[%s2493_s27] sm:$0xff]  ;;  %v2526_v19 = vsel %vm274_vm0, %v295_v8, %v296_v9  ;;  %v2532_v21 = vld [vmem:[%s2493_s27 + $0x8] sm:$0xff]  ;;  %v298_v27 = vrot.slane %v2520_v17, 1 }
  0x15   : > { %3905 = vst [vmem:[#allocation3_spill] sm:$0xff] %v2514_v13  ;;  %v275_v22 = vrot.slane %v2523_v18, 1  ;;  %2109 = vmatmul.msk.f32.vlgmr.msra.gmra.mxu1 %vm357_vm1, %v2526_v19  ;;  %v2538_v23 = vsel %vm274_vm0, %v315_v11, %v316_v14  ;;  %v276_v25 = vrot.slane %v2532_v21, 1  ;;  %v2553_v28 = vld [vmem:[%s2493_s27 + $0x10] sm:$0x3]  ;;  %v318_v29 = vrot.slane %v2529_v20, 1 }
  0x16   : > { %3906 = vst [vmem:[#allocation4_spill] sm:$0xff] %v2538_v23  ;;  %v2541_v24 = vsel %vm274_vm0, %v335_v15, %v336_v16  ;;  %2117 = vmatmul.msk.f32.vlgmr.msra.gmra.mxu2 %vm357_vm1, %v2538_v23  ;;  %v338_v31 = vrot.slane %v2545_v26, 1  ;;  %v278_v32 = vrot.slane %v2553_v28, 1  ;;  %v2561_v33 = vsel %vm274_vm0, %v296_v9, %v298_v27  ;;  %v2570_v36 = vld [vmem:[%s2493_s27 + $0x78] sm:$0xff]  ;;  %v2573_v37 = vld [vmem:[%s2493_s27 + $0x80] sm:$0xff]  ;;  %v2655_v4 = vld [vmem:[%s2493_s27 + $0x90] sm:$0xff] }
  0x17   : > { %3907 = vst [vmem:[#allocation5_spill] sm:$0xff] %v2541_v24  ;;  %2125 = vmatmul.msk.f32.vlgmr.msra.gmra.mxu3 %vm357_vm1, %v2541_v24  ;;  %v277_v30 = vsel %vm274_vm0, %v275_v22, %v276_v25  ;;  %v2564_v34 = vsel %vm274_vm0, %v316_v14, %v318_v29  ;;  %v2576_v38 = vld [vmem:[%s2493_s27 + $0xd8] sm:$0xff]  ;;  %v2579_v39 = vld [vmem:[%s2493_s27 + $0xe0] sm:$0xff]  ;;  %v300_v43 = vrot.slane %v2570_v36, 1  ;;  %v301_v44 = vrot.slane %v2573_v37, 1  ;;  %v2661_v9 = vld [vmem:[%s2493_s27 + $0xf0] sm:$0xff] }
  0x18   : > { %3908 = vst [vmem:[#allocation6_spill] sm:$0xff] %v2545_v26  ;;  %2101 = vmatmul.msk.f32.vlgmr.msra.gmra.mxu0 %vm357_vm1, %v277_v30  ;;  %v2567_v35 = vsel %vm274_vm0, %v336_v16, %v338_v31  ;;  %v2582_v40 = vld [vmem:[%s2493_s27 + $0x138] sm:$0xff]  ;;  %v2585_v41 = vld [vmem:[%s2493_s27 + $0x140] sm:$0xff]  ;;  %v279_v42 = vsel %vm274_vm0, %v276_v25, %v278_v32  ;;  %v320_v47 = vrot.slane %v2576_v38, 1  ;;  %v321_v48 = vrot.slane %v2579_v39, 1  ;;  %v2667_v14 = vld [vmem:[%s2493_s27 + $0x150] sm:$0xff] }
  0x19   : > { %3909 = vst [vmem:[#allocation7_spill] sm:$0xff] %v2561_v33  ;;  %v2597_v45 = vld [vmem:[%s2493_s27 + $0x18] sm:$0xff]  ;;  %v2600_v46 = vld [vmem:[%s2493_s27 + $0x20] sm:$0xff]  ;;  %v340_v49 = vrot.slane %v2582_v40, 1  ;;  %v341_v50 = vrot.slane %v2585_v41, 1  ;;  %v2610_v53 = vsel %vm274_vm0, %v300_v43, %v301_v44  ;;  %v305_v22 = vrot.slane %v2655_v4, 1 }
  0x1a   : > { %3910 = vst [vmem:[#allocation8_spill] sm:$0xff] %v2564_v34  ;;  %v280_v51 = vrot.slane %v2597_v45, 1  ;;  %v281_v52 = vrot.slane %v2600_v46, 1  ;;  %v2613_v54 = vsel %vm274_vm0, %v320_v47, %v321_v48  ;;  %v2619_v56 = vld [vmem:[%s2493_s27 + $0x88] sm:$0x3]  ;;  %v2658_v8 = vld [vmem:[%s2493_s27 + $0x98] sm:$0xff] }
  0x1b   : > { %3911 = vst [vmem:[#allocation9_spill] sm:$0xff] %v2567_v35  ;;  %v2616_v55 = vsel %vm274_vm0, %v340_v49, %v341_v50  ;;  %v2622_v57 = vld [vmem:[%s2493_s27 + $0xe8] sm:$0x3]  ;;  %v303_v60 = vrot.slane %v2619_v56, 1  ;;  %v2664_v11 = vld [vmem:[%s2493_s27 + $0xf8] sm:$0xff]  ;;  %v306_v25 = vrot.slane %v2658_v8, 1 }
  0x1c   : > { %3912 = vst [vmem:[#allocation10_spill] sm:$0xff] %v2582_v40  ;;  %v2625_v58 = vld [vmem:[%s2493_s27 + $0x148] sm:$0x3]  ;;  %v2630_v59 = vsel %vm274_vm0, %v280_v51, %v281_v52  ;;  %v323_v62 = vrot.slane %v2622_v57, 1  ;;  %v2670_v15 = vld [vmem:[%s2493_s27 + $0x158] sm:$0xff]  ;;  %v2684_v27 = vld [vmem:[%s2493_s27 + $0x30] sm:$0xff] }
  0x1d   : > { %3913 = vst [vmem:[#allocation11_spill] sm:$0xff] %v2585_v41  ;;  %2110 = vmatmul.msk.f32.gmra.mxu1 %vm357_vm1, %v2561_v33  ;;  %v2638_v61 = vld [vmem:[%s2493_s27 + $0x28] sm:$0x3]  ;;  %v343_v63 = vrot.slane %v2625_v58, 1  ;;  %v2646_v1 = vsel %vm274_vm0, %v301_v44, %v303_v60  ;;  %v2687_v29 = vld [vmem:[%s2493_s27 + $0x38] sm:$0xff]  ;;  %v325_v30 = vrot.slane %v2661_v9, 1  ;;  %v2698_v47 = vsel %vm274_vm0, %v305_v22, %v306_v25 }
  0x1e   : > { %2118 = vmatmul.msk.f32.gmra.mxu2 %vm357_vm1, %v2564_v34  ;;  %3914 = vst [vmem:[#allocation12_spill] sm:$0xff] %v2610_v53  ;;  %v283_v0 = vrot.slane %v2638_v61, 1  ;;  %v2649_v2 = vsel %vm274_vm0, %v321_v48, %v323_v62  ;;  %v326_v31 = vrot.slane %v2664_v11, 1  ;;  %v345_v32 = vrot.slane %v2667_v14, 1  ;;  %v2710_v51 = vld [vmem:[%s2493_s27 + $0x100] sm:$0x3] }
  0x1f   : > { %2126 = vmatmul.msk.f32.gmra.mxu3 %vm357_vm1, %v2567_v35  ;;  %3915 = vst [vmem:[#allocation13_spill] sm:$0xff] %v2616_v55  ;;  %v2652_v3 = vsel %vm274_vm0, %v341_v50, %v343_v63  ;;  %v285_v43 = vrot.slane %v2684_v27, 1  ;;  %v286_v44 = vrot.slane %v2687_v29, 1  ;;  %v2707_v50 = vld [vmem:[%s2493_s27 + $0xa0] sm:$0x3]  ;;  %v2330_v22 = vld [vmem:[%s3826_s1 + $0x38] sm:$0xff] }
  0x20   : > { %2102 = vmatmul.msk.f32.gmra.mxu0 %vm357_vm1, %v279_v42  ;;  %3916 = vst [vmem:[#allocation14_spill] sm:$0xff] %v2625_v58  ;;  %v2675_v16 = vsel %vm274_vm0, %v281_v52, %v283_v0  ;;  %v346_v42 = vrot.slane %v2670_v15, 1  ;;  %v2701_v48 = vsel %vm274_vm0, %v325_v30, %v326_v31  ;;  %v2713_v52 = vld [vmem:[%s2493_s27 + $0x160] sm:$0x3]  ;;  %v308_v63 = vrot.slane %v2707_v50, 1  ;;  %v2297_v0 = vld [vmem:[%s3826_s1 + $0x30] sm:$0xff]  ;;  %1650 = vmatpush.msra.mxu3 %v2330_v22 }
  0x21   : > { %3917 = vst [vmem:[#allocation15_spill] sm:$0xff] %v2646_v1  ;;  %v2718_v60 = vsel %vm274_vm0, %v285_v43, %v286_v44  ;;  %v2721_v62 = vld [vmem:[%s2493_s27 + $0x40] sm:$0x3]  ;;  %v2264_v30 = vld [vmem:[%s3826_s1 + $0x28] sm:$0xff]  ;;  %v348_v43 = vrot.slane %v2713_v52, 1  ;;  %1493 = vmatpush.msra.mxu2 %v2297_v0  ;;  %v2755_v0 = vld [vmem:[%s2493_s27 + $0xb0] sm:$0xff] }
  0x22   : > { %3918 = vst [vmem:[#allocation16_spill] sm:$0xff] %v2652_v3  ;;  %v2704_v49 = vsel %vm274_vm0, %v345_v32, %v346_v42  ;;  %v328_v32 = vrot.slane %v2710_v51, 1  ;;  %1340 = vmatpush.msra.mxu1 %v2264_v30  ;;  %v2758_v22 = vld [vmem:[%s2493_s27 + $0x108] sm:$0xff]  ;;  %v2761_v30 = vld [vmem:[%s2493_s27 + $0x110] sm:$0xff] }
  0x23   : > { %3919 = vst [vmem:[#allocation17_spill] sm:$0xff] %v2667_v14  ;;  %v2749_v14 = vsel %vm274_vm0, %v346_v42, %v348_v43  ;;  %v2767_v41 = vld [vmem:[%s2493_s27 + $0x170] sm:$0xff]  ;;  %v311_v42 = vrot.slane %v2755_v0, 1  ;;  %v331_v43 = vrot.slane %v2761_v30, 1 }
  0x24   : > { %3920 = vst [vmem:[#allocation18_spill] sm:$0xff] %v2670_v15  ;;  %v288_v15 = vrot.slane %v2721_v62, 1  ;;  %v2746_v58 = vsel %vm274_vm0, %v326_v31, %v328_v32  ;;  %v2784_v32 = vld [vmem:[%s2493_s27 + $0x50] sm:$0xff] }
  0x25   : > { %2111 = vmatmul.msk.f32.gmra.mxu1 %vm357_vm1, %v2610_v53  ;;  %3921 = vst [vmem:[#allocation19_spill] sm:$0xff] %v2698_v47  ;;  %v291_v40 = vrot.slane %v2784_v32, 1 }
  0x26   : > { %2119 = vmatmul.msk.f32.gmra.mxu2 %vm357_vm1, %v2613_v54  ;;  %3922 = vst [vmem:[#allocation20_spill] sm:$0xff] %v2704_v49 }
  0x27   : > { %2127 = vmatmul.msk.f32.gmra.mxu3 %vm357_vm1, %v2616_v55  ;;  %3923 = vst [vmem:[#allocation21_spill] sm:$0xff] %v2710_v51  ;;  %v351_v55 = vrot.slane %v2767_v41, 1 }
  0x28   : > { %2103 = vmatmul.msk.f32.gmra.mxu0 %vm357_vm1, %v2630_v59  ;;  %3924 = vst [vmem:[#allocation22_spill] sm:$0xff] %v2713_v52  ;;  %v2752_v52 = vld [vmem:[%s2493_s27 + $0xa8] sm:$0xff] }
  0x29   : > { %3926 = vst [vmem:[#allocation24_spill] sm:$0xff] %v2749_v14  ;;  %v310_v31 = vrot.slane %v2752_v52, 1 }
  0x2a   : > { %3927 = vst [vmem:[#allocation25_spill] sm:$0xff] %v2761_v30 }
  0x2b   : > { %3929 = vst [vmem:[#allocation27_spill] sm:$0xff] %v2767_v41  ;;  %v2798_v35 = vsel %vm274_vm0, %v310_v31, %v311_v42  ;;  %v2810_v41 = vld [vmem:[%s2493_s27 + $0x118] sm:$0x3] }
  0x2c   : > { %3930 = vst [vmem:[#allocation28_spill] sm:$0xff] %v2798_v35  ;;  %v2826_v31 = vld [vmem:[%s2493_s27 + $0x58] sm:$0x3] }
  0x2d   : > { %2112 = vmatmul.msk.f32.gmra.mxu1 %vm357_vm1, %v2646_v1  ;;  %3933 = vst [vmem:[#allocation31_spill] sm:$0xff] %v2810_v41 }
  0x2e   : > { %2120 = vmatmul.msk.f32.gmra.mxu2 %vm357_vm1, %v2649_v2 }
  0x2f   : > { %2128 = vmatmul.msk.f32.gmra.mxu3 %vm357_vm1, %v2652_v3  ;;  %v2764_v3 = vld [vmem:[%s2493_s27 + $0x168] sm:$0xff] }
  0x30   : > { %2104 = vmatmul.msk.f32.gmra.mxu0 %vm357_vm1, %v2675_v16  ;;  %3928 = vst [vmem:[#allocation26_spill] sm:$0xff] %v2764_v3 }
  0x35   : > { %2113 = vmatmul.msk.f32.gmra.mxu1 %vm357_vm1, %v2698_v47 }
  0x36   : > { %2121 = vmatmul.msk.f32.gmra.mxu2 %vm357_vm1, %v2701_v48 }
  0x37   : > { %2129 = vmatmul.msk.f32.gmra.mxu3 %vm357_vm1, %v2704_v49  ;;  %v2743_v49 = vsel %vm274_vm0, %v306_v25, %v308_v63  ;;  %v2772_v25 = vsel %vm274_vm0, %v286_v44, %v288_v15  ;;  %v2781_v63 = vld [vmem:[%s2493_s27 + $0x48] sm:$0xff]  ;;  %v2363_v15 = vld [vmem:[%s3826_s1 + $0x40] sm:$0xff]  ;;  %v330_v44 = vrot.slane %v2758_v22, 1 }
  0x38   : > { %2105 = vmatmul.msk.f32.gmra.mxu0 %vm357_vm1, %v2718_v60  ;;  %3925 = vst [vmem:[#allocation23_spill] sm:$0xff] %v2743_v49  ;;  %v290_v26 = vrot.slane %v2781_v63, 1 }
  0x39   : > { %1806 = vmatpush.msra.mxu0 %v2363_v15  ;;  %v2801_v13 = vsel %vm274_vm0, %v330_v44, %v331_v43  ;;  %v2813_v15 = vld [vmem:[%s2493_s27 + $0x178] sm:$0x3]  ;;  %v333_v44 = vrot.slane %v2810_v41, 1 }
  0x3a   : > { %3931 = vst [vmem:[#allocation29_spill] sm:$0xff] %v2801_v13  ;;  %v2818_v12 = vsel %vm274_vm0, %v290_v26, %v291_v40  ;;  %v353_v30 = vrot.slane %v2813_v15, 1  ;;  %v293_v26 = vrot.slane %v2826_v31, 1 }
  0x3c   : > { %v2845_v41 = vsel %vm274_vm0, %v291_v40, %v293_v26  ;;  %v716_v40 = vrot.slane %v2553_v28, 2  ;;  %v728_v26 = vrot.slane %v2781_v63, 2 }
  0x3d   : > { %2114 = vmatmul.msk.f32.gmra.mxu1 %vm357_vm1, %v2743_v49 }
  0x3e   : > { %2122 = vmatmul.msk.f32.gmra.mxu2 %vm357_vm1, %v2746_v58 }
  0x3f   : > { %2130 = vmatmul.msk.f32.gmra.mxu3 %vm357_vm1, %v2749_v14  ;;  %v350_v14 = vrot.slane %v2764_v3, 1  ;;  %v2807_v3 = vld [vmem:[%s2493_s27 + $0xb8] sm:$0x3] }
  0x40   : > { %2106 = vmatmul.msk.f32.gmra.mxu0 %vm357_vm1, %v2772_v25 }
  0x41   : > { %v2804_v24 = vsel %vm274_vm0, %v350_v14, %v351_v55  ;;  %v313_v14 = vrot.slane %v2807_v3, 1 }
  0x42   : > { %3932 = vst [vmem:[#allocation30_spill] sm:$0xff] %v2804_v24 }
  0x43   : > { %v2834_v51 = vsel %vm274_vm0, %v311_v42, %v313_v14  ;;  %v713_v42 = vrot.slane %v2523_v18, 2  ;;  %v719_v14 = vrot.slane %v2600_v46, 2 }
  0x44   : > { %3934 = vst [vmem:[#allocation32_spill] sm:$0xff] %v2834_v51 }
  0x45   : > { %2115 = vmatmul.msk.f32.gmra.mxu1 %vm357_vm1, %v2798_v35 }
  0x46   : > { %2123 = vmatmul.msk.f32.gmra.mxu2 %vm357_vm1, %v2801_v13  ;;  %v2837_v13 = vsel %vm274_vm0, %v331_v43, %v333_v44  ;;  %v714_v43 = vrot.slane %v2532_v21, 2 }
  0x47   : > { %2131 = vmatmul.msk.f32.gmra.mxu3 %vm357_vm1, %v2804_v24  ;;  %v2840_v24 = vsel %vm274_vm0, %v351_v55, %v353_v30 }
  0x48   : > { %2107 = vmatmul.msk.f32.gmra.mxu0 %vm357_vm1, %v2818_v12  ;;  %3935 = vst [vmem:[#allocation33_spill] sm:$0xff] %v2840_v24  ;;  %v715_v55 = vsel %vm712_vm2, %v713_v42, %v714_v43  ;;  %v717_v30 = vsel %vm712_vm2, %v714_v43, %v716_v40  ;;  %v729_v42 = vrot.slane %v2784_v32, 2  ;;  %v731_v43 = vrot.slane %v2826_v31, 2 }
  0x49   : > { %v733_v40 = vrot.slane %v2496_v5, 2 }
  0x4d   : > { %2116 = vmatmul.msk.f32.gmra.mxu1 %vm357_vm1, %v2834_v51 }
  0x4e   : > { %2124 = vmatmul.msk.f32.gmra.mxu2 %vm357_vm1, %v2837_v13 }
  0x4f   : > { %2132 = vmatmul.msk.f32.gmra.mxu3 %vm357_vm1, %v2840_v24 }
  0x50   : > { %2108 = vmatmul.msk.f32.gmra.mxu0 %vm357_vm1, %v2845_v41 }
  0x55   : > { %2133 = vmatmul.msk.f32.vlgmr.msrb.gmra.mxu1 %vm357_vm1, %v2523_v18  ;;  %v718_v18 = vrot.slane %v2597_v45, 2 }
  0x56   : > { %2166 = vmatmul.msk.f32.vlgmr.msrb.gmra.mxu2 %vm357_vm1, %v715_v55  ;;  %v2937_v55 = vsel %vm712_vm2, %v729_v42, %v731_v43 }
  0x57   : > { %2199 = vmatmul.msk.f32.vlgmr.msrb.gmra.mxu3 %vm357_vm1, %v2597_v45  ;;  %v2875_v28 = vsel %vm712_vm2, %v718_v18, %v719_v14 }
  0x58   : > { %2232 = vmatmul.msk.f32.vlgmr.msrb.gmra.mxu0 %vm357_vm1, %v2630_v59 }
  0x5d   : > { %2134 = vmatmul.msk.f32.gmra.mxu1 %vm357_vm1, %v2532_v21  ;;  %v721_v21 = vrot.slane %v2638_v61, 2 }
  0x5e   : > { %2167 = vmatmul.msk.f32.gmra.mxu2 %vm357_vm1, %v717_v30  ;;  %v734_v30 = vrot.slane %v2499_v6, 2 }
  0x5f   : > { %2200 = vmatmul.msk.f32.gmra.mxu3 %vm357_vm1, %v2600_v46  ;;  %v2887_v59 = vsel %vm712_vm2, %v719_v14, %v721_v21  ;;  %v736_v21 = vrot.slane %v2520_v17, 2  ;;  %v738_v17 = vrot.slane %v2570_v36, 2 }
  0x60   : > { %2233 = vmatmul.msk.f32.gmra.mxu0 %vm357_vm1, %v2675_v16  ;;  %v724_v16 = vrot.slane %v2687_v29, 2  ;;  %v2952_v18 = vsel %vm712_vm2, %v733_v40, %v734_v30 }
  0x61   : > { %3936 = vst [vmem:[#allocation34_spill] sm:$0xff] %v2952_v18 }
  0x65   : > { %2135 = vmatmul.msk.f32.gmra.mxu1 %vm357_vm1, %v2597_v45  ;;  %v723_v45 = vrot.slane %v2684_v27, 2 }
  0x66   : > { %2168 = vmatmul.msk.f32.gmra.mxu2 %vm357_vm1, %v2875_v28 }
  0x67   : > { %2201 = vmatmul.msk.f32.gmra.mxu3 %vm357_vm1, %v2684_v27  ;;  %v2900_v61 = vsel %vm712_vm2, %v723_v45, %v724_v16 }
  0x68   : > { %2234 = vmatmul.msk.f32.gmra.mxu0 %vm357_vm1, %v2718_v60 }
  0x6d   : > { %2136 = vmatmul.msk.f32.gmra.mxu1 %vm357_vm1, %v2600_v46  ;;  %v726_v46 = vrot.slane %v2721_v62, 2  ;;  %v2925_v62 = vsel %vm712_vm2, %v728_v26, %v729_v42  ;;  %v739_v42 = vrot.slane %v2573_v37, 2 }
  0x6e   : > { %2169 = vmatmul.msk.f32.gmra.mxu2 %vm357_vm1, %v2887_v59 }
  0x6f   : > { %2202 = vmatmul.msk.f32.gmra.mxu3 %vm357_vm1, %v2687_v29  ;;  %v2912_v44 = vsel %vm712_vm2, %v724_v16, %v726_v46 }
  0x70   : > { %2235 = vmatmul.msk.f32.gmra.mxu0 %vm357_vm1, %v2772_v25 }
  0x75   : > { %2137 = vmatmul.msk.f32.gmra.mxu1 %vm357_vm1, %v2684_v27 }
  0x76   : > { %2170 = vmatmul.msk.f32.gmra.mxu2 %vm357_vm1, %v2900_v61 }
  0x77   : > { %2203 = vmatmul.msk.f32.gmra.mxu3 %vm357_vm1, %v2781_v63 }
  0x78   : > { %2236 = vmatmul.msk.f32.gmra.mxu0 %vm357_vm1, %v2818_v12 }
  0x7d   : > { %2138 = vmatmul.msk.f32.gmra.mxu1 %vm357_vm1, %v2687_v29 }
  0x7e   : > { %2171 = vmatmul.msk.f32.gmra.mxu2 %vm357_vm1, %v2912_v44 }
  0x7f   : > { %2204 = vmatmul.msk.f32.gmra.mxu3 %vm357_vm1, %v2784_v32 }
  0x80   : > { %2237 = vmatmul.msk.f32.gmra.mxu0 %vm357_vm1, %v2845_v41 }
  0x85   : > { %2139 = vmatmul.msk.f32.gmra.mxu1 %vm357_vm1, %v2781_v63 }
  0x86   : > { %2172 = vmatmul.msk.f32.gmra.mxu2 %vm357_vm1, %v2925_v62 }
  0x87   : > { %2205 = vmatmul.msk.f32.gmra.mxu3 %vm357_vm1, %v2496_v5 }
  0x88   : > { %2238 = vmatmul.msk.f32.gmra.mxu0 %vm357_vm1, %v2526_v19 }
  0x8d   : > { %2140 = vmatmul.msk.f32.gmra.mxu1 %vm357_vm1, %v2784_v32 }
  0x8e   : > { %2173 = vmatmul.msk.f32.gmra.mxu2 %vm357_vm1, %v2937_v55 }
  0x8f   : > { %2206 = vmatmul.msk.f32.gmra.mxu3 %vm357_vm1, %v2499_v6 }
  0x90   : > { %2239 = vmatmul.msk.f32.gmra.mxu0 %vm357_vm1, %v2561_v33 }
  0x92   : > { %v2949_v31 = vpop.f32.mrf.mxu1 }
  0x95   : > { %2141 = vmatmul.msk.f32.gmra.mxu1 %vm357_vm1, %v2496_v5  ;;  %v2956_v14 = vpop.f32.mrf.mxu0  ;;  %v2972_v5 = vsel %vm712_vm2, %v734_v30, %v736_v21  ;;  %v2993_v30 = vsel %vm712_vm2, %v738_v17, %v739_v42 }
  0x96   : > { %2174 = vmatmul.msk.f32.gmra.mxu2 %vm357_vm1, %v2952_v18  ;;  %3938 = vst [vmem:[#allocation36_spill] sm:$0xff] %v2972_v5 }
  0x97   : > { %2207 = vmatmul.msk.f32.gmra.mxu3 %vm357_vm1, %v2570_v36  ;;  %3940 = vst [vmem:[#allocation38_spill] sm:$0xff] %v2993_v30 }
  0x98   : > { %2240 = vmatmul.msk.f32.gmra.mxu0 %vm357_vm1, %v2610_v53 }
  0x99   : > { %v2965_v45 = vpop.f32.mrf.mxu2 }
  0x9a   : > { %v2967_v16 = vpop.f32.mrf.mxu3  ;;  %v2969_v46 = vpop.f32.mrf.mxu1 }
  0x9b   : > { %3937 = vst [vmem:[#allocation35_spill] sm:$0xff] %v2967_v16  ;;  %v741_v16 = vrot.slane %v2619_v56, 2  ;;  %v743_v56 = vrot.slane %v2655_v4, 2 }
  0x9d   : > { %2142 = vmatmul.msk.f32.gmra.mxu1 %vm357_vm1, %v2499_v6  ;;  %v2976_v26 = vpop.f32.mrf.mxu0 }
  0x9e   : > { %2175 = vmatmul.msk.f32.gmra.mxu2 %vm357_vm1, %v2972_v5 }
  0x9f   : > { %2208 = vmatmul.msk.f32.gmra.mxu3 %vm357_vm1, %v2573_v37 }
  0xa0   : > { %2241 = vmatmul.msk.f32.gmra.mxu0 %vm357_vm1, %v2646_v1 }
  0xa1   : > { %v2986_v43 = vpop.f32.mrf.mxu2 }
  0xa2   : > { %v2988_v40 = vpop.f32.mrf.mxu3  ;;  %v2990_v6 = vpop.f32.mrf.mxu1 }
  0xa3   : > { %3939 = vst [vmem:[#allocation37_spill] sm:$0xff] %v2988_v40 }
  0xa5   : > { %2143 = vmatmul.msk.f32.gmra.mxu1 %vm357_vm1, %v2570_v36  ;;  %v2997_v21 = vpop.f32.mrf.mxu0  ;;  %v3013_v36 = vsel %vm712_vm2, %v739_v42, %v741_v16 }
  0xa6   : > { %2176 = vmatmul.msk.f32.gmra.mxu2 %vm357_vm1, %v2993_v30  ;;  %3942 = vst [vmem:[#allocation40_spill] sm:$0xff] %v3013_v36 }
  0xa7   : > { %2209 = vmatmul.msk.f32.gmra.mxu3 %vm357_vm1, %v2655_v4 }
  0xa8   : > { %2242 = vmatmul.msk.f32.gmra.mxu0 %vm357_vm1, %v2698_v47 }
  0xa9   : > { %v3006_v40 = vpop.f32.mrf.mxu2 }
  0xaa   : > { %v3008_v17 = vpop.f32.mrf.mxu3  ;;  %v3010_v1 = vpop.f32.mrf.mxu1 }
  0xab   : > { %3941 = vst [vmem:[#allocation39_spill] sm:$0xff] %v3008_v17  ;;  %v744_v17 = vrot.slane %v2658_v8, 2 }
  0xad   : > { %2144 = vmatmul.msk.f32.gmra.mxu1 %vm357_vm1, %v2573_v37  ;;  %v3017_v30 = vpop.f32.mrf.mxu0  ;;  %v3034_v47 = vsel %vm712_vm2, %v743_v56, %v744_v17 }
  0xae   : > { %2177 = vmatmul.msk.f32.gmra.mxu2 %vm357_vm1, %v3013_v36  ;;  %3944 = vst [vmem:[#allocation42_spill] sm:$0xff] %v3034_v47 }
  0xaf   : > { %2210 = vmatmul.msk.f32.gmra.mxu3 %vm357_vm1, %v2658_v8 }
  0xb0   : > { %2243 = vmatmul.msk.f32.gmra.mxu0 %vm357_vm1, %v2743_v49  ;;  %v746_v49 = vrot.slane %v2707_v50, 2  ;;  %v748_v50 = vrot.slane %v2752_v52, 2 }
  0xb1   : > { %v3027_v16 = vpop.f32.mrf.mxu2 }
  0xb2   : > { %v3029_v42 = vpop.f32.mrf.mxu3  ;;  %v3031_v37 = vpop.f32.mrf.mxu1 }
  0xb3   : > { %3943 = vst [vmem:[#allocation41_spill] sm:$0xff] %v3029_v42 }
  0xb5   : > { %2145 = vmatmul.msk.f32.gmra.mxu1 %vm357_vm1, %v2655_v4  ;;  %v3038_v36 = vpop.f32.mrf.mxu0  ;;  %v3054_v4 = vsel %vm712_vm2, %v744_v17, %v746_v49 }
  0xb6   : > { %2178 = vmatmul.msk.f32.gmra.mxu2 %vm357_vm1, %v3034_v47  ;;  %3946 = vst [vmem:[#allocation44_spill] sm:$0xff] %v3054_v4 }
  0xb7   : > { %2211 = vmatmul.msk.f32.gmra.mxu3 %vm357_vm1, %v2752_v52 }
  0xb8   : > { %2244 = vmatmul.msk.f32.gmra.mxu0 %vm357_vm1, %v2798_v35 }
  0xb9   : > { %v3047_v42 = vpop.f32.mrf.mxu2 }
  0xba   : > { %v3049_v56 = vpop.f32.mrf.mxu3  ;;  %v3051_v53 = vpop.f32.mrf.mxu1 }
  0xbb   : > { %3945 = vst [vmem:[#allocation43_spill] sm:$0xff] %v3049_v56  ;;  %v749_v56 = vrot.slane %v2755_v0, 2 }
  0xbd   : > { %2146 = vmatmul.msk.f32.gmra.mxu1 %vm357_vm1, %v2658_v8  ;;  %v3058_v47 = vpop.f32.mrf.mxu0  ;;  %v3075_v35 = vsel %vm712_vm2, %v748_v50, %v749_v56 }
  0xbe   : > { %2179 = vmatmul.msk.f32.gmra.mxu2 %vm357_vm1, %v3054_v4  ;;  %3949 = vst [vmem:[#allocation47_spill] sm:$0xff] %v3075_v35 }
  0xbf   : > { %2212 = vmatmul.msk.f32.gmra.mxu3 %vm357_vm1, %v2755_v0 }
  0xc0   : > { %2245 = vmatmul.msk.f32.gmra.mxu0 %vm357_vm1, %v2834_v51  ;;  %v751_v51 = vrot.slane %v2807_v3, 2  ;;  %v753_v3 = vrot.slane %v2502_v7, 2 }
  0xc1   : > { %v3068_v49 = vpop.f32.mrf.mxu2 }
  0xc2   : > { %3947 = vst [vmem:[#allocation45_spill] sm:$0xff] %v3068_v49  ;;  %v3070_v17 = vpop.f32.mrf.mxu3  ;;  %v3072_v8 = vpop.f32.mrf.mxu1 }
  0xc3   : > { %3948 = vst [vmem:[#allocation46_spill] sm:$0xff] %v3070_v17 }
  0xc5   : > { %2147 = vmatmul.msk.f32.gmra.mxu1 %vm357_vm1, %v2752_v52  ;;  %v3079_v4 = vpop.f32.mrf.mxu0  ;;  %v3095_v52 = vsel %vm712_vm2, %v749_v56, %v751_v51 }
  0xc6   : > { %2180 = vmatmul.msk.f32.gmra.mxu2 %vm357_vm1, %v3075_v35  ;;  %3952 = vst [vmem:[#allocation50_spill] sm:$0xff] %v3095_v52 }
  0xc7   : > { %2213 = vmatmul.msk.f32.gmra.mxu3 %vm357_vm1, %v2502_v7 }
  0xc8   : > { %2246 = vmatmul.msk.f32.gmra.mxu0 %vm357_vm1, %v2538_v23 }
  0xc9   : > { %v3088_v17 = vpop.f32.mrf.mxu2 }
  0xca   : > { %3950 = vst [vmem:[#allocation48_spill] sm:$0xff] %v3088_v17  ;;  %v3090_v50 = vpop.f32.mrf.mxu3  ;;  %v3092_v5 = vpop.f32.mrf.mxu1 }
  0xcb   : > { %3951 = vst [vmem:[#allocation49_spill] sm:$0xff] %v3090_v50  ;;  %v754_v50 = vrot.slane %v2507_v10, 2 }
  0xcd   : > { %2148 = vmatmul.msk.f32.gmra.mxu1 %vm357_vm1, %v2755_v0  ;;  %v3099_v35 = vpop.f32.mrf.mxu0  ;;  %v3114_v23 = vsel %vm712_vm2, %v753_v3, %v754_v50 }
  0xce   : > { %2181 = vmatmul.msk.f32.gmra.mxu2 %vm357_vm1, %v3095_v52  ;;  %3955 = vst [vmem:[#allocation53_spill] sm:$0xff] %v3114_v23 }
  0xcf   : > { %2214 = vmatmul.msk.f32.gmra.mxu3 %vm357_vm1, %v2507_v10 }
  0xd0   : > { %2247 = vmatmul.msk.f32.gmra.mxu0 %vm357_vm1, %v2564_v34  ;;  %v756_v34 = vrot.slane %v2529_v20, 2  ;;  %v758_v20 = vrot.slane %v2576_v38, 2 }
  0xd1   : > { %v3109_v51 = vpop.f32.mrf.mxu2 }
  0xd2   : > { %3953 = vst [vmem:[#allocation51_spill] sm:$0xff] %v3109_v51  ;;  %v3111_v56 = vpop.f32.mrf.mxu3  ;;  %v616_v0 = vpop.f32.mrf.mxu1 }
  0xd3   : > { %3954 = vst [vmem:[#allocation52_spill] sm:$0xff] %v3111_v56  ;;  %v617_v51 = vadd.f32 %v616_v0, %v2956_v14  ;;  %v759_v14 = vrot.slane %v2579_v39, 2 }
  0xd5   : > { %2149 = vmatmul.msk.f32.gmra.mxu1 %vm357_vm1, %v2502_v7  ;;  %v1186_v52 = vpop.f32.mrf.mxu0  ;;  %v3127_v7 = vsel %vm712_vm2, %v754_v50, %v756_v34 }
  0xd6   : > { %2182 = vmatmul.msk.f32.gmra.mxu2 %vm357_vm1, %v3114_v23 }
  0xd7   : > { %2215 = vmatmul.msk.f32.gmra.mxu3 %vm357_vm1, %v2576_v38 }
  0xd8   : > { %2248 = vmatmul.msk.f32.gmra.mxu0 %vm357_vm1, %v2613_v54 }
  0xd9   : > { %v876_v56 = vpop.f32.mrf.mxu2 }
  0xda   : > { %v1029_v3 = vpop.f32.mrf.mxu3  ;;  %v972_v17 = vadd.f32 %v876_v56, %v617_v51  ;;  %v619_v49 = vpop.f32.mrf.mxu1 }
  0xdb   : > { %v620_v34 = vadd.f32 %v619_v49, %v2976_v26  ;;  %v761_v26 = vrot.slane %v2622_v57, 2  ;;  %v763_v57 = vrot.slane %v2661_v9, 2 }
  0xdc   : > { %v1125_v33 = vadd.f32 %v1029_v3, %v972_v17 }
  0xdd   : > { %2150 = vmatmul.msk.f32.gmra.mxu1 %vm357_vm1, %v2507_v10  ;;  %v1189_v23 = vpop.f32.mrf.mxu0 }
  0xde   : > { %v3131_v18 = vadd.f32 %v1186_v52, %v1125_v33  ;;  %2183 = vmatmul.msk.f32.gmra.mxu2 %vm357_vm1, %v3127_v7  ;;  %v3143_v52 = vsel %vm712_vm2, %v758_v20, %v759_v14 }
  0xdf   : > { %2216 = vmatmul.msk.f32.gmra.mxu3 %vm357_vm1, %v2579_v39 }
  0xe0   : > { %2249 = vmatmul.msk.f32.gmra.mxu0 %vm357_vm1, %v2649_v2 }
  0xe1   : > { %v879_v17 = vpop.f32.mrf.mxu2 }
  0xe2   : > { %v1032_v10 = vpop.f32.mrf.mxu3  ;;  %v973_v50 = vadd.f32 %v879_v17, %v620_v34  ;;  %v622_v33 = vpop.f32.mrf.mxu1 }
  0xe3   : > { %v623_v49 = vadd.f32 %v622_v33, %v2997_v21  ;;  %v764_v21 = vrot.slane %v2664_v11, 2 }
  0xe4   : > { %v1126_v51 = vadd.f32 %v1032_v10, %v973_v50 }
  0xe5   : > { %2151 = vmatmul.msk.f32.gmra.mxu1 %vm357_vm1, %v2576_v38  ;;  %v1192_v56 = vpop.f32.mrf.mxu0 }
  0xe6   : > { %v3147_v0 = vadd.f32 %v1189_v23, %v1126_v51  ;;  %2184 = vmatmul.msk.f32.gmra.mxu2 %vm357_vm1, %v3143_v52  ;;  %v3158_v23 = vsel %vm712_vm2, %v759_v14, %v761_v26  ;;  %v3174_v26 = vsel %vm712_vm2, %v763_v57, %v764_v21 }
  0xe7   : > { %2217 = vmatmul.msk.f32.gmra.mxu3 %vm357_vm1, %v2661_v9 }
  0xe8   : > { %2250 = vmatmul.msk.f32.gmra.mxu0 %vm357_vm1, %v2701_v48 }
  0xe9   : > { %v882_v3 = vpop.f32.mrf.mxu2 }
  0xea   : > { %v1035_v20 = vpop.f32.mrf.mxu3  ;;  %v974_v34 = vadd.f32 %v882_v3, %v623_v49  ;;  %v625_v38 = vpop.f32.mrf.mxu1 }
  0xeb   : > { %v626_v14 = vadd.f32 %v625_v38, %v3017_v30  ;;  %v3957_v30 = vld [vmem:[#allocation21_spill] sm:$0xff] }
  0xec   : > { %v1127_v17 = vadd.f32 %v1035_v20, %v974_v34  ;;  %v766_v34 = vrot.slane %v3957_v30, 2 }
  0xed   : > { %2152 = vmatmul.msk.f32.gmra.mxu1 %vm357_vm1, %v2579_v39  ;;  %v1195_v10 = vpop.f32.mrf.mxu0 }
  0xee   : > { %v3162_v50 = vadd.f32 %v1192_v56, %v1127_v17  ;;  %2185 = vmatmul.msk.f32.gmra.mxu2 %vm357_vm1, %v3158_v23  ;;  %v3958_v17 = vld [vmem:[#allocation29_spill] sm:$0xff] }
  0xef   : > { %2218 = vmatmul.msk.f32.gmra.mxu3 %vm357_vm1, %v2664_v11 }
  0xf0   : > { %2251 = vmatmul.msk.f32.gmra.mxu0 %vm357_vm1, %v2746_v58 }
  0xf1   : > { %v885_v33 = vpop.f32.mrf.mxu2 }
  0xf2   : > { %v1038_v39 = vpop.f32.mrf.mxu3  ;;  %v975_v51 = vadd.f32 %v885_v33, %v626_v14  ;;  %v628_v56 = vpop.f32.mrf.mxu1 }
  0xf3   : > { %v629_v38 = vadd.f32 %v628_v56, %v3038_v36  ;;  %v3960_v36 = vld [vmem:[#allocation25_spill] sm:$0xff]  ;;  %v768_v56 = vrot.slane %v2758_v22, 2 }
  0xf4   : > { %v1128_v49 = vadd.f32 %v1038_v39, %v975_v51  ;;  %v769_v30 = vrot.slane %v3960_v36, 2 }
  0xf5   : > { %2153 = vmatmul.msk.f32.gmra.mxu1 %vm357_vm1, %v2661_v9  ;;  %v1198_v3 = vpop.f32.mrf.mxu0 }
  0xf6   : > { %v3178_v20 = vadd.f32 %v1195_v10, %v1128_v49  ;;  %2186 = vmatmul.msk.f32.gmra.mxu2 %vm357_vm1, %v3174_v26  ;;  %v3189_v10 = vsel %vm712_vm2, %v764_v21, %v766_v34 }
  0xf7   : > { %2219 = vmatmul.msk.f32.gmra.mxu3 %vm357_vm1, %v2758_v22 }
  0xf8   : > { %3956 = vst [vmem:[#allocation54_spill] sm:$0xff] %v3178_v20  ;;  %2252 = vmatmul.msk.f32.gmra.mxu0 %vm357_vm1, %v3958_v17 }
  0xf9   : > { %v888_v57 = vpop.f32.mrf.mxu2 }
  0xfa   : > { %v1041_v14 = vpop.f32.mrf.mxu3  ;;  %v976_v33 = vadd.f32 %v888_v57, %v629_v38  ;;  %v631_v9 = vpop.f32.mrf.mxu1  ;;  %v3205_v57 = vsel %vm712_vm2, %v768_v56, %v769_v30 }
  0xfb   : > { %v632_v21 = vadd.f32 %v631_v9, %v3058_v47  ;;  %v3962_v47 = vld [vmem:[#allocation2_spill] sm:$0xff]  ;;  %v3963_v9 = vld [vmem:[#allocation31_spill] sm:$0xff] }
  0xfc   : > { %v1129_v39 = vadd.f32 %v1041_v14, %v976_v33 }
  0xfd   : > { %2154 = vmatmul.msk.f32.gmra.mxu1 %vm357_vm1, %v2664_v11  ;;  %v1201_v51 = vpop.f32.mrf.mxu0 }
  0xfe   : > { %v3193_v49 = vadd.f32 %v1198_v3, %v1129_v39  ;;  %2187 = vmatmul.msk.f32.gmra.mxu2 %vm357_vm1, %v3189_v10 }
  0xff   : > { %2220 = vmatmul.msk.f32.gmra.mxu3 %vm357_vm1, %v3960_v36 }
 0x100   : > { %3959 = vst [vmem:[#allocation21_spill] sm:$0xff] %v3193_v49  ;;  %2253 = vmatmul.msk.f32.gmra.mxu0 %vm357_vm1, %v2837_v13  ;;  %v771_v49 = vrot.slane %v3963_v9, 2 }
 0x101   : > { %v891_v34 = vpop.f32.mrf.mxu2 }
 0x102   : > { %v1044_v11 = vpop.f32.mrf.mxu3  ;;  %v977_v38 = vadd.f32 %v891_v34, %v632_v21  ;;  %v634_v3 = vpop.f32.mrf.mxu1  ;;  %v3964_v34 = vld [vmem:[#allocation5_spill] sm:$0xff] }
 0x103   : > { %v635_v21 = vadd.f32 %v634_v3, %v3079_v4  ;;  %v3966_v4 = vld [vmem:[#allocation3_spill] sm:$0xff]  ;;  %v773_v3 = vrot.slane %v3962_v47, 2 }
 0x104   : > { %v1130_v14 = vadd.f32 %v1044_v11, %v977_v38  ;;  %v774_v9 = vrot.slane %v3966_v4, 2 }
 0x105   : > { %2155 = vmatmul.msk.f32.gmra.mxu1 %vm357_vm1, %v2758_v22  ;;  %v1204_v33 = vpop.f32.mrf.mxu0 }
 0x106   : > { %v3209_v39 = vadd.f32 %v1201_v51, %v1130_v14  ;;  %2188 = vmatmul.msk.f32.gmra.mxu2 %vm357_vm1, %v3205_v57  ;;  %v3220_v51 = vsel %vm712_vm2, %v769_v30, %v771_v49  ;;  %v3967_v30 = vld [vmem:[#allocation9_spill] sm:$0xff] }
 0x107   : > { %2221 = vmatmul.msk.f32.gmra.mxu3 %vm357_vm1, %v3962_v47 }
 0x108   : > { %3961 = vst [vmem:[#allocation29_spill] sm:$0xff] %v3209_v39  ;;  %2254 = vmatmul.msk.f32.gmra.mxu0 %vm357_vm1, %v3964_v34 }
 0x109   : > { %v894_v56 = vpop.f32.mrf.mxu2 }
 0x10a   : > { %v1047_v11 = vpop.f32.mrf.mxu3  ;;  %v978_v38 = vadd.f32 %v894_v56, %v635_v21  ;;  %v637_v22 = vpop.f32.mrf.mxu1 }
 0x10b   : > { %v638_v49 = vadd.f32 %v637_v22, %v3099_v35  ;;  %v3970_v35 = vld [vmem:[#allocation10_spill] sm:$0xff] }
 0x10c   : > { %v1131_v14 = vadd.f32 %v1047_v11, %v978_v38  ;;  %v3236_v11 = vsel %vm712_vm2, %v773_v3, %v774_v9  ;;  %v3971_v22 = vld [vmem:[#allocation6_spill] sm:$0xff] }
 0x10d   : > { %2156 = vmatmul.msk.f32.gmra.mxu1 %vm357_vm1, %v3960_v36  ;;  %v1207_v39 = vpop.f32.mrf.mxu0  ;;  %3968 = vst [vmem:[#allocation2_spill] sm:$0xff] %v3236_v11 }
 0x10e   : > { %v3224_v20 = vadd.f32 %v1204_v33, %v1131_v14  ;;  %2189 = vmatmul.msk.f32.gmra.mxu2 %vm357_vm1, %v3220_v51 }
 0x10f   : > { %2222 = vmatmul.msk.f32.gmra.mxu3 %vm357_vm1, %v3966_v4 }
 0x110   : > { %3965 = vst [vmem:[#allocation25_spill] sm:$0xff] %v3224_v20  ;;  %2255 = vmatmul.msk.f32.gmra.mxu0 %vm357_vm1, %v3967_v30  ;;  %v776_v30 = vrot.slane %v3971_v22, 2 }
 0x111   : > { %v897_v21 = vpop.f32.mrf.mxu2 }
 0x112   : > { %v1050_v36 = vpop.f32.mrf.mxu3  ;;  %v979_v56 = vadd.f32 %v897_v21, %v638_v49  ;;  %v640_v33 = vpop.f32.mrf.mxu1  ;;  %v3972_v21 = vld [vmem:[#allocation13_spill] sm:$0xff] }
 0x113   : > { %v641_v49 = vadd.f32 %v640_v33, %v2949_v31  ;;  %v3974_v31 = vld [vmem:[#allocation11_spill] sm:$0xff]  ;;  %v778_v33 = vrot.slane %v3970_v35, 2 }
 0x114   : > { %v1132_v38 = vadd.f32 %v1050_v36, %v979_v56  ;;  %v779_v22 = vrot.slane %v3974_v31, 2 }
 0x115   : > { %2157 = vmatmul.msk.f32.gmra.mxu1 %vm357_vm1, %v3962_v47  ;;  %v1210_v14 = vpop.f32.mrf.mxu0 }
 0x116   : > { %v3240_v20 = vadd.f32 %v1207_v39, %v1132_v38  ;;  %2190 = vmatmul.msk.f32.gmra.mxu2 %vm357_vm1, %v3236_v11  ;;  %v3251_v39 = vsel %vm712_vm2, %v774_v9, %v776_v30  ;;  %v3975_v30 = vld [vmem:[#allocation16_spill] sm:$0xff] }
 0x117   : > { %2223 = vmatmul.msk.f32.gmra.mxu3 %vm357_vm1, %v3970_v35 }
 0x118   : > { %3969 = vst [vmem:[#allocation31_spill] sm:$0xff] %v3240_v20  ;;  %2256 = vmatmul.msk.f32.gmra.mxu0 %vm357_vm1, %v3972_v21 }
 0x119   : > { %v900_v3 = vpop.f32.mrf.mxu2 }
 0x11a   : > { %v1053_v36 = vpop.f32.mrf.mxu3  ;;  %v980_v56 = vadd.f32 %v900_v3, %v641_v49  ;;  %v643_v47 = vpop.f32.mrf.mxu1 }
 0x11b   : > { %v644_v9 = vadd.f32 %v643_v47, %v2969_v46  ;;  %v3978_v46 = vld [vmem:[#allocation17_spill] sm:$0xff]  ;;  %v3979_v47 = vld [vmem:[#allocation14_spill] sm:$0xff] }
 0x11c   : > { %v1133_v38 = vadd.f32 %v1053_v36, %v980_v56  ;;  %v3267_v36 = vsel %vm712_vm2, %v778_v33, %v779_v22 }
 0x11d   : > { %2158 = vmatmul.msk.f32.gmra.mxu1 %vm357_vm1, %v3966_v4  ;;  %v1213_v20 = vpop.f32.mrf.mxu0  ;;  %3976 = vst [vmem:[#allocation3_spill] sm:$0xff] %v3267_v36 }
 0x11e   : > { %v3255_v11 = vadd.f32 %v1210_v14, %v1133_v38  ;;  %2191 = vmatmul.msk.f32.gmra.mxu2 %vm357_vm1, %v3251_v39 }
 0x11f   : > { %2224 = vmatmul.msk.f32.gmra.mxu3 %vm357_vm1, %v3974_v31 }
 0x120   : > { %3973 = vst [vmem:[#allocation5_spill] sm:$0xff] %v3255_v11  ;;  %2257 = vmatmul.msk.f32.gmra.mxu0 %vm357_vm1, %v3975_v30  ;;  %v781_v30 = vrot.slane %v3979_v47, 2 }
 0x121   : > { %v903_v49 = vpop.f32.mrf.mxu2 }
 0x122   : > { %v1056_v4 = vpop.f32.mrf.mxu3  ;;  %v981_v3 = vadd.f32 %v903_v49, %v644_v9  ;;  %v646_v14 = vpop.f32.mrf.mxu1  ;;  %v3980_v49 = vld [vmem:[#allocation20_spill] sm:$0xff] }
 0x123   : > { %v647_v9 = vadd.f32 %v646_v14, %v2990_v6  ;;  %v3982_v6 = vld [vmem:[#allocation18_spill] sm:$0xff]  ;;  %v783_v14 = vrot.slane %v3978_v46, 2 }
 0x124   : > { %v1134_v56 = vadd.f32 %v1056_v4, %v981_v3  ;;  %v784_v47 = vrot.slane %v3982_v6, 2 }
 0x125   : > { %2159 = vmatmul.msk.f32.gmra.mxu1 %vm357_vm1, %v3970_v35  ;;  %v1216_v38 = vpop.f32.mrf.mxu0 }
 0x126   : > { %v3271_v11 = vadd.f32 %v1213_v20, %v1134_v56  ;;  %2192 = vmatmul.msk.f32.gmra.mxu2 %vm357_vm1, %v3267_v36  ;;  %v3282_v20 = vsel %vm712_vm2, %v779_v22, %v781_v30  ;;  %v3983_v30 = vld [vmem:[#allocation24_spill] sm:$0xff] }
 0x127   : > { %2225 = vmatmul.msk.f32.gmra.mxu3 %vm357_vm1, %v3978_v46 }
 0x128   : > { %3977 = vst [vmem:[#allocation10_spill] sm:$0xff] %v3271_v11  ;;  %2258 = vmatmul.msk.f32.gmra.mxu0 %vm357_vm1, %v3980_v49 }
 0x129   : > { %v906_v33 = vpop.f32.mrf.mxu2 }
 0x12a   : > { %v1059_v4 = vpop.f32.mrf.mxu3  ;;  %v982_v3 = vadd.f32 %v906_v33, %v647_v9  ;;  %v649_v35 = vpop.f32.mrf.mxu1 }
 0x12b   : > { %v650_v22 = vadd.f32 %v649_v35, %v3010_v1  ;;  %v3986_v1 = vld [vmem:[#allocation26_spill] sm:$0xff] }
 0x12c   : > { %v1135_v56 = vadd.f32 %v1059_v4, %v982_v3  ;;  %v3298_v4 = vsel %vm712_vm2, %v783_v14, %v784_v47  ;;  %v3987_v35 = vld [vmem:[#allocation22_spill] sm:$0xff] }
 0x12d   : > { %2160 = vmatmul.msk.f32.gmra.mxu1 %vm357_vm1, %v3974_v31  ;;  %v1219_v11 = vpop.f32.mrf.mxu0  ;;  %3984 = vst [vmem:[#allocation13_spill] sm:$0xff] %v3298_v4  ;;  %v3988_v14 = vld [vmem:[#allocation30_spill] sm:$0xff] }
 0x12e   : > { %v3286_v36 = vadd.f32 %v1216_v38, %v1135_v56  ;;  %2193 = vmatmul.msk.f32.gmra.mxu2 %vm357_vm1, %v3282_v20 }
 0x12f   : > { %2226 = vmatmul.msk.f32.gmra.mxu3 %vm357_vm1, %v3982_v6 }
 0x130   : > { %3981 = vst [vmem:[#allocation6_spill] sm:$0xff] %v3286_v36  ;;  %2259 = vmatmul.msk.f32.gmra.mxu0 %vm357_vm1, %v3983_v30 }
 0x131   : > { %v909_v9 = vpop.f32.mrf.mxu2 }
 0x132   : > { %v1062_v31 = vpop.f32.mrf.mxu3  ;;  %v983_v33 = vadd.f32 %v909_v9, %v650_v22  ;;  %v652_v38 = vpop.f32.mrf.mxu1  ;;  %v786_v22 = vrot.slane %v3987_v35, 2  ;;  %v788_v35 = vrot.slane %v3986_v1, 2 }
 0x133   : > { %v653_v9 = vadd.f32 %v652_v38, %v3031_v37  ;;  %v3990_v37 = vld [vmem:[#allocation27_spill] sm:$0xff] }
 0x134   : > { %v1136_v3 = vadd.f32 %v1062_v31, %v983_v33  ;;  %v3324_v38 = vld [vmem:[%s2493_s27 + $0x188] sm:$0xff] }
 0x135   : > { %2161 = vmatmul.msk.f32.gmra.mxu1 %vm357_vm1, %v3978_v46  ;;  %v1222_v56 = vpop.f32.mrf.mxu0 }
 0x136   : > { %v3302_v36 = vadd.f32 %v1219_v11, %v1136_v3  ;;  %2194 = vmatmul.msk.f32.gmra.mxu2 %vm357_vm1, %v3298_v4  ;;  %v3313_v3 = vsel %vm712_vm2, %v784_v47, %v786_v22  ;;  %v789_v47 = vrot.slane %v3990_v37, 2 }
 0x137   : > { %2227 = vmatmul.msk.f32.gmra.mxu3 %vm357_vm1, %v3986_v1 }
 0x138   : > { %3985 = vst [vmem:[#allocation11_spill] sm:$0xff] %v3302_v36  ;;  %2260 = vmatmul.msk.f32.gmra.mxu0 %vm357_vm1, %v3988_v14 }
 0x139   : > { %v912_v31 = vpop.f32.mrf.mxu2 }
 0x13a   : > { %v1065_v46 = vpop.f32.mrf.mxu3  ;;  %v984_v33 = vadd.f32 %v912_v31, %v653_v9  ;;  %v655_v11 = vpop.f32.mrf.mxu1  ;;  %v3330_v9 = vld [vmem:[%s2493_s27 + $0x180] sm:$0xff]  ;;  %v1159_v31 = vrot.slane %v3324_v38, 1 }
 0x13b   : > { %v656_v22 = vadd.f32 %v655_v11, %v3051_v53  ;;  %3991 = vst [vmem:[#allocation14_spill] sm:$0xff] %v3330_v9 }
 0x13c   : > { %v1137_v36 = vadd.f32 %v1065_v46, %v984_v33 }
 0x13d   : > { %2162 = vmatmul.msk.f32.gmra.mxu1 %vm357_vm1, %v3982_v6  ;;  %v1225_v30 = vpop.f32.mrf.mxu0 }
 0x13e   : > { %v3317_v4 = vadd.f32 %v1222_v56, %v1137_v36  ;;  %2195 = vmatmul.msk.f32.gmra.mxu2 %vm357_vm1, %v3313_v3  ;;  %v1158_v56 = vrot.slane %v3330_v9, 1 }
 0x13f   : > { %2228 = vmatmul.msk.f32.gmra.mxu3 %vm357_vm1, %v3990_v37 }
 0x140   : > { %3989 = vst [vmem:[#allocation17_spill] sm:$0xff] %v3317_v4  ;;  %2261 = vmatmul.msk.f32.gmra.mxu0 %vm357_vm1, %v2840_v24  ;;  %v3337_v4 = vsel %vm712_vm2, %v788_v35, %v789_v47  ;;  %v3342_v11 = vsel %vm274_vm0, %v1158_v56, %v1159_v31  ;;  %v791_v35 = vrot.slane %v2813_v15, 2 }
 0x141   : > { %v915_v36 = vpop.f32.mrf.mxu2 }
 0x142   : > { %v1068_v6 = vpop.f32.mrf.mxu3  ;;  %v985_v46 = vadd.f32 %v915_v36, %v656_v22  ;;  %v658_v33 = vpop.f32.mrf.mxu1  ;;  %v3351_v22 = vld [vmem:[%s2493_s27 + $0x190] sm:$0x3] }
 0x143   : > { %v659_v36 = vadd.f32 %v658_v33, %v3072_v8 }
 0x144   : > { %v1138_v14 = vadd.f32 %v1068_v6, %v985_v46  ;;  %v3359_v46 = vsel %vm712_vm2, %v789_v47, %v791_v35 }
 0x145   : > { %2163 = vmatmul.msk.f32.gmra.mxu1 %vm357_vm1, %v3986_v1  ;;  %v1228_v53 = vpop.f32.mrf.mxu0 }
 0x146   : > { %v3344_v24 = vadd.f32 %v1225_v30, %v1138_v14  ;;  %2196 = vmatmul.msk.f32.gmra.mxu2 %vm357_vm1, %v3337_v4  ;;  %v1161_v30 = vrot.slane %v3351_v22, 1 }
 0x147   : > { %2229 = vmatmul.msk.f32.gmra.mxu3 %vm357_vm1, %v3330_v9 }
 0x148   : > { %3992 = vst [vmem:[#allocation20_spill] sm:$0xff] %v3344_v24  ;;  %2262 = vmatmul.msk.f32.gmra.mxu0 %vm357_vm1, %v3342_v11  ;;  %v3364_v15 = vsel %vm274_vm0, %v1159_v31, %v1161_v30 }
 0x149   : > { %v918_v1 = vpop.f32.mrf.mxu2 }
 0x14a   : > { %v1071_v6 = vpop.f32.mrf.mxu3  ;;  %v986_v14 = vadd.f32 %v918_v1, %v659_v36  ;;  %v661_v56 = vpop.f32.mrf.mxu1 }
 0x14b   : > { %v662_v33 = vadd.f32 %v661_v56, %v3092_v5 }
 0x14c   : > { %v1139_v24 = vadd.f32 %v1071_v6, %v986_v14 }
 0x14d   : > { %2164 = vmatmul.msk.f32.gmra.mxu1 %vm357_vm1, %v3990_v37  ;;  %v1231_v9 = vpop.f32.mrf.mxu0 }
 0x14e   : > { %v3366_v8 = vadd.f32 %v1228_v53, %v1139_v24  ;;  %2197 = vmatmul.msk.f32.gmra.mxu2 %vm357_vm1, %v3359_v46 }
 0x14f   : > { %2230 = vmatmul.msk.f32.gmra.mxu3 %vm357_vm1, %v3324_v38 }
 0x150   : > { %2263 = vmatmul.msk.f32.gmra.mxu0 %vm357_vm1, %v3364_v15 }
 0x151   : > { %v921_v47 = vpop.f32.mrf.mxu2 }
 0x152   : > { %v1074_v35 = vpop.f32.mrf.mxu3  ;;  %v987_v37 = vadd.f32 %v921_v47, %v662_v33  ;;  %v664_v36 = vpop.f32.mrf.mxu1 }
 0x153   : > { %v665_v5 = vadd.f32 %v664_v36, %v2965_v45 }
 0x154   : > { %v1140_v1 = vadd.f32 %v1074_v35, %v987_v37 }
 0x155   : > { %2265 = vmatmul.msk.f32.vlgmr.msra.gmra.mxu1 %vm357_vm1, %v2875_v28  ;;  %v1234_v24 = vpop.f32.mrf.mxu0 }
 0x156   : > { %v3377_v31 = vadd.f32 %v1231_v9, %v1140_v1  ;;  %2298 = vmatmul.msk.f32.vlgmr.msra.gmra.mxu2 %vm357_vm1, %v2684_v27 }
 0x157   : > { %2331 = vmatmul.msk.f32.vlgmr.msra.gmra.mxu3 %vm357_vm1, %v2718_v60 }
 0x158   : > { %2364 = vmatmul.msk.f32.vlgmr.msra.gmra.mxu0 %vm357_vm1, %v2900_v61 }
 0x159   : > { %v924_v53 = vpop.f32.mrf.mxu2 }
 0x15a   : > { %v1077_v6 = vpop.f32.mrf.mxu3  ;;  %v988_v30 = vadd.f32 %v924_v53, %v665_v5  ;;  %v667_v14 = vpop.f32.mrf.mxu1 }
 0x15b   : > { %v668_v27 = vadd.f32 %v667_v14, %v2986_v43 }
 0x15c   : > { %v1141_v56 = vadd.f32 %v1077_v6, %v988_v30 }
 0x15d   : > { %2266 = vmatmul.msk.f32.gmra.mxu1 %vm357_vm1, %v2887_v59  ;;  %v1237_v28 = vpop.f32.mrf.mxu0 }
 0x15e   : > { %v3388_v9 = vadd.f32 %v1234_v24, %v1141_v56  ;;  %2299 = vmatmul.msk.f32.gmra.mxu2 %vm357_vm1, %v2687_v29 }
 0x15f   : > { %2332 = vmatmul.msk.f32.gmra.mxu3 %vm357_vm1, %v2772_v25 }
 0x160   : > { %2365 = vmatmul.msk.f32.gmra.mxu0 %vm357_vm1, %v2912_v44 }
 0x161   : > { %v927_v60 = vpop.f32.mrf.mxu2 }
 0x162   : > { %v1080_v45 = vpop.f32.mrf.mxu3  ;;  %v989_v33 = vadd.f32 %v927_v60, %v668_v27  ;;  %v670_v47 = vpop.f32.mrf.mxu1 }
 0x163   : > { %v671_v29 = vadd.f32 %v670_v47, %v3006_v40  ;;  %v2413_v47 = vld [vmem:[%s2493_s27 + $0x68] sm:$0xff] }
 0x164   : > { %v1142_v35 = vadd.f32 %v1080_v45, %v989_v33 }
 0x165   : > { %2267 = vmatmul.msk.f32.gmra.mxu1 %vm357_vm1, %v2900_v61  ;;  %v1240_v59 = vpop.f32.mrf.mxu0 }
 0x166   : > { %v3399_v37 = vadd.f32 %v1237_v28, %v1142_v35  ;;  %2300 = vmatmul.msk.f32.gmra.mxu2 %vm357_vm1, %v2781_v63 }
 0x167   : > { %2333 = vmatmul.msk.f32.gmra.mxu3 %vm357_vm1, %v2818_v12 }
 0x168   : > { %2366 = vmatmul.msk.f32.gmra.mxu0 %vm357_vm1, %v2925_v62 }
 0x169   : > { %v930_v25 = vpop.f32.mrf.mxu2 }
 0x16a   : > { %v1083_v43 = vpop.f32.mrf.mxu3  ;;  %v990_v36 = vadd.f32 %v930_v25, %v671_v29  ;;  %v673_v1 = vpop.f32.mrf.mxu1 }
 0x16b   : > { %v674_v12 = vadd.f32 %v673_v1, %v3027_v16  ;;  %v3993_v16 = vld [vmem:[#allocation34_spill] sm:$0xff] }
 0x16c   : > { %v1143_v24 = vadd.f32 %v1083_v43, %v990_v36 }
 0x16d   : > { %2268 = vmatmul.msk.f32.gmra.mxu1 %vm357_vm1, %v2912_v44  ;;  %v1243_v61 = vpop.f32.mrf.mxu0 }
 0x16e   : > { %v3410_v5 = vadd.f32 %v1240_v59, %v1143_v24  ;;  %2301 = vmatmul.msk.f32.gmra.mxu2 %vm357_vm1, %v2784_v32  ;;  %v2412_v32 = vld [vmem:[%s2493_s27 + $0x60] sm:$0xff]  ;;  %v3996_v59 = vld [vmem:[#allocation36_spill] sm:$0xff] }
 0x16f   : > { %2334 = vmatmul.msk.f32.gmra.mxu3 %vm357_vm1, %v2845_v41 }
 0x170   : > { %2367 = vmatmul.msk.f32.gmra.mxu0 %vm357_vm1, %v2937_v55 }
 0x171   : > { %v933_v63 = vpop.f32.mrf.mxu2 }
 0x172   : > { %v1086_v40 = vpop.f32.mrf.mxu3  ;;  %v991_v53 = vadd.f32 %v933_v63, %v674_v12  ;;  %v676_v6 = vpop.f32.mrf.mxu1  ;;  %v3997_v12 = vld [vmem:[#allocation12_spill] sm:$0xff] }
 0x173   : > { %v677_v41 = vadd.f32 %v676_v6, %v3047_v42  ;;  %v3995_v42 = vld [vmem:[#allocation45_spill] sm:$0xff]  ;;  %v3998_v63 = vld [vmem:[#allocation48_spill] sm:$0xff] }
 0x174   : > { %v1144_v30 = vadd.f32 %v1086_v40, %v991_v53  ;;  %v3999_v53 = vld [vmem:[#allocation38_spill] sm:$0xff] }
 0x175   : > { %2269 = vmatmul.msk.f32.gmra.mxu1 %vm357_vm1, %v2925_v62  ;;  %v1246_v44 = vpop.f32.mrf.mxu0 }
 0x176   : > { %v3421_v14 = vadd.f32 %v1243_v61, %v1144_v30  ;;  %2302 = vmatmul.msk.f32.gmra.mxu2 %vm357_vm1, %v2412_v32  ;;  %v2414_v61 = vld [vmem:[%s2493_s27 + $0x78] sm:$0xff] }
 0x177   : > { %2335 = vmatmul.msk.f32.gmra.mxu3 %vm357_vm1, %v2526_v19  ;;  %v3994_v19 = vld [vmem:[#allocation7_spill] sm:$0xff] }
 0x178   : > { %2368 = vmatmul.msk.f32.gmra.mxu0 %vm357_vm1, %v3993_v16 }
 0x179   : > { %v936_v56 = vpop.f32.mrf.mxu2 }
 0x17a   : > { %v1089_v28 = vpop.f32.mrf.mxu3  ;;  %v992_v27 = vadd.f32 %v936_v56, %v677_v41  ;;  %v679_v60 = vpop.f32.mrf.mxu1 }
 0x17b   : > { %v680_v35 = vadd.f32 %v679_v60, %v3995_v42  ;;  %v4001_v60 = vld [vmem:[#allocation51_spill] sm:$0xff] }
 0x17c   : > { %v1145_v62 = vadd.f32 %v1089_v28, %v992_v27  ;;  %v2415_v28 = vld [vmem:[%s2493_s27 + $0x80] sm:$0xff]  ;;  %v4000_v27 = vld [vmem:[#allocation15_spill] sm:$0xff] }
 0x17d   : > { %2270 = vmatmul.msk.f32.gmra.mxu1 %vm357_vm1, %v2937_v55  ;;  %v1249_v45 = vpop.f32.mrf.mxu0 }
 0x17e   : > { %v3432_v33 = vadd.f32 %v1246_v44, %v1145_v62  ;;  %2303 = vmatmul.msk.f32.gmra.mxu2 %vm357_vm1, %v2413_v47 }
 0x17f   : > { %2336 = vmatmul.msk.f32.gmra.mxu3 %vm357_vm1, %v3994_v19 }
 0x180   : > { %2369 = vmatmul.msk.f32.gmra.mxu0 %vm357_vm1, %v3996_v59 }
 0x181   : > { %v939_v29 = vpop.f32.mrf.mxu2 }
 0x182   : > { %v1092_v25 = vpop.f32.mrf.mxu3  ;;  %v993_v43 = vadd.f32 %v939_v29, %v680_v35  ;;  %v682_v36 = vpop.f32.mrf.mxu1 }
 0x183   : > { %v683_v40 = vadd.f32 %v682_v36, %v3998_v63  ;;  %v4003_v36 = vld [vmem:[#allocation19_spill] sm:$0xff] }
 0x184   : > { %v1146_v55 = vadd.f32 %v1092_v25, %v993_v43  ;;  %v2416_v43 = vld [vmem:[%s2493_s27 + $0x90] sm:$0xff] }
 0x185   : > { %2271 = vmatmul.msk.f32.gmra.mxu1 %vm357_vm1, %v3993_v16  ;;  %v1252_v1 = vpop.f32.mrf.mxu0 }
 0x186   : > { %v3443_v24 = vadd.f32 %v1249_v45, %v1146_v55  ;;  %2304 = vmatmul.msk.f32.gmra.mxu2 %vm357_vm1, %v2414_v61  ;;  %v4002_v45 = vld [vmem:[#allocation40_spill] sm:$0xff]  ;;  %v4004_v55 = vld [vmem:[#allocation35_spill] sm:$0xff]  ;;  %v4005_v61 = vld [vmem:[#allocation42_spill] sm:$0xff] }
 0x187   : > { %2337 = vmatmul.msk.f32.gmra.mxu3 %vm357_vm1, %v3997_v12 }
 0x188   : > { %2370 = vmatmul.msk.f32.gmra.mxu0 %vm357_vm1, %v3999_v53 }
 0x189   : > { %v942_v6 = vpop.f32.mrf.mxu2 }
 0x18a   : > { %v1095_v30 = vpop.f32.mrf.mxu3  ;;  %v994_v44 = vadd.f32 %v942_v6, %v683_v40  ;;  %v685_v32 = vpop.f32.mrf.mxu1 }
 0x18b   : > { %v686_v62 = vadd.f32 %v685_v32, %v4001_v60  ;;  %v2417_v32 = vld [vmem:[%s2493_s27 + $0x98] sm:$0xff] }
 0x18c   : > { %v1147_v41 = vadd.f32 %v1095_v30, %v994_v44 }
 0x18d   : > { %2272 = vmatmul.msk.f32.gmra.mxu1 %vm357_vm1, %v3996_v59  ;;  %v1255_v16 = vpop.f32.mrf.mxu0 }
 0x18e   : > { %v3454_v56 = vadd.f32 %v1252_v1, %v1147_v41  ;;  %2305 = vmatmul.msk.f32.gmra.mxu2 %vm357_vm1, %v2415_v28  ;;  %v4006_v41 = vld [vmem:[#allocation23_spill] sm:$0xff] }
 0x18f   : > { %2338 = vmatmul.msk.f32.gmra.mxu3 %vm357_vm1, %v4000_v27  ;;  %v4008_v27 = vld [vmem:[#allocation44_spill] sm:$0xff] }
 0x190   : > { %2371 = vmatmul.msk.f32.gmra.mxu0 %vm357_vm1, %v4002_v45 }
 0x191   : > { %v945_v47 = vpop.f32.mrf.mxu2 }
 0x192   : > { %v1098_v19 = vpop.f32.mrf.mxu3  ;;  %v995_v42 = vadd.f32 %v945_v47, %v686_v62  ;;  %v688_v35 = vpop.f32.mrf.mxu1 }
 0x193   : > { %v689_v1 = vadd.f32 %v688_v35, %v4004_v55  ;;  %v4011_v55 = vld [vmem:[#allocation47_spill] sm:$0xff] }
 0x194   : > { %v1148_v59 = vadd.f32 %v1098_v19, %v995_v42 }
 0x195   : > { %2273 = vmatmul.msk.f32.gmra.mxu1 %vm357_vm1, %v3999_v53  ;;  %v1258_v29 = vpop.f32.mrf.mxu0 }
 0x196   : > { %v3465_v25 = vadd.f32 %v1255_v16, %v1148_v59  ;;  %2306 = vmatmul.msk.f32.gmra.mxu2 %vm357_vm1, %v2416_v43  ;;  %v4007_v16 = vld [vmem:[#allocation37_spill] sm:$0xff]  ;;  %v2418_v59 = vld [vmem:[%s2493_s27 + $0xa8] sm:$0xff] }
 0x197   : > { %2339 = vmatmul.msk.f32.gmra.mxu3 %vm357_vm1, %v4003_v36  ;;  %v4010_v43 = vld [vmem:[#allocation39_spill] sm:$0xff] }
 0x198   : > { %2372 = vmatmul.msk.f32.gmra.mxu0 %vm357_vm1, %v4005_v61 }
 0x199   : > { %v948_v12 = vpop.f32.mrf.mxu2 }
 0x19a   : > { %v1101_v63 = vpop.f32.mrf.mxu3  ;;  %v996_v40 = vadd.f32 %v948_v12, %v689_v1  ;;  %v691_v6 = vpop.f32.mrf.mxu1 }
 0x19b   : > { %v692_v28 = vadd.f32 %v691_v6, %v4007_v16 }
 0x19c   : > { %v1149_v53 = vadd.f32 %v1101_v63, %v996_v40 }
 0x19d   : > { %2274 = vmatmul.msk.f32.gmra.mxu1 %vm357_vm1, %v4002_v45  ;;  %v1261_v30 = vpop.f32.mrf.mxu0 }
 0x19e   : > { %v3476_v44 = vadd.f32 %v1258_v29, %v1149_v53  ;;  %2307 = vmatmul.msk.f32.gmra.mxu2 %vm357_vm1, %v2417_v32  ;;  %v4009_v29 = vld [vmem:[#allocation28_spill] sm:$0xff] }
 0x19f   : > { %2340 = vmatmul.msk.f32.gmra.mxu3 %vm357_vm1, %v4006_v41  ;;  %v4012_v32 = vld [vmem:[#allocation32_spill] sm:$0xff]  ;;  %v4013_v41 = vld [vmem:[#allocation41_spill] sm:$0xff] }
 0x1a0   : > { %2373 = vmatmul.msk.f32.gmra.mxu0 %vm357_vm1, %v4008_v27 }
 0x1a1   : > { %v951_v60 = vpop.f32.mrf.mxu2 }
 0x1a2   : > { %v1104_v62 = vpop.f32.mrf.mxu3  ;;  %v997_v47 = vadd.f32 %v951_v60, %v692_v28  ;;  %v694_v19 = vpop.f32.mrf.mxu1  ;;  %v4014_v28 = vld [vmem:[#allocation50_spill] sm:$0xff] }
 0x1a3   : > { %v695_v36 = vadd.f32 %v694_v19, %v4010_v43  ;;  %v4016_v43 = vld [vmem:[#allocation43_spill] sm:$0xff] }
 0x1a4   : > { %v1150_v45 = vadd.f32 %v1104_v62, %v997_v47 }
 0x1a5   : > { %2275 = vmatmul.msk.f32.gmra.mxu1 %vm357_vm1, %v4005_v61  ;;  %v1264_v42 = vpop.f32.mrf.mxu0 }
 0x1a6   : > { %v3487_v35 = vadd.f32 %v1261_v30, %v1150_v45  ;;  %2308 = vmatmul.msk.f32.gmra.mxu2 %vm357_vm1, %v2418_v59  ;;  %v2419_v30 = vld [vmem:[%s2493_s27 + $0xb0] sm:$0xff]  ;;  %v2420_v59 = vld [vmem:[%s2493_s27 + $0xc0] sm:$0xff] }
 0x1a7   : > { %2341 = vmatmul.msk.f32.gmra.mxu3 %vm357_vm1, %v4009_v29  ;;  %v4015_v29 = vld [vmem:[#allocation4_spill] sm:$0xff] }
 0x1a8   : > { %2374 = vmatmul.msk.f32.gmra.mxu0 %vm357_vm1, %v4011_v55 }
 0x1a9   : > { %v954_v1 = vpop.f32.mrf.mxu2 }
 0x1aa   : > { %v1107_v12 = vpop.f32.mrf.mxu3  ;;  %v998_v63 = vadd.f32 %v954_v1, %v695_v36  ;;  %v697_v40 = vpop.f32.mrf.mxu1  ;;  %v4017_v1 = vld [vmem:[#allocation53_spill] sm:$0xff] }
 0x1ab   : > { %v698_v16 = vadd.f32 %v697_v40, %v4013_v41  ;;  %v4018_v41 = vld [vmem:[#allocation8_spill] sm:$0xff] }
 0x1ac   : > { %v1151_v61 = vadd.f32 %v1107_v12, %v998_v63 }
 0x1ad   : > { %2276 = vmatmul.msk.f32.gmra.mxu1 %vm357_vm1, %v4008_v27  ;;  %v1267_v6 = vpop.f32.mrf.mxu0 }
 0x1ae   : > { %v3498_v53 = vadd.f32 %v1264_v42, %v1151_v61  ;;  %2309 = vmatmul.msk.f32.gmra.mxu2 %vm357_vm1, %v2419_v30 }
 0x1af   : > { %2342 = vmatmul.msk.f32.gmra.mxu3 %vm357_vm1, %v4012_v32  ;;  %v2421_v32 = vld [vmem:[%s2493_s27 + $0xc8] sm:$0xff] }
 0x1b0   : > { %2375 = vmatmul.msk.f32.gmra.mxu0 %vm357_vm1, %v4014_v28 }
 0x1b1   : > { %v957_v60 = vpop.f32.mrf.mxu2 }
 0x1b2   : > { %v1110_v62 = vpop.f32.mrf.mxu3  ;;  %v999_v47 = vadd.f32 %v957_v60, %v698_v16  ;;  %v700_v19 = vpop.f32.mrf.mxu1  ;;  %v4019_v16 = vld [vmem:[#allocation46_spill] sm:$0xff] }
 0x1b3   : > { %v701_v36 = vadd.f32 %v700_v19, %v4016_v43  ;;  %v4020_v43 = vld [vmem:[#allocation49_spill] sm:$0xff] }
 0x1b4   : > { %v1152_v27 = vadd.f32 %v1110_v62, %v999_v47 }
 0x1b5   : > { %2277 = vmatmul.msk.f32.gmra.mxu1 %vm357_vm1, %v4011_v55  ;;  %v1270_v45 = vpop.f32.mrf.mxu0 }
 0x1b6   : > { %v3509_v42 = vadd.f32 %v1267_v6, %v1152_v27  ;;  %2310 = vmatmul.msk.f32.gmra.mxu2 %vm357_vm1, %v2420_v59 }
 0x1b7   : > { %2343 = vmatmul.msk.f32.gmra.mxu3 %vm357_vm1, %v4015_v29  ;;  %v2422_v29 = vld [vmem:[%s2493_s27 + $0xd8] sm:$0xff] }
 0x1b8   : > { %2376 = vmatmul.msk.f32.gmra.mxu0 %vm357_vm1, %v4017_v1 }
 0x1b9   : > { %v960_v12 = vpop.f32.mrf.mxu2 }
 0x1ba   : > { %v1113_v63 = vpop.f32.mrf.mxu3  ;;  %v1000_v40 = vadd.f32 %v960_v12, %v701_v36  ;;  %v703_v61 = vpop.f32.mrf.mxu1 }
 0x1bb   : > { %v704_v60 = vadd.f32 %v703_v61, %v4019_v16 }
 0x1bc   : > { %v1153_v55 = vadd.f32 %v1113_v63, %v1000_v40 }
 0x1bd   : > { %2278 = vmatmul.msk.f32.gmra.mxu1 %vm357_vm1, %v4014_v28  ;;  %v1273_v6 = vpop.f32.mrf.mxu0 }
 0x1be   : > { %v3520_v30 = vadd.f32 %v1270_v45, %v1153_v55  ;;  %2311 = vmatmul.msk.f32.gmra.mxu2 %vm357_vm1, %v2421_v32  ;;  %v2423_v32 = vld [vmem:[%s2493_s27 + $0xe0] sm:$0xff] }
 0x1bf   : > { %2344 = vmatmul.msk.f32.gmra.mxu3 %vm357_vm1, %v4018_v41 }
 0x1c0   : > { %2377 = vmatmul.msk.f32.gmra.mxu0 %vm357_vm1, %v3127_v7 }
 0x1c1   : > { %v963_v62 = vpop.f32.mrf.mxu2 }
 0x1c2   : > { %v1116_v47 = vpop.f32.mrf.mxu3  ;;  %v1001_v19 = vadd.f32 %v963_v62, %v704_v60  ;;  %v706_v27 = vpop.f32.mrf.mxu1 }
 0x1c3   : > { %v707_v36 = vadd.f32 %v706_v27, %v4020_v43 }
 0x1c4   : > { %v1154_v28 = vadd.f32 %v1116_v47, %v1001_v19 }
 0x1c5   : > { %2279 = vmatmul.msk.f32.gmra.mxu1 %vm357_vm1, %v4017_v1  ;;  %v1276_v45 = vpop.f32.mrf.mxu0 }
 0x1c6   : > { %v3531_v59 = vadd.f32 %v1273_v6, %v1154_v28  ;;  %2312 = vmatmul.msk.f32.gmra.mxu2 %vm357_vm1, %v2422_v29  ;;  %v2424_v28 = vld [vmem:[%s2493_s27 + $0xf0] sm:$0xff] }
 0x1c7   : > { %2345 = vmatmul.msk.f32.gmra.mxu3 %vm357_vm1, %v2613_v54  ;;  %v4021_v54 = vld [vmem:[#allocation52_spill] sm:$0xff] }
 0x1c8   : > { %2378 = vmatmul.msk.f32.gmra.mxu0 %vm357_vm1, %v3143_v52 }
 0x1c9   : > { %v966_v12 = vpop.f32.mrf.mxu2 }
 0x1ca   : > { %v1119_v63 = vpop.f32.mrf.mxu3  ;;  %v1002_v40 = vadd.f32 %v966_v12, %v707_v36  ;;  %v709_v61 = vpop.f32.mrf.mxu1  ;;  %v3565_v12 = vld [vmem:[%s3827_s2] ss:$0 sm:$0xff] }
 0x1cb   : > { %v710_v41 = vadd.f32 %v709_v61, %v4021_v54 }
 0x1cc   : > { %v1155_v1 = vadd.f32 %v1119_v63, %v1002_v40 }
 0x1cd   : > { %2280 = vmatmul.msk.f32.gmra.mxu1 %vm357_vm1, %v3127_v7  ;;  %v1279_v55 = vpop.f32.mrf.mxu0 }
 0x1ce   : > { %v3542_v6 = vadd.f32 %v1276_v45, %v1155_v1  ;;  %2313 = vmatmul.msk.f32.gmra.mxu2 %vm357_vm1, %v2423_v32 }
 0x1cf   : > { %2346 = vmatmul.msk.f32.gmra.mxu3 %vm357_vm1, %v2649_v2 }
 0x1d0   : > { %2379 = vmatmul.msk.f32.gmra.mxu0 %vm357_vm1, %v3158_v23 }
 0x1d1   : > { %v969_v16 = vpop.f32.mrf.mxu2 }
 0x1d2   : > { %v1122_v60 = vpop.f32.mrf.mxu3  ;;  %v1003_v62 = vadd.f32 %v969_v16, %v710_v41  ;;  %v1342_v47 = vpop.f32.mrf.mxu1  ;;  %v2426_v16 = vld [vmem:[%s2493_s27 + $0x108] sm:$0xff] }
 0x1d3   : > { %v1438_v2 = vadd.f32 %v1342_v47, %v3131_v18  ;;  %v2425_v18 = vld [vmem:[%s2493_s27 + $0xf8] sm:$0xff] }
 0x1d4   : > { %v1156_v7 = vadd.f32 %v1122_v60, %v1003_v62 }
 0x1d5   : > { %2281 = vmatmul.msk.f32.gmra.mxu1 %vm357_vm1, %v3143_v52  ;;  %v1808_v19 = vpop.f32.mrf.mxu0 }
 0x1d6   : > { %v3553_v27 = vadd.f32 %v1279_v55, %v1156_v7  ;;  %2314 = vmatmul.msk.f32.gmra.mxu2 %vm357_vm1, %v2424_v28 }
 0x1d7   : > { %2347 = vmatmul.msk.f32.gmra.mxu3 %vm357_vm1, %v2701_v48 }
 0x1d8   : > { %2380 = vmatmul.msk.f32.gmra.mxu0 %vm357_vm1, %v3174_v26 }
 0x1d9   : > { %v1495_v45 = vpop.f32.mrf.mxu2 }
 0x1da   : > { %v1652_v29 = vpop.f32.mrf.mxu3  ;;  %v1591_v43 = vadd.f32 %v1495_v45, %v1438_v2  ;;  %v1345_v52 = vpop.f32.mrf.mxu1 }
 0x1db   : > { %v1439_v40 = vadd.f32 %v1345_v52, %v3147_v0 }
 0x1dc   : > { %v1748_v36 = vadd.f32 %v1652_v29, %v1591_v43  ;;  %v4022_v29 = vld [vmem:[#allocation54_spill] sm:$0xff] }
 0x1dd   : > { %2282 = vmatmul.msk.f32.gmra.mxu1 %vm357_vm1, %v3158_v23  ;;  %v1811_v63 = vpop.f32.mrf.mxu0 }
 0x1de   : > { %v1904_v48 = vadd.f32 %v1808_v19, %v1748_v36  ;;  %2315 = vmatmul.msk.f32.gmra.mxu2 %vm357_vm1, %v2425_v18 }
 0x1df   : > { %2348 = vmatmul.msk.f32.gmra.mxu3 %vm357_vm1, %v2746_v58 }
 0x1e0   : > { %v1940_v61 = vadd.f32 %v3565_v12, %v1904_v48  ;;  %2381 = vmatmul.msk.f32.gmra.mxu0 %vm357_vm1, %v3189_v10 }
 0x1e1   : > { %v1498_v23 = vpop.f32.mrf.mxu2 }
 0x1e2   : > { %v1655_v1 = vpop.f32.mrf.mxu3  ;;  %v1972_v55 = vmax.f32 %v1940_v61, 0.0  ;;  %v1592_v32 = vadd.f32 %v1498_v23, %v1439_v40  ;;  %v1348_v58 = vpop.f32.mrf.mxu1  ;;  %v2428_v23 = vld [vmem:[%s2493_s27 + $0x120] sm:$0xff] }
 0x1e3   : > { %v1440_v60 = vadd.f32 %v1348_v58, %v3162_v50  ;;  %v2427_v50 = vld [vmem:[%s2493_s27 + $0x110] sm:$0xff]  ;;  %v4024_v58 = vld [vmem:[#allocation2_spill] sm:$0xff] }
 0x1e4   : > { %2005 = vst.msk [vmem:[%s3581_s16] sm:$0xff] %vm2004_vm3, %v1972_v55  ;;  %v1749_v0 = vadd.f32 %v1655_v1, %v1592_v32  ;;  %v4023_v1 = vld [vmem:[#allocation21_spill] sm:$0xff] }
 0x1e5   : > { %2283 = vmatmul.msk.f32.gmra.mxu1 %vm357_vm1, %v3174_v26  ;;  %v1814_v54 = vpop.f32.mrf.mxu0 }
 0x1e6   : > { %v1905_v41 = vadd.f32 %v1811_v63, %v1749_v0  ;;  %2316 = vmatmul.msk.f32.gmra.mxu2 %vm357_vm1, %v2426_v16 }
 0x1e7   : > { %2349 = vmatmul.msk.f32.gmra.mxu3 %vm357_vm1, %v3958_v17 }
 0x1e8   : > { %v1941_v62 = vadd.f32 %v3565_v12, %v1905_v41  ;;  %2382 = vmatmul.msk.f32.gmra.mxu0 %vm357_vm1, %v3205_v57 }
 0x1e9   : > { %v1501_v47 = vpop.f32.mrf.mxu2 }
 0x1ea   : > { %v1658_v7 = vpop.f32.mrf.mxu3  ;;  %v1973_v19 = vmax.f32 %v1941_v62, 0.0  ;;  %v1593_v26 = vadd.f32 %v1501_v47, %v1440_v60  ;;  %v1351_v28 = vpop.f32.mrf.mxu1  ;;  %v2429_v47 = vld [vmem:[%s2493_s27 + $0x128] sm:$0xff] }
 0x1eb   : > { %v1441_v43 = vadd.f32 %v1351_v28, %v4022_v29 }
 0x1ec   : > { %2006 = vst.msk [vmem:[%s3581_s16 + $0x8] sm:$0xff] %vm2004_vm3, %v1973_v19  ;;  %v1750_v2 = vadd.f32 %v1658_v7, %v1593_v26  ;;  %v4025_v7 = vld [vmem:[#allocation9_spill] sm:$0xff] }
 0x1ed   : > { %2284 = vmatmul.msk.f32.gmra.mxu1 %vm357_vm1, %v3189_v10  ;;  %v1817_v17 = vpop.f32.mrf.mxu0  ;;  %v4026_v19 = vld [vmem:[#allocation29_spill] sm:$0xff] }
 0x1ee   : > { %v1906_v45 = vadd.f32 %v1814_v54, %v1750_v2  ;;  %2317 = vmatmul.msk.f32.gmra.mxu2 %vm357_vm1, %v2427_v50 }
 0x1ef   : > { %2350 = vmatmul.msk.f32.gmra.mxu3 %vm357_vm1, %v2837_v13 }
 0x1f0   : > { %v1942_v52 = vadd.f32 %v3565_v12, %v1906_v45  ;;  %2383 = vmatmul.msk.f32.gmra.mxu0 %vm357_vm1, %v3220_v51 }
 0x1f1   : > { %v1504_v36 = vpop.f32.mrf.mxu2 }
 0x1f2   : > { %v1661_v63 = vpop.f32.mrf.mxu3  ;;  %v1974_v48 = vmax.f32 %v1942_v52, 0.0  ;;  %v1594_v10 = vadd.f32 %v1504_v36, %v1441_v43  ;;  %v1354_v18 = vpop.f32.mrf.mxu1  ;;  %v2430_v36 = vld [vmem:[%s2493_s27 + $0x138] sm:$0xff] }
 0x1f3   : > { %v1442_v55 = vadd.f32 %v1354_v18, %v4023_v1  ;;  %v4028_v18 = vld [vmem:[#allocation3_spill] sm:$0xff] }
 0x1f4   : > { %2007 = vst.msk [vmem:[%s3581_s16 + $0x10] sm:$0xff] %vm2004_vm3, %v1974_v48  ;;  %v1751_v40 = vadd.f32 %v1661_v63, %v1594_v10  ;;  %v4027_v63 = vld [vmem:[#allocation25_spill] sm:$0xff] }
 0x1f5   : > { %2285 = vmatmul.msk.f32.gmra.mxu1 %vm357_vm1, %v3205_v57  ;;  %v1820_v13 = vpop.f32.mrf.mxu0 }
 0x1f6   : > { %v1907_v61 = vadd.f32 %v1817_v17, %v1751_v40  ;;  %2318 = vmatmul.msk.f32.gmra.mxu2 %vm357_vm1, %v2428_v23 }
 0x1f7   : > { %2351 = vmatmul.msk.f32.gmra.mxu3 %vm357_vm1, %v3964_v34 }
 0x1f8   : > { %v1943_v32 = vadd.f32 %v3565_v12, %v1907_v61  ;;  %2384 = vmatmul.msk.f32.gmra.mxu0 %vm357_vm1, %v4024_v58 }
 0x1f9   : > { %v1507_v0 = vpop.f32.mrf.mxu2 }
 0x1fa   : > { %v1664_v54 = vpop.f32.mrf.mxu3  ;;  %v1975_v41 = vmax.f32 %v1943_v32, 0.0  ;;  %v1595_v57 = vadd.f32 %v1507_v0, %v1442_v55  ;;  %v1357_v16 = vpop.f32.mrf.mxu1  ;;  %v4029_v0 = vld [vmem:[#allocation16_spill] sm:$0xff] }
 0x1fb   : > { %v1443_v26 = vadd.f32 %v1357_v16, %v4026_v19 }
 0x1fc   : > { %2008 = vst.msk [vmem:[%s3581_s16 + $0x18] sm:$0xff] %vm2004_vm3, %v1975_v41  ;;  %v1752_v60 = vadd.f32 %v1664_v54, %v1595_v57  ;;  %v4030_v54 = vld [vmem:[#allocation31_spill] sm:$0xff] }
 0x1fd   : > { %2286 = vmatmul.msk.f32.gmra.mxu1 %vm357_vm1, %v3220_v51  ;;  %v1823_v34 = vpop.f32.mrf.mxu0 }
 0x1fe   : > { %v1908_v62 = vadd.f32 %v1820_v13, %v1752_v60  ;;  %2319 = vmatmul.msk.f32.gmra.mxu2 %vm357_vm1, %v2429_v47 }
 0x1ff   : > { %2352 = vmatmul.msk.f32.gmra.mxu3 %vm357_vm1, %v4025_v7 }
 0x200   : > { %v1944_v28 = vadd.f32 %v3565_v12, %v1908_v62  ;;  %2385 = vmatmul.msk.f32.gmra.mxu0 %vm357_vm1, %v3251_v39 }
 0x201   : > { %v1510_v2 = vpop.f32.mrf.mxu2 }
 0x202   : > { %v1667_v17 = vpop.f32.mrf.mxu3  ;;  %v1976_v45 = vmax.f32 %v1944_v28, 0.0  ;;  %v1596_v51 = vadd.f32 %v1510_v2, %v1443_v26  ;;  %v1360_v50 = vpop.f32.mrf.mxu1  ;;  %v2432_v26 = vld [vmem:[%s2493_s27 + $0x150] sm:$0xff]  ;;  %v4031_v28 = vld [vmem:[#allocation5_spill] sm:$0xff] }
 0x203   : > { %v1444_v48 = vadd.f32 %v1360_v50, %v4027_v63 }
 0x204   : > { %2009 = vst.msk [vmem:[%s3581_s16 + $0x20] sm:$0xff] %vm2004_vm3, %v1976_v45  ;;  %v1753_v29 = vadd.f32 %v1667_v17, %v1596_v51  ;;  %v4032_v45 = vld [vmem:[#allocation13_spill] sm:$0xff] }
 0x205   : > { %2287 = vmatmul.msk.f32.gmra.mxu1 %vm357_vm1, %v4024_v58  ;;  %v1826_v43 = vpop.f32.mrf.mxu0  ;;  %v2431_v58 = vld [vmem:[%s2493_s27 + $0x140] sm:$0xff] }
 0x206   : > { %v1909_v52 = vadd.f32 %v1823_v34, %v1753_v29  ;;  %2320 = vmatmul.msk.f32.gmra.mxu2 %vm357_vm1, %v2430_v36 }
 0x207   : > { %2353 = vmatmul.msk.f32.gmra.mxu3 %vm357_vm1, %v3972_v21 }
 0x208   : > { %v1945_v10 = vadd.f32 %v3565_v12, %v1909_v52  ;;  %2386 = vmatmul.msk.f32.gmra.mxu0 %vm357_vm1, %v4028_v18 }
 0x209   : > { %v1513_v40 = vpop.f32.mrf.mxu2 }
 0x20a   : > { %v1670_v13 = vpop.f32.mrf.mxu3  ;;  %v1977_v61 = vmax.f32 %v1945_v10, 0.0  ;;  %v1597_v23 = vadd.f32 %v1513_v40, %v1444_v48  ;;  %v1363_v1 = vpop.f32.mrf.mxu1  ;;  %v2433_v48 = vld [vmem:[%s2493_s27 + $0x158] sm:$0xff]  ;;  %v4033_v10 = vld [vmem:[#allocation24_spill] sm:$0xff] }
 0x20b   : > { %v1445_v41 = vadd.f32 %v1363_v1, %v4030_v54  ;;  %v4035_v54 = vld [vmem:[#allocation30_spill] sm:$0xff] }
 0x20c   : > { %2010 = vst.msk [vmem:[%s3581_s16 + $0x28] sm:$0xff] %vm2004_vm3, %v1977_v61  ;;  %v1754_v55 = vadd.f32 %v1670_v13, %v1597_v23 }
 0x20d   : > { %2288 = vmatmul.msk.f32.gmra.mxu1 %vm357_vm1, %v3251_v39  ;;  %v1829_v21 = vpop.f32.mrf.mxu0 }
 0x20e   : > { %v1910_v32 = vadd.f32 %v1826_v43, %v1754_v55  ;;  %2321 = vmatmul.msk.f32.gmra.mxu2 %vm357_vm1, %v2431_v58 }
 0x20f   : > { %2354 = vmatmul.msk.f32.gmra.mxu3 %vm357_vm1, %v4029_v0  ;;  %v2434_v0 = vld [vmem:[%s2493_s27 + $0x168] sm:$0xff] }
 0x210   : > { %v1946_v57 = vadd.f32 %v3565_v12, %v1910_v32  ;;  %2387 = vmatmul.msk.f32.gmra.mxu0 %vm357_vm1, %v3282_v20 }
 0x211   : > { %v1516_v16 = vpop.f32.mrf.mxu2 }
 0x212   : > { %v1673_v60 = vpop.f32.mrf.mxu3  ;;  %v1978_v34 = vmax.f32 %v1946_v57, 0.0  ;;  %v1598_v39 = vadd.f32 %v1516_v16, %v1445_v41  ;;  %v1366_v62 = vpop.f32.mrf.mxu1  ;;  %v4036_v41 = vld [vmem:[#allocation6_spill] sm:$0xff] }
 0x213   : > { %v1446_v2 = vadd.f32 %v1366_v62, %v4031_v28  ;;  %v2435_v28 = vld [vmem:[%s2493_s27 + $0x170] sm:$0xff] }
 0x214   : > { %2011 = vst.msk [vmem:[%s3581_s16 + $0x30] sm:$0xff] %vm2004_vm3, %v1978_v34  ;;  %v1755_v47 = vadd.f32 %v1673_v60, %v1598_v39 }
 0x215   : > { %2289 = vmatmul.msk.f32.gmra.mxu1 %vm357_vm1, %v4028_v18  ;;  %v1832_v7 = vpop.f32.mrf.mxu0  ;;  %v4034_v18 = vld [vmem:[#allocation10_spill] sm:$0xff] }
 0x216   : > { %v1911_v19 = vadd.f32 %v1829_v21, %v1755_v47  ;;  %2322 = vmatmul.msk.f32.gmra.mxu2 %vm357_vm1, %v2432_v26 }
 0x217   : > { %2355 = vmatmul.msk.f32.gmra.mxu3 %vm357_vm1, %v3980_v49 }
 0x218   : > { %v1947_v17 = vadd.f32 %v3565_v12, %v1911_v19  ;;  %2388 = vmatmul.msk.f32.gmra.mxu0 %vm357_vm1, %v4032_v45 }
 0x219   : > { %v1519_v51 = vpop.f32.mrf.mxu2 }
 0x21a   : > { %v1676_v50 = vpop.f32.mrf.mxu3  ;;  %v1979_v29 = vmax.f32 %v1947_v17, 0.0  ;;  %v1599_v43 = vadd.f32 %v1519_v51, %v1446_v2  ;;  %v1369_v52 = vpop.f32.mrf.mxu1  ;;  %v4037_v2 = vld [vmem:[#allocation33_spill] sm:$0xff]  ;;  %v4038_v17 = vld [vmem:[#allocation11_spill] sm:$0xff] }
 0x21b   : > { %v1447_v40 = vadd.f32 %v1369_v52, %v4034_v18 }
 0x21c   : > { %2012 = vst.msk [vmem:[%s3581_s16 + $0x38] sm:$0xff] %vm2004_vm3, %v1979_v29  ;;  %v1756_v36 = vadd.f32 %v1676_v50, %v1599_v43  ;;  %v4039_v50 = vld [vmem:[#allocation14_spill] sm:$0xff] }
 0x21d   : > { %2290 = vmatmul.msk.f32.gmra.mxu1 %vm357_vm1, %v3282_v20  ;;  %v1835_v49 = vpop.f32.mrf.mxu0  ;;  %v1314_v29 = vrot.slane %v4039_v50, 2 }
 0x21e   : > { %v1912_v63 = vadd.f32 %v1832_v7, %v1756_v36  ;;  %2323 = vmatmul.msk.f32.gmra.mxu2 %vm357_vm1, %v2433_v48 }
 0x21f   : > { %2356 = vmatmul.msk.f32.gmra.mxu3 %vm357_vm1, %v4033_v10 }
 0x220   : > { %v1948_v13 = vadd.f32 %v3565_v12, %v1912_v63  ;;  %2389 = vmatmul.msk.f32.gmra.mxu0 %vm357_vm1, %v3313_v3 }
 0x221   : > { %v1522_v61 = vpop.f32.mrf.mxu2 }
 0x222   : > { %v1679_v23 = vpop.f32.mrf.mxu3  ;;  %v1980_v1 = vmax.f32 %v1948_v13, 0.0  ;;  %v1600_v20 = vadd.f32 %v1522_v61, %v1447_v40  ;;  %v1372_v55 = vpop.f32.mrf.mxu1  ;;  %v4040_v13 = vld [vmem:[#allocation17_spill] sm:$0xff] }
 0x223   : > { %v1448_v57 = vadd.f32 %v1372_v55, %v4036_v41 }
 0x224   : > { %2013 = vst.msk [vmem:[%s3581_s16 + $0x40] sm:$0xff] %vm2004_vm3, %v1980_v1  ;;  %v1757_v21 = vadd.f32 %v1679_v23, %v1600_v20  ;;  %v1317_v20 = vrot.slane %v3351_v22, 2 }
 0x225   : > { %2291 = vmatmul.msk.f32.gmra.mxu1 %vm357_vm1, %v4032_v45  ;;  %v1838_v32 = vpop.f32.mrf.mxu0 }
 0x226   : > { %v1913_v58 = vadd.f32 %v1835_v49, %v1757_v21  ;;  %2324 = vmatmul.msk.f32.gmra.mxu2 %vm357_vm1, %v2434_v0  ;;  %v222_v0 = vld [vmem:[%s2493_s27 + $0x198] sm:$0xff] }
 0x227   : > { %2357 = vmatmul.msk.f32.gmra.mxu3 %vm357_vm1, %v4035_v54  ;;  %v223_v54 = vld [vmem:[%s2493_s27 + $0x1a0] sm:$0xff]  ;;  %v1624_v22 = vrot.slane %v222_v0, 1 }
 0x228   : > { %v1949_v16 = vadd.f32 %v3565_v12, %v1913_v58  ;;  %2390 = vmatmul.msk.f32.gmra.mxu0 %vm357_vm1, %v3337_v4 }
 0x229   : > { %v1525_v60 = vpop.f32.mrf.mxu2 }
 0x22a   : > { %v1682_v34 = vpop.f32.mrf.mxu3  ;;  %v1981_v39 = vmax.f32 %v1949_v16, 0.0  ;;  %v1601_v62 = vadd.f32 %v1525_v60, %v1448_v57  ;;  %v1375_v47 = vpop.f32.mrf.mxu1  ;;  %v1625_v16 = vrot.slane %v223_v54, 1  ;;  %v4041_v60 = vld [vmem:[#allocation20_spill] sm:$0xff] }
 0x22b   : > { %v1449_v45 = vadd.f32 %v1375_v47, %v4038_v17  ;;  %v1780_v47 = vrot.slane %v222_v0, 2 }
 0x22c   : > { %2014 = vst.msk [vmem:[%s3581_s16 + $0x48] sm:$0xff] %vm2004_vm3, %v1981_v39  ;;  %v1758_v7 = vadd.f32 %v1682_v34, %v1601_v62 }
 0x22d   : > { %2292 = vmatmul.msk.f32.gmra.mxu1 %vm357_vm1, %v3313_v3  ;;  %v1841_v19 = vpop.f32.mrf.mxu0  ;;  %v1315_v3 = vrot.slane %v3324_v38, 2 }
 0x22e   : > { %v1914_v26 = vadd.f32 %v1838_v32, %v1758_v7  ;;  %2325 = vmatmul.msk.f32.gmra.mxu2 %vm357_vm1, %v2435_v28  ;;  %v1781_v7 = vrot.slane %v223_v54, 2 }
 0x22f   : > { %2358 = vmatmul.msk.f32.gmra.mxu3 %vm357_vm1, %v4037_v2  ;;  %v1316_v18 = vsel %vm712_vm2, %v1314_v29, %v1315_v3  ;;  %v1318_v41 = vsel %vm712_vm2, %v1315_v3, %v1317_v20  ;;  %v224_v2 = vld [vmem:[%s2493_s27 + $0x1a8] sm:$0x3] }
 0x230   : > { %v1950_v51 = vadd.f32 %v3565_v12, %v1914_v26  ;;  %2391 = vmatmul.msk.f32.gmra.mxu0 %vm357_vm1, %v3359_v46 }
 0x231   : > { %v1528_v43 = vpop.f32.mrf.mxu2 }
 0x232   : > { %v1685_v52 = vpop.f32.mrf.mxu3  ;;  %v1982_v36 = vmax.f32 %v1950_v51, 0.0  ;;  %v1602_v49 = vadd.f32 %v1528_v43, %v1449_v45  ;;  %v1378_v63 = vpop.f32.mrf.mxu1  ;;  %v1782_v45 = vsel %vm712_vm2, %v1780_v47, %v1781_v7 }
 0x233   : > { %v1450_v61 = vadd.f32 %v1378_v63, %v4040_v13 }
 0x234   : > { %2015 = vst.msk [vmem:[%s3581_s16 + $0x50] sm:$0xff] %vm2004_vm3, %v1982_v36  ;;  %v1759_v48 = vadd.f32 %v1685_v52, %v1602_v49  ;;  %v1783_v36 = vrot.slane %v224_v2, 2 }
 0x235   : > { %2293 = vmatmul.msk.f32.gmra.mxu1 %vm357_vm1, %v3337_v4  ;;  %v1844_v10 = vpop.f32.mrf.mxu0 }
 0x236   : > { %v1915_v40 = vadd.f32 %v1841_v19, %v1759_v48  ;;  %2326 = vmatmul.msk.f32.gmra.mxu2 %vm357_vm1, %v4039_v50  ;;  %v1627_v50 = vrot.slane %v224_v2, 1 }
 0x237   : > { %2359 = vmatmul.msk.f32.gmra.mxu3 %vm357_vm1, %v3342_v11 }
 0x238   : > { %v1951_v23 = vadd.f32 %v3565_v12, %v1915_v40  ;;  %2392 = vmatmul.msk.f32.gmra.mxu0 %vm357_vm1, %v1316_v18 }
 0x239   : > { %v1531_v1 = vpop.f32.mrf.mxu2 }
 0x23a   : > { %v1688_v4 = vpop.f32.mrf.mxu3  ;;  %v1983_v55 = vmax.f32 %v1951_v23, 0.0  ;;  %v1603_v21 = vadd.f32 %v1531_v1, %v1450_v61  ;;  %v1381_v32 = vpop.f32.mrf.mxu1 }
 0x23b   : > { %v1451_v34 = vadd.f32 %v1381_v32, %v4041_v60 }
 0x23c   : > { %2016 = vst.msk [vmem:[%s3581_s16 + $0x58] sm:$0xff] %vm2004_vm3, %v1983_v55  ;;  %v1760_v58 = vadd.f32 %v1688_v4, %v1603_v21 }
 0x23d   : > { %2294 = vmatmul.msk.f32.gmra.mxu1 %vm357_vm1, %v3359_v46  ;;  %v1847_v11 = vpop.f32.mrf.mxu0 }
 0x23e   : > { %v1916_v57 = vadd.f32 %v1844_v10, %v1760_v58  ;;  %2327 = vmatmul.msk.f32.gmra.mxu2 %vm357_vm1, %v3324_v38  ;;  %v1626_v38 = vsel %vm274_vm0, %v1624_v22, %v1625_v16  ;;  %v1628_v10 = vsel %vm274_vm0, %v1625_v16, %v1627_v50 }
 0x23f   : > { %2360 = vmatmul.msk.f32.gmra.mxu3 %vm357_vm1, %v3364_v15 }
 0x240   : > { %v1952_v39 = vadd.f32 %v3565_v12, %v1916_v57  ;;  %2393 = vmatmul.msk.f32.gmra.mxu0 %vm357_vm1, %v1318_v41 }
 0x241   : > { %v1534_v46 = vpop.f32.mrf.mxu2 }
 0x242   : > { %v1691_v62 = vpop.f32.mrf.mxu3  ;;  %v1984_v19 = vmax.f32 %v1952_v39, 0.0  ;;  %v1604_v26 = vadd.f32 %v1534_v46, %v1451_v34  ;;  %v1384_v28 = vpop.f32.mrf.mxu1 }
 0x243   : > { %v1452_v29 = vadd.f32 %v1384_v28, %v3366_v8  ;;  %v1784_v8 = vsel %vm712_vm2, %v1781_v7, %v1783_v36 }
 0x244   : > { %2017 = vst.msk [vmem:[%s3581_s16 + $0x60] sm:$0xff] %vm2004_vm3, %v1984_v19  ;;  %v1761_v15 = vadd.f32 %v1691_v62, %v1604_v26 }
 0x245   : > { %2295 = vmatmul.msk.f32.gmra.mxu1 %vm357_vm1, %v1316_v18  ;;  %v1850_v17 = vpop.f32.mrf.mxu0 }
 0x246   : > { %v1917_v51 = vadd.f32 %v1847_v11, %v1761_v15  ;;  %2328 = vmatmul.msk.f32.gmra.mxu2 %vm357_vm1, %v222_v0 }
 0x247   : > { %2361 = vmatmul.msk.f32.gmra.mxu3 %vm357_vm1, %v1626_v38 }
 0x248   : > { %v1953_v3 = vadd.f32 %v3565_v12, %v1917_v51  ;;  %2394 = vmatmul.msk.f32.gmra.mxu0 %vm357_vm1, %v1782_v45 }
 0x249   : > { %v1537_v43 = vpop.f32.mrf.mxu2 }
 0x24a   : > { %v1694_v52 = vpop.f32.mrf.mxu3  ;;  %v1985_v49 = vmax.f32 %v1953_v3, 0.0  ;;  %v1605_v63 = vadd.f32 %v1537_v43, %v1452_v29  ;;  %v1387_v48 = vpop.f32.mrf.mxu1 }
 0x24b   : > { %v1453_v61 = vadd.f32 %v1387_v48, %v3377_v31 }
 0x24c   : > { %2018 = vst.msk [vmem:[%s3581_s16 + $0x68] sm:$0xff] %vm2004_vm3, %v1985_v49  ;;  %v1762_v18 = vadd.f32 %v1694_v52, %v1605_v63 }
 0x24d   : > { %2296 = vmatmul.msk.f32.gmra.mxu1 %vm357_vm1, %v1318_v41  ;;  %v1853_v40 = vpop.f32.mrf.mxu0 }
 0x24e   : > { %v1918_v13 = vadd.f32 %v1850_v17, %v1762_v18  ;;  %2329 = vmatmul.msk.f32.gmra.mxu2 %vm357_vm1, %v223_v54 }
 0x24f   : > { %2362 = vmatmul.msk.f32.gmra.mxu3 %vm357_vm1, %v1628_v10 }
 0x250   : > { %v1954_v23 = vadd.f32 %v3565_v12, %v1918_v13  ;;  %2395 = vmatmul.msk.f32.gmra.mxu0 %vm357_vm1, %v1784_v8 }
 0x251   : > { %v1540_v1 = vpop.f32.mrf.mxu2 }
 0x252   : > { %v1697_v4 = vpop.f32.mrf.mxu3  ;;  %v1986_v20 = vmax.f32 %v1954_v23, 0.0  ;;  %v1606_v55 = vadd.f32 %v1540_v1, %v1453_v61  ;;  %v1390_v21 = vpop.f32.mrf.mxu1 }
 0x253   : > { %v1454_v54 = vadd.f32 %v1390_v21, %v3388_v9 }
 0x254   : > { %2019 = vst.msk [vmem:[%s3581_s16 + $0x70] sm:$0xff] %vm2004_vm3, %v1986_v20  ;;  %v1763_v32 = vadd.f32 %v1697_v4, %v1606_v55 }
 0x255   : > { %v1856_v58 = vpop.f32.mrf.mxu0 }
 0x256   : > { %v1919_v0 = vadd.f32 %v1853_v40, %v1763_v32 }
 0x258   : > { %v1955_v11 = vadd.f32 %v3565_v12, %v1919_v0 }
 0x259   : > { %v1543_v31 = vpop.f32.mrf.mxu2 }
 0x25a   : > { %v1700_v41 = vpop.f32.mrf.mxu3  ;;  %v1987_v57 = vmax.f32 %v1955_v11, 0.0  ;;  %v1607_v22 = vadd.f32 %v1543_v31, %v1454_v54  ;;  %v1393_v16 = vpop.f32.mrf.mxu1 }
 0x25b   : > { %v1455_v46 = vadd.f32 %v1393_v16, %v3399_v37 }
 0x25c   : > { %2020 = vst.msk [vmem:[%s3581_s16 + $0x78] sm:$0xff] %vm2004_vm3, %v1987_v57  ;;  %v1764_v60 = vadd.f32 %v1700_v41, %v1607_v22 }
 0x25d   : > { %v1859_v34 = vpop.f32.mrf.mxu0 }
 0x25e   : > { %v1920_v39 = vadd.f32 %v1856_v58, %v1764_v60 }
 0x260   : > { %v1956_v62 = vadd.f32 %v3565_v12, %v1920_v39 }
 0x261   : > { %v1546_v47 = vpop.f32.mrf.mxu2 }
 0x262   : > { %v1703_v9 = vpop.f32.mrf.mxu3  ;;  %v1988_v7 = vmax.f32 %v1956_v62, 0.0  ;;  %v1608_v19 = vadd.f32 %v1546_v47, %v1455_v46  ;;  %v1396_v26 = vpop.f32.mrf.mxu1 }
 0x263   : > { %v1456_v2 = vadd.f32 %v1396_v26, %v3410_v5 }
 0x264   : > { %2021 = vst.msk [vmem:[%s3581_s16 + $0x80] sm:$0xff] %vm2004_vm3, %v1988_v7  ;;  %v1765_v28 = vadd.f32 %v1703_v9, %v1608_v19 }
 0x265   : > { %v1862_v38 = vpop.f32.mrf.mxu0 }
 0x266   : > { %v1921_v15 = vadd.f32 %v1859_v34, %v1765_v28 }
 0x268   : > { %v1957_v17 = vadd.f32 %v3565_v12, %v1921_v15 }
 0x269   : > { %v1549_v45 = vpop.f32.mrf.mxu2 }
 0x26a   : > { %v1706_v37 = vpop.f32.mrf.mxu3  ;;  %v1989_v51 = vmax.f32 %v1957_v17, 0.0  ;;  %v1609_v50 = vadd.f32 %v1549_v45, %v1456_v2  ;;  %v1399_v29 = vpop.f32.mrf.mxu1 }
 0x26b   : > { %v1457_v36 = vadd.f32 %v1399_v29, %v3421_v14 }
 0x26c   : > { %2022 = vst.msk [vmem:[%s3581_s16 + $0x88] sm:$0xff] %vm2004_vm3, %v1989_v51  ;;  %v1766_v3 = vadd.f32 %v1706_v37, %v1609_v50 }
 0x26d   : > { %v1865_v43 = vpop.f32.mrf.mxu0 }
 0x26e   : > { %v1922_v52 = vadd.f32 %v1862_v38, %v1766_v3 }
 0x270   : > { %v1958_v49 = vadd.f32 %v3565_v12, %v1922_v52 }
 0x271   : > { %v1552_v63 = vpop.f32.mrf.mxu2 }
 0x272   : > { %v1709_v5 = vpop.f32.mrf.mxu3  ;;  %v1990_v48 = vmax.f32 %v1958_v49, 0.0  ;;  %v1610_v10 = vadd.f32 %v1552_v63, %v1457_v36  ;;  %v1402_v18 = vpop.f32.mrf.mxu1 }
 0x273   : > { %v1458_v61 = vadd.f32 %v1402_v18, %v3432_v33 }
 0x274   : > { %2023 = vst.msk [vmem:[%s3581_s16 + $0x90] sm:$0xff] %vm2004_vm3, %v1990_v48  ;;  %v1767_v40 = vadd.f32 %v1709_v5, %v1610_v10 }
 0x275   : > { %v1868_v8 = vpop.f32.mrf.mxu0 }
 0x276   : > { %v1923_v13 = vadd.f32 %v1865_v43, %v1767_v40 }
 0x278   : > { %v1959_v23 = vadd.f32 %v3565_v12, %v1923_v13 }
 0x279   : > { %v1555_v1 = vpop.f32.mrf.mxu2 }
 0x27a   : > { %v1712_v14 = vpop.f32.mrf.mxu3  ;;  %v1991_v4 = vmax.f32 %v1959_v23, 0.0  ;;  %v1611_v20 = vadd.f32 %v1555_v1, %v1458_v61  ;;  %v1405_v55 = vpop.f32.mrf.mxu1 }
 0x27b   : > { %v1459_v0 = vadd.f32 %v1405_v55, %v3443_v24 }
 0x27c   : > { %2024 = vst.msk [vmem:[%s3581_s16 + $0x98] sm:$0xff] %vm2004_vm3, %v1991_v4  ;;  %v1768_v21 = vadd.f32 %v1712_v14, %v1611_v20 }
 0x27d   : > { %v1871_v32 = vpop.f32.mrf.mxu0 }
 0x27e   : > { %v1924_v58 = vadd.f32 %v1868_v8, %v1768_v21 }
 0x280   : > { %v1960_v54 = vadd.f32 %v3565_v12, %v1924_v58 }
 0x281   : > { %v1558_v11 = vpop.f32.mrf.mxu2 }
 0x282   : > { %v1715_v33 = vpop.f32.mrf.mxu3  ;;  %v1992_v31 = vmax.f32 %v1960_v54, 0.0  ;;  %v1612_v41 = vadd.f32 %v1558_v11, %v1459_v0  ;;  %v1408_v57 = vpop.f32.mrf.mxu1 }
 0x283   : > { %v1460_v34 = vadd.f32 %v1408_v57, %v3454_v56 }
 0x284   : > { %2025 = vst.msk [vmem:[%s3581_s16 + $0xa0] sm:$0xff] %vm2004_vm3, %v1992_v31  ;;  %v1769_v22 = vadd.f32 %v1715_v33, %v1612_v41 }
 0x285   : > { %v1874_v16 = vpop.f32.mrf.mxu0 }
 0x286   : > { %v1925_v60 = vadd.f32 %v1871_v32, %v1769_v22 }
 0x288   : > { %v1961_v39 = vadd.f32 %v3565_v12, %v1925_v60 }
 0x289   : > { %v1561_v46 = vpop.f32.mrf.mxu2 }
 0x28a   : > { %v1718_v24 = vpop.f32.mrf.mxu3  ;;  %v1993_v62 = vmax.f32 %v1961_v39, 0.0  ;;  %v1613_v47 = vadd.f32 %v1561_v46, %v1460_v34  ;;  %v1411_v9 = vpop.f32.mrf.mxu1 }
 0x28b   : > { %v1461_v28 = vadd.f32 %v1411_v9, %v3465_v25 }
 0x28c   : > { %2026 = vst.msk [vmem:[%s3581_s16 + $0xa8] sm:$0xff] %vm2004_vm3, %v1993_v62  ;;  %v1770_v7 = vadd.f32 %v1718_v24, %v1613_v47 }
 0x28d   : > { %v1877_v19 = vpop.f32.mrf.mxu0 }
 0x28e   : > { %v1926_v26 = vadd.f32 %v1874_v16, %v1770_v7 }
 0x290   : > { %v1962_v38 = vadd.f32 %v3565_v12, %v1926_v26 }
 0x291   : > { %v1564_v15 = vpop.f32.mrf.mxu2 }
 0x292   : > { %v1721_v56 = vpop.f32.mrf.mxu3  ;;  %v1994_v2 = vmax.f32 %v1962_v38, 0.0  ;;  %v1614_v17 = vadd.f32 %v1564_v15, %v1461_v28  ;;  %v1414_v45 = vpop.f32.mrf.mxu1 }
 0x293   : > { %v1462_v29 = vadd.f32 %v1414_v45, %v3476_v44 }
 0x294   : > { %2027 = vst.msk [vmem:[%s3581_s16 + $0xb0] sm:$0xff] %vm2004_vm3, %v1994_v2  ;;  %v1771_v37 = vadd.f32 %v1721_v56, %v1614_v17 }
 0x295   : > { %v1880_v51 = vpop.f32.mrf.mxu0 }
 0x296   : > { %v1927_v50 = vadd.f32 %v1877_v19, %v1771_v37 }
 0x298   : > { %v1963_v3 = vadd.f32 %v3565_v12, %v1927_v50 }
 0x299   : > { %v1567_v43 = vpop.f32.mrf.mxu2 }
 0x29a   : > { %v1724_v25 = vpop.f32.mrf.mxu3  ;;  %v1995_v52 = vmax.f32 %v1963_v3, 0.0  ;;  %v1615_v36 = vadd.f32 %v1567_v43, %v1462_v29  ;;  %v1417_v49 = vpop.f32.mrf.mxu1 }
 0x29b   : > { %v1463_v10 = vadd.f32 %v1417_v49, %v3487_v35 }
 0x29c   : > { %2028 = vst.msk [vmem:[%s3581_s16 + $0xb8] sm:$0xff] %vm2004_vm3, %v1995_v52  ;;  %v1772_v63 = vadd.f32 %v1724_v25, %v1615_v36 }
 0x29d   : > { %v1883_v5 = vpop.f32.mrf.mxu0 }
 0x29e   : > { %v1928_v48 = vadd.f32 %v1880_v51, %v1772_v63 }
 0x2a0   : > { %v1964_v18 = vadd.f32 %v3565_v12, %v1928_v48 }
 0x2a1   : > { %v1570_v40 = vpop.f32.mrf.mxu2 }
 0x2a2   : > { %v1727_v44 = vpop.f32.mrf.mxu3  ;;  %v1996_v8 = vmax.f32 %v1964_v18, 0.0  ;;  %v1616_v13 = vadd.f32 %v1570_v40, %v1463_v10  ;;  %v1420_v61 = vpop.f32.mrf.mxu1 }
 0x2a3   : > { %v1464_v4 = vadd.f32 %v1420_v61, %v3498_v53 }
 0x2a4   : > { %2029 = vst.msk [vmem:[%s3581_s16 + $0xc0] sm:$0xff] %vm2004_vm3, %v1996_v8  ;;  %v1773_v23 = vadd.f32 %v1727_v44, %v1616_v13 }
 0x2a5   : > { %v1886_v1 = vpop.f32.mrf.mxu0 }
 0x2a6   : > { %v1929_v14 = vadd.f32 %v1883_v5, %v1773_v23 }
 0x2a8   : > { %v1965_v20 = vadd.f32 %v3565_v12, %v1929_v14 }
 0x2a9   : > { %v1573_v55 = vpop.f32.mrf.mxu2 }
 0x2aa   : > { %v1730_v35 = vpop.f32.mrf.mxu3  ;;  %v1997_v21 = vmax.f32 %v1965_v20, 0.0  ;;  %v1617_v32 = vadd.f32 %v1573_v55, %v1464_v4  ;;  %v1423_v58 = vpop.f32.mrf.mxu1 }
 0x2ab   : > { %v1465_v33 = vadd.f32 %v1423_v58, %v3509_v42 }
 0x2ac   : > { %2030 = vst.msk [vmem:[%s3581_s16 + $0xc8] sm:$0xff] %vm2004_vm3, %v1997_v21  ;;  %v1774_v0 = vadd.f32 %v1730_v35, %v1617_v32 }
 0x2ad   : > { %v1889_v54 = vpop.f32.mrf.mxu0 }
 0x2ae   : > { %v1930_v11 = vadd.f32 %v1886_v1, %v1774_v0 }
 0x2b0   : > { %v1966_v31 = vadd.f32 %v3565_v12, %v1930_v11 }
 0x2b1   : > { %v1576_v41 = vpop.f32.mrf.mxu2 }
 0x2b2   : > { %v1733_v53 = vpop.f32.mrf.mxu3  ;;  %v1998_v57 = vmax.f32 %v1966_v31, 0.0  ;;  %v1618_v22 = vadd.f32 %v1576_v41, %v1465_v33  ;;  %v1426_v16 = vpop.f32.mrf.mxu1 }
 0x2b3   : > { %v1466_v46 = vadd.f32 %v1426_v16, %v3520_v30 }
 0x2b4   : > { %2031 = vst.msk [vmem:[%s3581_s16 + $0xd0] sm:$0xff] %vm2004_vm3, %v1998_v57  ;;  %v1775_v60 = vadd.f32 %v1733_v53, %v1618_v22 }
 0x2b5   : > { %v1892_v34 = vpop.f32.mrf.mxu0 }
 0x2b6   : > { %v1931_v39 = vadd.f32 %v1889_v54, %v1775_v60 }
 0x2b8   : > { %v1967_v24 = vadd.f32 %v3565_v12, %v1931_v39 }
 0x2b9   : > { %v1579_v62 = vpop.f32.mrf.mxu2 }
 0x2ba   : > { %v1736_v42 = vpop.f32.mrf.mxu3  ;;  %v1999_v47 = vmax.f32 %v1967_v24, 0.0  ;;  %v1619_v9 = vadd.f32 %v1579_v62, %v1466_v46  ;;  %v1429_v7 = vpop.f32.mrf.mxu1 }
 0x2bb   : > { %v1467_v38 = vadd.f32 %v1429_v7, %v3531_v59 }
 0x2bc   : > { %2032 = vst.msk [vmem:[%s3581_s16 + $0xd8] sm:$0xff] %vm2004_vm3, %v1999_v47  ;;  %v1776_v19 = vadd.f32 %v1736_v42, %v1619_v9 }
 0x2bd   : > { %v1895_v28 = vpop.f32.mrf.mxu0 }
 0x2be   : > { %v1932_v26 = vadd.f32 %v1892_v34, %v1776_v19 }
 0x2c0   : > { %v1968_v15 = vadd.f32 %v3565_v12, %v1932_v26 }
 0x2c1   : > { %v1582_v56 = vpop.f32.mrf.mxu2 }
 0x2c2   : > { %v1739_v30 = vpop.f32.mrf.mxu3  ;;  %v2000_v2 = vmax.f32 %v1968_v15, 0.0  ;;  %v1620_v17 = vadd.f32 %v1582_v56, %v1467_v38  ;;  %v1432_v45 = vpop.f32.mrf.mxu1 }
 0x2c3   : > { %v1468_v50 = vadd.f32 %v1432_v45, %v3542_v6 }
 0x2c4   : > { %2033 = vst.msk [vmem:[%s3581_s16 + $0xe0] sm:$0xff] %vm2004_vm3, %v2000_v2  ;;  %v1777_v37 = vadd.f32 %v1739_v30, %v1620_v17 }
 0x2c5   : > { %v1898_v3 = vpop.f32.mrf.mxu0 }
 0x2c6   : > { %v1933_v51 = vadd.f32 %v1895_v28, %v1777_v37 }
 0x2c8   : > { %v1969_v29 = vadd.f32 %v3565_v12, %v1933_v51 }
 0x2c9   : > { %v1585_v43 = vpop.f32.mrf.mxu2 }
 0x2ca   : > { %v1742_v59 = vpop.f32.mrf.mxu3  ;;  %v2001_v25 = vmax.f32 %v1969_v29, 0.0  ;;  %v1621_v52 = vadd.f32 %v1585_v43, %v1468_v50  ;;  %v1435_v49 = vpop.f32.mrf.mxu1 }
 0x2cb   : > { %v1469_v5 = vadd.f32 %v1435_v49, %v3553_v27 }
 0x2cc   : > { %2034 = vst.msk [vmem:[%s3581_s16 + $0xe8] sm:$0xff] %vm2004_vm3, %v2001_v25  ;;  %v1778_v36 = vadd.f32 %v1742_v59, %v1621_v52 }
 0x2cd   : > { %v1901_v44 = vpop.f32.mrf.mxu0 }
 0x2ce   : > { %v1934_v63 = vadd.f32 %v1898_v3, %v1778_v36 }
 0x2d0   : > { %v1970_v48 = vadd.f32 %v3565_v12, %v1934_v63 }
 0x2d1   : > { %v1588_v10 = vpop.f32.mrf.mxu2 }
 0x2d2   : > { %v1745_v6 = vpop.f32.mrf.mxu3  ;;  %v2002_v18 = vmax.f32 %v1970_v48, 0.0  ;;  %v1622_v40 = vadd.f32 %v1588_v10, %v1469_v5 }
 0x2d4   : > { %2035 = vst.msk [vmem:[%s3581_s16 + $0xf0] sm:$0xff] %vm2004_vm3, %v2002_v18  ;;  %v1779_v8 = vadd.f32 %v1745_v6, %v1622_v40 }
 0x2d6   : > { %v1935_v13 = vadd.f32 %v1901_v44, %v1779_v8 }
 0x2d8   : > { %v1971_v61 = vadd.f32 %v3565_v12, %v1935_v13 }
 0x2da   : > { %v2003_v23 = vmax.f32 %v1971_v61, 0.0 }
 0x2dc   : > { %2036 = vst.msk [vmem:[%s3581_s16 + $0xf8] sm:$0xff] %vm2004_vm3, %v2003_v23 }
 0x2dd PF: > { %s13_s12 = sadd.s32 1, %s2442_s12  }
 0x2de   : > { %p10_p4 = scmp.ge.s32.totalorder %s13_s12, 4  }
 0x2e0   :  { %12 = sbr.rel (!%p10_p4) target bundleno = 1 (0x1), region = 70 }

// kernel: concat_up_conv.5
= control target key start
LH: loop header
LB: loop body
LE: loop exit
PB: predicated region body
PF: predicated region fallthrough
CT: control target
= control target key end

     0   :  { %s2026_s6 = smov 0   ;;  %s3922_s0 = inlined_call_operand.vmem [shape: f32[2,18,18,4], index: 0, kind: input, shape index: {}]   ;;  %s3923_s1 = inlined_call_operand.vmem [shape: f32[2,16,2,16,8], index: 1, kind: output, shape index: {}]  }
   0x1 LB: > { %s1935_s7 = sadd.s32 4294967295, %s2013_s6   ;;  %p1939_p0 = scmp.ge.s32.totalorder %s2013_s6, 1  ;;  %s2013_s6 = sphi %s2026_s6, %s11_s6  }
   0x2   : > { %p87_p1 = scmp.lt.s32.totalorder %s2013_s6, 3 }
   0x4   : > { %p88_p2 = pnand %p1939_p0, %p87_p1 }
   0x6   : > { %91 = sbr.rel (%p88_p2) target bundleno = 414 (0x19e), region = 24 }
   0xb   : > { %p107_p3 = scmp.lt.s32.totalorder %s1935_s7, 1  ;;  %vm658_vm0 = vcmask 1046528   ;;  %s2015_s12 = smov 4   ;;  %vm481_vm1 = vcmask 1040384   ;;  %vm1491_vm2 = vcmask 31744   ;;  %vm1544_vm3 = vcmask 57344  }
   0xc   : > { %vm1540_vm4 = vcmask 64513   ;;  %vm1542_vm5 = vcmask 64512  }
   0xd   : > { %s4456_s7 = smov (!%p107_p3, %s1935_s7), 1 }
   0xe   : > { %s1994_s8 = smul.u32 432, %s4456_s7  ;;  %s1993_s13 = sshll.u32 %s4456_s7, 9 }
   0xf   : > { %s2785_s16 = scalar_lea.vmem %s3923_s1, %s1993_s13 }
  0x10   : > { %s2040_s11 = scalar_lea.vmem %s3922_s0, %s1994_s8 }
  0x11   : > { %v119_v0 = vld [vmem:[%s2040_s11 + $0x10] sm:$0x3]  ;;  %v121_v1 = vld [vmem:[%s2040_s11 + $0x20] sm:$0xff]  ;;  %v122_v2 = vld [vmem:[%s2040_s11 + $0x28] sm:$0x3] }
  0x12   : > { %v125_v3 = vld [vmem:[%s2040_s11 + $0x40] sm:$0x3]  ;;  %v2046_v4 = vmul.f32 0.75, %v121_v1  ;;  %v173_v5 = vmul.f32 0.75, %v122_v2  ;;  %v221_v6 = vmul.f32 0.25, %v119_v0  ;;  %v118_v7 = vld [vmem:[%s2040_s11 + $0x8] sm:$0xff] }
  0x13   : > { %v227_v8 = vmul.f32 0.25, %v125_v3  ;;  %v220_v9 = vmul.f32 0.25, %v118_v7  ;;  %v117_v10 = vld [vmem:[%s2040_s11] sm:$0xff]  ;;  %v120_v11 = vld [vmem:[%s2040_s11 + $0x18] sm:$0xff]  ;;  %v123_v12 = vld [vmem:[%s2040_s11 + $0x30] sm:$0xff]  ;;  %v223_v13 = vmul.f32 0.25, %v121_v1 }
  0x14   : > { %v269_v14 = vadd.f32 %v221_v6, %v173_v5  ;;  %v2052_v15 = vmul.f32 0.75, %v120_v11  ;;  %v219_v16 = vmul.f32 0.25, %v117_v10  ;;  %v222_v17 = vmul.f32 0.25, %v120_v11  ;;  %v124_v18 = vld [vmem:[%s2040_s11 + $0x38] sm:$0xff]  ;;  %v2056_v19 = vld [vmem:[%s2040_s11 + $0x50] sm:$0xff]  ;;  %v126_v44 = vld [vmem:[%s2040_s11 + $0x48] sm:$0xff] }
  0x15   : > { %v2058_v20 = vadd.f32 %v227_v8, %v173_v5  ;;  %v268_v21 = vadd.f32 %v220_v9, %v2046_v4  ;;  %v2061_v22 = vmul.f32 0.75, %v123_v12  ;;  %v2063_v23 = vmul.f32 0.75, %v124_v18  ;;  %v128_v27 = vld [vmem:[%s2040_s11 + $0x58] sm:$0x3]  ;;  %v130_v61 = vld [vmem:[%s2040_s11 + $0x68] sm:$0xff] }
  0x16   : > { %v371_v24 = vmul.f32 0.75, %v269_v14  ;;  %v626_v25 = vmul.f32 0.25, %v269_v14  ;;  %v267_v26 = vadd.f32 %v219_v16, %v2052_v15  ;;  %v2074_v31 = vmul.f32 0.75, %v2056_v19  ;;  %v131_v62 = vld [vmem:[%s2040_s11 + $0x70] sm:$0x3] }
  0x17   : > { %v2067_v28 = vmul.f32 0.25, %v268_v21  ;;  %v270_v29 = vadd.f32 %v222_v17, %v2061_v22  ;;  %v2071_v30 = vadd.f32 %v223_v13, %v2063_v23  ;;  %v2078_v35 = vmul.f32 0.75, %v268_v21 }
  0x18   : > { %v662_v32 = vrot.slane %v626_v25, 1  ;;  %v369_v33 = vmul.f32 0.75, %v267_v26  ;;  %v2076_v34 = vmul.f32 0.25, %v267_v26  ;;  %v2084_v39 = vmul.f32 0.75, %v128_v27  ;;  %v133_v26 = vld [vmem:[%s2040_s11 + $0x80] sm:$0xff] }
  0x19   : > { %v3926_v36 = vrot.slane %v2067_v28, 7  ;;  %v660_v37 = vrot.slane %v2067_v28, 1  ;;  %v2082_v38 = vmul.f32 0.25, %v270_v29  ;;  %v2089_v43 = vmul.f32 0.25, %v2071_v30 }
  0x1a   : > { %v789_v40 = vadd.f32 %v662_v32, %v371_v24  ;;  %v3925_v41 = vrot.slane %v2076_v34, 7  ;;  %v659_v42 = vrot.slane %v2076_v34, 1  ;;  %v2096_v46 = vmul.f32 0.75, %v270_v29 }
  0x1b   : > { %v2094_v45 = vadd.f32 %v3926_v36, %v371_v24  ;;  %v664_v47 = vrot.slane %v2082_v38, 1  ;;  %v2099_v48 = vmul.f32 0.25, %v124_v18  ;;  %v3928_v51 = vrot.slane %v2089_v43, 1 }
  0x1c   : > { %1351 = vrot.lane.b32.xlu1 %v789_v40, %s2015_s12  ;;  %v661_v49 = vsel %vm658_vm0, %v659_v42, %v660_v37  ;;  %v2105_v50 = vadd.f32 %v3925_v41, %v369_v33  ;;  %v663_v52 = vsel %vm658_vm0, %v660_v37, %v662_v32  ;;  %v275_v55 = vadd.f32 %v227_v8, %v2084_v39 }
  0x1d   : > { %v787_v53 = vadd.f32 %v661_v49, %v369_v33  ;;  %v274_v54 = vadd.f32 %v2099_v48, %v2074_v31  ;;  %v2112_v56 = vmul.f32 0.75, %v126_v44  ;;  %v666_v57 = vsel %vm658_vm0, %v664_v47, %v3928_v51  ;;  %v134_v33 = vld [vmem:[%s2040_s11 + $0x88] sm:$0x3] }
  0x1e   : > { %v2117_v58 = vmul.f32 0.25, %v123_v12  ;;  %v176_v59 = vmul.f32 0.75, %v125_v3  ;;  %v224_v60 = vmul.f32 0.25, %v122_v2  ;;  %v790_v63 = vadd.f32 %v666_v57, %v2096_v46  ;;  %v129_v12 = vld [vmem:[%s2040_s11 + $0x60] sm:$0xff] }
  0x1f   : > { %4094 = vst [vmem:[#allocation2_spill] sm:$0xff] %v2112_v56  ;;  %1347 = vrot.lane.b32.xlu0 %v787_v53, %s2015_s12  ;;  %v788_v0 = vadd.f32 %v663_v52, %v2078_v35  ;;  %v2124_v1 = vmul.f32 0.25, %v274_v54  ;;  %v628_v5 = vmul.f32 0.25, %v275_v55  ;;  %v230_v7 = vmul.f32 0.25, %v128_v27  ;;  %v132_v53 = vld [vmem:[%s2040_s11 + $0x78] sm:$0xff] }
  0x20   : > { %v273_v6 = vadd.f32 %v2117_v58, %v2112_v56  ;;  %v272_v8 = vadd.f32 %v224_v60, %v176_v59  ;;  %v3924_v2 = vrot.slane %v2089_v43, 7  ;;  %v2130_v10 = vmul.f32 0.75, %v130_v61 }
  0x21   : > { %v670_v3 = vrot.slane %v2124_v1, 1  ;;  %v672_v9 = vrot.slane %v628_v5, 1  ;;  %v2132_v11 = vmul.f32 0.75, %v131_v62  ;;  %v2135_v13 = vmul.f32 0.75, %v274_v54 }
  0x22   : > { %4095 = vst [vmem:[#allocation3_spill] sm:$0xff] %v2130_v10  ;;  %v2137_v14 = vmul.f32 0.25, %v273_v6  ;;  %v2139_v16 = vadd.f32 %v230_v7, %v176_v59  ;;  %v374_v17 = vmul.f32 0.75, %v272_v8  ;;  %v2142_v21 = vmul.f32 0.25, %v272_v8 }
  0x23   : > { %4096 = vst [vmem:[#allocation4_spill] sm:$0xff] %v2132_v11  ;;  %v673_v18 = vsel %vm658_vm0, %v670_v3, %v672_v9  ;;  %v2145_v24 = vmul.f32 0.25, %v2056_v19  ;;  %v2148_v25 = vadd.f32 %v230_v7, %v2132_v11  ;;  %v2157_v32 = vmul.f32 0.75, %v129_v12 }
  0x24   : > { %4097 = vst [vmem:[#allocation5_spill] sm:$0xff] %v2135_v13  ;;  %1353 = vrot.lane.b32.xlu1 %v790_v63, %s2015_s12  ;;  %v669_v27 = vrot.slane %v2137_v14, 1  ;;  %v2155_v29 = vadd.f32 %v3924_v2, %v374_v17  ;;  %v667_v37 = vrot.slane %v2142_v21, 1  ;;  %v2166_v42 = vmul.f32 0.25, %v126_v44 }
  0x25   : > { %4098 = vst [vmem:[#allocation6_spill] sm:$0xff] %v2157_v32  ;;  %v277_v19 = vadd.f32 %v2145_v24, %v2130_v10  ;;  %v2164_v40 = vmul.f32 0.25, %v2148_v25  ;;  %v794_v47 = vadd.f32 %v673_v18, %v2135_v13  ;;  %v2169_v49 = vmul.f32 0.75, %v273_v6  ;;  %v139_v10 = vld [vmem:[%s2040_s11 + $0xb0] sm:$0xff] }
  0x26   : > { %v2171_v52 = vmul.f32 0.75, %v133_v26  ;;  %v671_v54 = vsel %vm658_vm0, %v669_v27, %v670_v3  ;;  %v792_v57 = vadd.f32 %v667_v37, %v374_v17  ;;  %v2178_v60 = vmul.f32 0.75, %v134_v33  ;;  %v136_v27 = vld [vmem:[%s2040_s11 + $0x98] sm:$0xff] }
  0x27   : > { %4099 = vst [vmem:[#allocation7_spill] sm:$0xff] %v2169_v49  ;;  %1349 = vrot.lane.b32.xlu0 %v788_v0, %s2015_s12  ;;  %v2176_v59 = vmul.f32 0.25, %v277_v19  ;;  %v3927_v63 = vrot.slane %v2164_v40, 1  ;;  %v276_v44 = vadd.f32 %v2166_v42, %v2157_v32  ;;  %v2183_v5 = vmul.f32 0.75, %v275_v55 }
  0x28   : > { %4100 = vst [vmem:[#allocation8_spill] sm:$0xff] %v2171_v52  ;;  %v2185_v6 = vmul.f32 0.25, %v130_v61  ;;  %1357 = vrot.lane.b32.xlu2 %v792_v57, %s2015_s12  ;;  %v2189_v7 = vmul.f32 0.25, %v131_v62  ;;  %v2191_v8 = vmul.f32 0.75, %v132_v53  ;;  %v2193_v3 = vmul.f32 0.25, %v129_v12 }
  0x29   : > { %4101 = vst [vmem:[#allocation9_spill] sm:$0xff] %v2178_v60  ;;  %v675_v0 = vrot.slane %v2176_v59, 1  ;;  %v2195_v17 = vmul.f32 0.75, %v277_v19  ;;  %v2197_v18 = vmul.f32 0.25, %v276_v44  ;;  %v793_v61 = vadd.f32 %v671_v54, %v2169_v49  ;;  %v137_v19 = vld [vmem:[%s2040_s11 + $0xa0] sm:$0x3] }
  0x2a   : > { %4102 = vst [vmem:[#allocation10_spill] sm:$0xff] %v2191_v8  ;;  %v280_v55 = vadd.f32 %v2185_v6, %v2171_v52  ;;  %v2207_v62 = vadd.f32 %v2189_v7, %v2178_v60  ;;  %v279_v12 = vadd.f32 %v2193_v3, %v2191_v8  ;;  %v2217_v54 = vmul.f32 0.75, %v276_v44 }
  0x2b   : > { %4103 = vst [vmem:[#allocation11_spill] sm:$0xff] %v2193_v3  ;;  %v678_v21 = vsel %vm658_vm0, %v675_v0, %v3927_v63  ;;  %v674_v57 = vrot.slane %v2197_v18, 1  ;;  %v795_v41 = vadd.f32 %v672_v9, %v2183_v5  ;;  %v135_v63 = vld [vmem:[%s2040_s11 + $0x90] sm:$0xff]  ;;  %v2226_v8 = vmul.f32 0.75, %v2071_v30 }
  0x2c   : > { %4104 = vst [vmem:[#allocation12_spill] sm:$0xff] %v2195_v17  ;;  %1361 = vrot.lane.b32.xlu1 %v794_v47, %s2015_s12  ;;  %v2215_v2 = vmul.f32 0.25, %v280_v55  ;;  %v2221_v36 = vmul.f32 0.25, %v2207_v62  ;;  %v797_v51 = vadd.f32 %v678_v21, %v2195_v17  ;;  %v2228_v60 = vmul.f32 0.75, %v136_v27  ;;  %v140_v21 = vld [vmem:[%s2040_s11 + $0xb8] sm:$0x3] }
  0x2d   : > { %4105 = vst [vmem:[#allocation13_spill] sm:$0xff] %v2197_v18  ;;  %v2230_v47 = vmul.f32 0.75, %v137_v19  ;;  %v676_v44 = vsel %vm658_vm0, %v674_v57, %v675_v0  ;;  %v2235_v52 = vmul.f32 0.25, %v279_v12  ;;  %v2237_v32 = vmul.f32 0.25, %v133_v26 }
  0x2e   : > { %4106 = vst [vmem:[#allocation14_spill] sm:$0xff] %v2215_v2  ;;  %v680_v9 = vrot.slane %v2215_v2, 1  ;;  %v2240_v30 = vmul.f32 0.25, %v134_v33  ;;  %v2242_v17 = vmul.f32 0.75, %v135_v63  ;;  %v2244_v11 = vmul.f32 0.25, %v132_v53  ;;  %v138_v2 = vld [vmem:[%s2040_s11 + $0xa8] sm:$0xff] }
  0x2f   : > { %4107 = vst [vmem:[#allocation15_spill] sm:$0xff] %v2217_v54  ;;  %1359 = vrot.lane.b32.xlu0 %v793_v61, %s2015_s12  ;;  %v4115_v61 = vrot.slane %v2089_v43, 1  ;;  %v283_v57 = vadd.f32 %v2237_v32, %v2228_v60  ;;  %v796_v53 = vadd.f32 %v676_v44, %v2217_v54  ;;  %v2261_v49 = vmul.f32 0.75, %v280_v55 }
  0x30   : > { %4108 = vst [vmem:[#allocation16_spill] sm:$0xff] %v2228_v60  ;;  %1363 = vrot.lane.b32.xlu2 %v795_v41, %s2015_s12  ;;  %v2255_v26 = vadd.f32 %v2240_v30, %v2230_v47  ;;  %v282_v33 = vadd.f32 %v2244_v11, %v2242_v17  ;;  %v679_v41 = vrot.slane %v2235_v52, 1  ;;  %v2277_v44 = vmul.f32 0.75, %v140_v21 }
  0x31   : > { %4109 = vst [vmem:[#allocation17_spill] sm:$0xff] %v2230_v47  ;;  %v668_v0 = vsel %vm658_vm0, %v4115_v61, %v667_v37  ;;  %v4117_v37 = vrot.slane %v2221_v36, 1  ;;  %v2270_v60 = vmul.f32 0.25, %v283_v57  ;;  %v2279_v54 = vmul.f32 0.25, %v136_v27  ;;  %v142_v27 = vld [vmem:[%s2040_s11 + $0xc8] sm:$0xff] }
  0x32   : > { %4110 = vst [vmem:[#allocation18_spill] sm:$0xff] %v2235_v52  ;;  %v791_v47 = vadd.f32 %v668_v0, %v2226_v8  ;;  %v2275_v55 = vmul.f32 0.25, %v2255_v26  ;;  %v2283_v52 = vmul.f32 0.75, %v279_v12  ;;  %v2289_v0 = vmul.f32 0.25, %v135_v63 }
  0x33   : > { %4111 = vst [vmem:[#allocation19_spill] sm:$0xff] %v2237_v32  ;;  %v683_v61 = vsel %vm658_vm0, %v680_v9, %v4117_v37  ;;  %v2285_v37 = vmul.f32 0.25, %v282_v33  ;;  %v2295_v3 = vmul.f32 0.75, %v2148_v25  ;;  %v685_v12 = vrot.slane %v2270_v60, 1 }
  0x34   : > { %4112 = vst [vmem:[#allocation20_spill] sm:$0xff] %v2240_v30  ;;  %1367 = vrot.lane.b32.xlu1 %v797_v51, %s2015_s12  ;;  %v2281_v51 = vmul.f32 0.25, %v137_v19  ;;  %v681_v30 = vsel %vm658_vm0, %v679_v41, %v680_v9  ;;  %v800_v32 = vadd.f32 %v683_v61, %v2261_v49  ;;  %v143_v19 = vld [vmem:[%s2040_s11 + $0xd0] sm:$0x3]  ;;  %v2312_v61 = vmul.f32 0.75, %v142_v27 }
  0x35   : > { %4113 = vst [vmem:[#allocation21_spill] sm:$0xff] %v2242_v17  ;;  %v2272_v17 = vmul.f32 0.75, %v139_v10  ;;  %v684_v25 = vrot.slane %v2285_v37, 1  ;;  %v2318_v56 = vmul.f32 0.25, %v140_v21  ;;  %v2335_v21 = vmul.f32 0.75, %v282_v33 }
  0x36   : > { %4114 = vst [vmem:[#allocation22_spill] sm:$0xff] %v2244_v11  ;;  %v2287_v11 = vmul.f32 0.75, %v138_v2  ;;  %v2306_v9 = vadd.f32 %v2281_v51, %v2277_v44 }
  0x37   : > { %4116 = vst [vmem:[#allocation23_spill] sm:$0xff] %v2261_v49  ;;  %1365 = vrot.lane.b32.xlu0 %v796_v53, %s2015_s12  ;;  %v286_v63 = vadd.f32 %v2279_v54, %v2272_v17  ;;  %v799_v53 = vadd.f32 %v681_v30, %v2283_v52  ;;  %v2316_v49 = vmul.f32 0.25, %v139_v10  ;;  %v141_v30 = vld [vmem:[%s2040_s11 + $0xc0] sm:$0xff] }
  0x38   : > { %4118 = vst [vmem:[#allocation24_spill] sm:$0xff] %v2270_v60  ;;  %1355 = vrot.lane.b32.xlu2 %v791_v47, %s2015_s12  ;;  %v285_v41 = vadd.f32 %v2289_v0, %v2287_v11  ;;  %v2314_v47 = vmul.f32 0.75, %v143_v19  ;;  %v2333_v10 = vmul.f32 0.25, %v2306_v9  ;;  %v146_v60 = vld [vmem:[%s2040_s11 + $0xe8] sm:$0x3] }
  0x39   : > { %4119 = vst [vmem:[#allocation25_spill] sm:$0xff] %v2272_v17  ;;  %v4132_v17 = vrot.slane %v2275_v55, 1 }
  0x3a   : > { %4120 = vst [vmem:[#allocation26_spill] sm:$0xff] %v2277_v44  ;;  %v2321_v44 = vmul.f32 0.75, %v283_v57  ;;  %v2338_v57 = vmul.f32 0.25, %v285_v41  ;;  %v2391_v18 = vmul.f32 0.75, %v285_v41 }
  0x3b   : > { %4121 = vst [vmem:[#allocation27_spill] sm:$0xff] %v2279_v54  ;;  %v145_v54 = vld [vmem:[%s2040_s11 + $0xe0] sm:$0xff] }
  0x3c   : > { %4122 = vst [vmem:[#allocation28_spill] sm:$0xff] %v2281_v51  ;;  %1373 = vrot.lane.b32.xlu1 %v800_v32, %s2015_s12  ;;  %v686_v32 = vsel %vm658_vm0, %v684_v25, %v685_v12  ;;  %v2349_v51 = vmul.f32 0.25, %v138_v2  ;;  %v2358_v25 = vmul.f32 0.75, %v2207_v62  ;;  %v689_v2 = vrot.slane %v2338_v57, 1 }
  0x3d   : > { %4123 = vst [vmem:[#allocation29_spill] sm:$0xff] %v2283_v52  ;;  %v688_v52 = vsel %vm658_vm0, %v685_v12, %v4132_v17  ;;  %v289_v17 = vadd.f32 %v2316_v49, %v2312_v61  ;;  %v2377_v62 = vmul.f32 0.25, %v142_v27  ;;  %v2394_v27 = vmul.f32 0.75, %v2255_v26 }
  0x3e   : > { %4124 = vst [vmem:[#allocation30_spill] sm:$0xff] %v2285_v37  ;;  %v803_v33 = vadd.f32 %v688_v52, %v2321_v44 }
  0x3f   : > { %4125 = vst [vmem:[#allocation31_spill] sm:$0xff] %v2287_v11  ;;  %v4133_v11 = vrot.slane %v2164_v40, 1  ;;  %1371 = vrot.lane.b32.xlu0 %v799_v53, %s2015_s12  ;;  %v2347_v40 = vmul.f32 0.75, %v141_v30  ;;  %v2367_v52 = vmul.f32 0.25, %v289_v17 }
  0x40   : > { %4126 = vst [vmem:[#allocation32_spill] sm:$0xff] %v2289_v0  ;;  %v2330_v0 = vmul.f32 0.25, %v286_v63 }
  0x41   : > { %4127 = vst [vmem:[#allocation33_spill] sm:$0xff] %v2312_v61  ;;  %v798_v37 = vadd.f32 %v4133_v11, %v2295_v3  ;;  %v2345_v11 = vadd.f32 %v2318_v56, %v2314_v47  ;;  %v144_v61 = vld [vmem:[%s2040_s11 + $0xd8] sm:$0xff]  ;;  %v288_v53 = vadd.f32 %v2349_v51, %v2347_v40 }
  0x42   : > { %4128 = vst [vmem:[#allocation34_spill] sm:$0xff] %v2314_v47  ;;  %v690_v12 = vrot.slane %v2330_v0, 1  ;;  %v802_v47 = vadd.f32 %v686_v32, %v2335_v21  ;;  %v2381_v32 = vmul.f32 0.75, %v144_v61 }
  0x43   : > { %4129 = vst [vmem:[#allocation35_spill] sm:$0xff] %v2316_v49  ;;  %1369 = vrot.lane.b32.xlu2 %v798_v37, %s2015_s12  ;;  %v2365_v49 = vmul.f32 0.75, %v145_v54  ;;  %v2370_v37 = vmul.f32 0.25, %v2345_v11  ;;  %v2400_v13 = vmul.f32 0.25, %v288_v53 }
  0x44   : > { %4130 = vst [vmem:[#allocation36_spill] sm:$0xff] %v2318_v56  ;;  %v2362_v56 = vmul.f32 0.75, %v286_v63  ;;  %1379 = vrot.lane.b32.xlu1 %v803_v33, %s2015_s12  ;;  %v2379_v63 = vmul.f32 0.25, %v143_v19  ;;  %v691_v19 = vsel %vm658_vm0, %v689_v2, %v690_v12  ;;  %v2415_v2 = vmul.f32 0.75, %v289_v17  ;;  %v147_v33 = vld [vmem:[%s2040_s11 + $0xf0] sm:$0xff] }
  0x45   : > { %4131 = vst [vmem:[#allocation37_spill] sm:$0xff] %v2321_v44  ;;  %v2374_v44 = vmul.f32 0.75, %v146_v60 }
  0x46   : > { %4134 = vst [vmem:[#allocation38_spill] sm:$0xff] %v2330_v0 }
  0x47   : > { %4135 = vst [vmem:[#allocation39_spill] sm:$0xff] %v2335_v21  ;;  %v2383_v21 = vmul.f32 0.25, %v141_v30  ;;  %1377 = vrot.lane.b32.xlu0 %v802_v47, %s2015_s12  ;;  %v695_v30 = vrot.slane %v2367_v52, 1  ;;  %v2407_v41 = vadd.f32 %v2379_v63, %v2374_v44  ;;  %v148_v47 = vld [vmem:[%s2040_s11 + $0xf8] sm:$0xff] }
  0x48   : > { %4136 = vst [vmem:[#allocation40_spill] sm:$0xff] %v2338_v57  ;;  %v4148_v57 = vrot.slane %v2333_v10, 1 }
  0x49   : > { %4137 = vst [vmem:[#allocation41_spill] sm:$0xff] %v2347_v40  ;;  %v4149_v40 = vrot.slane %v2221_v36, 1  ;;  %v292_v36 = vadd.f32 %v2377_v62, %v2365_v49  ;;  %v291_v26 = vadd.f32 %v2383_v21, %v2381_v32  ;;  %v2431_v17 = vmul.f32 0.25, %v2407_v41 }
  0x4a   : > { %4138 = vst [vmem:[#allocation42_spill] sm:$0xff] %v2349_v51  ;;  %v693_v0 = vsel %vm658_vm0, %v690_v12, %v4148_v57  ;;  %v805_v12 = vadd.f32 %v691_v19, %v2391_v18 }
  0x4b   : > { %4139 = vst [vmem:[#allocation43_spill] sm:$0xff] %v2358_v25  ;;  %v801_v51 = vadd.f32 %v4149_v40, %v2358_v25  ;;  %v806_v57 = vadd.f32 %v693_v0, %v2362_v56  ;;  %v149_v40 = vld [vmem:[%s2040_s11 + $0x100] sm:$0x3]  ;;  %v4154_v0 = vrot.slane %v2370_v37, 1  ;;  %v2433_v19 = vmul.f32 0.25, %v291_v26 }
  0x4c   : > { %4140 = vst [vmem:[#allocation44_spill] sm:$0xff] %v2362_v56  ;;  %v4155_v56 = vrot.slane %v2275_v55, 1  ;;  %v2441_v55 = vmul.f32 0.75, %v147_v33  ;;  %v2473_v25 = vmul.f32 0.25, %v149_v40 }
  0x4d   : > { %4141 = vst [vmem:[#allocation45_spill] sm:$0xff] %v2365_v49  ;;  %1375 = vrot.lane.b32.xlu2 %v801_v51, %s2015_s12  ;;  %v698_v49 = vsel %vm658_vm0, %v695_v30, %v4154_v0  ;;  %1385 = vrot.lane.b32.xlu1 %v806_v57, %s2015_s12  ;;  %v2428_v51 = vmul.f32 0.25, %v292_v36  ;;  %v2435_v0 = vmul.f32 0.75, %v149_v40  ;;  %v2446_v57 = vmul.f32 0.75, %v288_v53 }
  0x4e   : > { %4142 = vst [vmem:[#allocation46_spill] sm:$0xff] %v2367_v52  ;;  %v152_v52 = vld [vmem:[%s2040_s11 + $0x118] sm:$0x3] }
  0x4f   : > { %4143 = vst [vmem:[#allocation47_spill] sm:$0xff] %v2374_v44  ;;  %v694_v44 = vrot.slane %v2400_v13, 1  ;;  %1383 = vrot.lane.b32.xlu0 %v805_v12, %s2015_s12 }
  0x50   : > { %4144 = vst [vmem:[#allocation48_spill] sm:$0xff] %v2377_v62  ;;  %v151_v62 = vld [vmem:[%s2040_s11 + $0x110] sm:$0xff] }
  0x51   : > { %4145 = vst [vmem:[#allocation49_spill] sm:$0xff] %v2379_v63  ;;  %v2449_v63 = vmul.f32 0.75, %v2306_v9  ;;  %v2467_v12 = vmul.f32 0.75, %v151_v62 }
  0x52   : > { %4146 = vst [vmem:[#allocation50_spill] sm:$0xff] %v2381_v32  ;;  %v804_v32 = vadd.f32 %v4155_v56, %v2394_v27  ;;  %v2443_v56 = vmul.f32 0.25, %v144_v61  ;;  %v699_v61 = vrot.slane %v2433_v19, 1 }
  0x53   : > { %4147 = vst [vmem:[#allocation51_spill] sm:$0xff] %v2383_v21  ;;  %v2425_v21 = vmul.f32 0.75, %v148_v47 }
  0x54   : > { %4150 = vst [vmem:[#allocation52_spill] sm:$0xff] %v2391_v18  ;;  %v2437_v18 = vmul.f32 0.25, %v145_v54  ;;  %v696_v54 = vsel %vm658_vm0, %v694_v44, %v695_v30  ;;  %v2469_v44 = vmul.f32 0.75, %v152_v52  ;;  %v2471_v30 = vmul.f32 0.25, %v148_v47 }
  0x55   : > { %4151 = vst [vmem:[#allocation53_spill] sm:$0xff] %v2394_v27  ;;  %v809_v27 = vadd.f32 %v698_v49, %v2415_v2  ;;  %1381 = vrot.lane.b32.xlu2 %v804_v32, %s2015_s12  ;;  %v294_v49 = vadd.f32 %v2443_v56, %v2441_v55  ;;  %v808_v32 = vadd.f32 %v696_v54, %v2446_v57  ;;  %v4172_v47 = vrot.slane %v2333_v10, 1 }
  0x56   : > { %4152 = vst [vmem:[#allocation54_spill] sm:$0xff] %v2400_v13  ;;  %v2439_v13 = vmul.f32 0.25, %v146_v60  ;;  %v700_v60 = vrot.slane %v2428_v51, 1  ;;  %v295_v53 = vadd.f32 %v2437_v18, %v2425_v21  ;;  %v2504_v10 = vmul.f32 0.25, %v147_v33 }
  0x57   : > { %4153 = vst [vmem:[#allocation55_spill] sm:$0xff] %v2415_v2  ;;  %1391 = vrot.lane.b32.xlu1 %v809_v27, %s2015_s12  ;;  %v2483_v2 = vmul.f32 0.75, %v291_v26  ;;  %v807_v40 = vadd.f32 %v4172_v47, %v2449_v63  ;;  %v2494_v27 = vmul.f32 0.25, %v294_v49  ;;  %1389 = vrot.lane.b32.xlu0 %v808_v32, %s2015_s12  ;;  %v155_v47 = vld [vmem:[%s2040_s11 + $0x130] sm:$0x3] }
  0x58   : > { %4156 = vst [vmem:[#allocation56_spill] sm:$0xff] %v2425_v21  ;;  %v2463_v9 = vadd.f32 %v2439_v13, %v2435_v0  ;;  %v4170_v21 = vrot.slane %v2431_v17, 1  ;;  %v2489_v54 = vmul.f32 0.25, %v295_v53 }
  0x59   : > { %4157 = vst [vmem:[#allocation57_spill] sm:$0xff] %v2428_v51  ;;  %v704_v33 = vrot.slane %v2494_v27, 1 }
  0x5a   : > { %4158 = vst [vmem:[#allocation58_spill] sm:$0xff] %v2433_v19  ;;  %v150_v19 = vld [vmem:[%s2040_s11 + $0x108] sm:$0xff] }
  0x5b   : > { %4159 = vst [vmem:[#allocation59_spill] sm:$0xff] %v2435_v0  ;;  %v2478_v0 = vmul.f32 0.75, %v292_v36  ;;  %v298_v36 = vadd.f32 %v2471_v30, %v2467_v12  ;;  %v2502_v26 = vmul.f32 0.75, %v150_v19 }
  0x5c   : > { %4160 = vst [vmem:[#allocation60_spill] sm:$0xff] %v2437_v18 }
  0x5d   : > { %4161 = vst [vmem:[#allocation61_spill] sm:$0xff] %v2439_v13  ;;  %1387 = vrot.lane.b32.xlu2 %v807_v40, %s2015_s12  ;;  %v297_v32 = vadd.f32 %v2504_v10, %v2502_v26  ;;  %v2527_v40 = vmul.f32 0.75, %v155_v47 }
  0x5e   : > { %4162 = vst [vmem:[#allocation62_spill] sm:$0xff] %v2441_v55  ;;  %v703_v55 = vsel %vm658_vm0, %v700_v60, %v4170_v21  ;;  %v2500_v21 = vadd.f32 %v2473_v25, %v2469_v44 }
  0x5f   : > { %4163 = vst [vmem:[#allocation63_spill] sm:$0xff] %v2443_v56  ;;  %v701_v56 = vsel %vm658_vm0, %v699_v61, %v700_v60  ;;  %v812_v60 = vadd.f32 %v703_v55, %v2478_v0  ;;  %v154_v61 = vld [vmem:[%s2040_s11 + $0x128] sm:$0xff] }
  0x60   : > { %4164 = vst [vmem:[#allocation64_spill] sm:$0xff] %v2446_v57  ;;  %v2492_v57 = vmul.f32 0.25, %v2463_v9  ;;  %v811_v13 = vadd.f32 %v701_v56, %v2483_v2  ;;  %v2521_v55 = vmul.f32 0.25, %v2500_v21  ;;  %v2525_v56 = vmul.f32 0.75, %v154_v61 }
  0x61   : > { %4165 = vst [vmem:[#allocation65_spill] sm:$0xff] %v2467_v12  ;;  %v705_v12 = vrot.slane %v2489_v54, 1  ;;  %1397 = vrot.lane.b32.xlu1 %v812_v60, %s2015_s12  ;;  %v2548_v60 = vmul.f32 0.25, %v297_v32 }
  0x62   : > { %4166 = vst [vmem:[#allocation66_spill] sm:$0xff] %v2469_v44  ;;  %v2531_v44 = vmul.f32 0.25, %v152_v52  ;;  %1395 = vrot.lane.b32.xlu0 %v811_v13, %s2015_s12  ;;  %v157_v13 = vld [vmem:[%s2040_s11 + $0x140] sm:$0xff] }
  0x63   : > { %4167 = vst [vmem:[#allocation67_spill] sm:$0xff] %v2471_v30  ;;  %v2518_v30 = vmul.f32 0.25, %v298_v36  ;;  %v706_v52 = vsel %vm658_vm0, %v704_v33, %v705_v12  ;;  %v158_v33 = vld [vmem:[%s2040_s11 + $0x148] sm:$0x3] }
  0x64   : > { %4168 = vst [vmem:[#allocation68_spill] sm:$0xff] %v2473_v25  ;;  %v2515_v25 = vmul.f32 0.75, %v2345_v11  ;;  %v2534_v11 = vmul.f32 0.75, %v295_v53 }
  0x65   : > { %4169 = vst [vmem:[#allocation69_spill] sm:$0xff] %v2478_v0  ;;  %v153_v0 = vld [vmem:[%s2040_s11 + $0x120] sm:$0xff]  ;;  %v710_v18 = vrot.slane %v2518_v30, 1 }
  0x66   : > { %4171 = vst [vmem:[#allocation70_spill] sm:$0xff] %v2483_v2  ;;  %v2529_v2 = vmul.f32 0.25, %v151_v62  ;;  %v2557_v51 = vmul.f32 0.75, %v153_v0 }
  0x67   : > { %4173 = vst [vmem:[#allocation71_spill] sm:$0xff] %v2489_v54 }
  0x68   : > { %4174 = vst [vmem:[#allocation72_spill] sm:$0xff] %v2494_v27  ;;  %v4183_v27 = vrot.slane %v2492_v57, 1 }
  0x69   : > { %4175 = vst [vmem:[#allocation73_spill] sm:$0xff] %v2502_v26  ;;  %v2540_v26 = vmul.f32 0.75, %v294_v49  ;;  %v2555_v49 = vadd.f32 %v2531_v44, %v2527_v40 }
  0x6a   : > { %4176 = vst [vmem:[#allocation74_spill] sm:$0xff] %v2504_v10  ;;  %v708_v54 = vsel %vm658_vm0, %v705_v12, %v4183_v27  ;;  %v4185_v10 = vrot.slane %v2370_v37, 1  ;;  %v301_v27 = vadd.f32 %v2529_v2, %v2525_v56  ;;  %v2559_v37 = vmul.f32 0.25, %v150_v19 }
  0x6b   : > { %4177 = vst [vmem:[#allocation75_spill] sm:$0xff] %v2518_v30  ;;  %v815_v12 = vadd.f32 %v708_v54, %v2534_v11  ;;  %v814_v53 = vadd.f32 %v706_v52, %v2540_v26  ;;  %v2578_v54 = vmul.f32 0.25, %v2555_v49  ;;  %v2587_v52 = vmul.f32 0.25, %v154_v61 }
  0x6c   : > { %4178 = vst [vmem:[#allocation76_spill] sm:$0xff] %v2525_v56  ;;  %v810_v62 = vadd.f32 %v4185_v10, %v2515_v25  ;;  %v2564_v10 = vmul.f32 0.75, %v2407_v41  ;;  %v2569_v56 = vmul.f32 0.75, %v298_v36  ;;  %v300_v41 = vadd.f32 %v2559_v37, %v2557_v51 }
  0x6d   : > { %4179 = vst [vmem:[#allocation77_spill] sm:$0xff] %v2527_v40  ;;  %v709_v40 = vrot.slane %v2548_v60, 1  ;;  %1403 = vrot.lane.b32.xlu1 %v815_v12, %s2015_s12  ;;  %v2585_v36 = vmul.f32 0.75, %v158_v33  ;;  %1401 = vrot.lane.b32.xlu0 %v814_v53, %s2015_s12  ;;  %v160_v53 = vld [vmem:[%s2040_s11 + $0x158] sm:$0xff] }
  0x6e   : > { %4180 = vst [vmem:[#allocation78_spill] sm:$0xff] %v2529_v2  ;;  %1393 = vrot.lane.b32.xlu2 %v810_v62, %s2015_s12  ;;  %v2575_v2 = vmul.f32 0.25, %v301_v27  ;;  %v2583_v62 = vmul.f32 0.75, %v157_v13 }
  0x6f   : > { %4181 = vst [vmem:[#allocation79_spill] sm:$0xff] %v2531_v44  ;;  %v4191_v44 = vrot.slane %v2521_v55, 1  ;;  %v711_v12 = vsel %vm658_vm0, %v709_v40, %v710_v18  ;;  %v2615_v40 = vmul.f32 0.25, %v153_v0  ;;  %v4205_v0 = vrot.slane %v2492_v57, 1 }
  0x70   : > { %4182 = vst [vmem:[#allocation80_spill] sm:$0xff] %v2534_v11  ;;  %v156_v11 = vld [vmem:[%s2040_s11 + $0x138] sm:$0xff]  ;;  %v715_v61 = vrot.slane %v2575_v2, 1  ;;  %v2647_v57 = vmul.f32 0.75, %v300_v41 }
  0x71   : > { %4184 = vst [vmem:[#allocation81_spill] sm:$0xff] %v2540_v26  ;;  %v713_v19 = vsel %vm658_vm0, %v710_v18, %v4191_v44  ;;  %v2589_v26 = vmul.f32 0.25, %v155_v47  ;;  %v4197_v44 = vrot.slane %v2431_v17, 1  ;;  %v2605_v17 = vmul.f32 0.75, %v2463_v9 }
  0x72   : > { %4186 = vst [vmem:[#allocation82_spill] sm:$0xff] %v2548_v60  ;;  %v818_v30 = vadd.f32 %v713_v19, %v2569_v56  ;;  %v2613_v18 = vmul.f32 0.75, %v156_v11  ;;  %v161_v19 = vld [vmem:[%s2040_s11 + $0x160] sm:$0x3]  ;;  %v4204_v9 = vrot.slane %v2578_v54, 1 }
  0x73   : > { %4187 = vst [vmem:[#allocation83_spill] sm:$0xff] %v2557_v51  ;;  %v813_v60 = vadd.f32 %v4197_v44, %v2564_v10  ;;  %v2596_v51 = vmul.f32 0.75, %v297_v32  ;;  %v304_v44 = vadd.f32 %v2587_v52, %v2583_v62  ;;  %v2611_v32 = vadd.f32 %v2589_v26, %v2585_v36 }
  0x74   : > { %4188 = vst [vmem:[#allocation84_spill] sm:$0xff] %v2559_v37  ;;  %v2602_v37 = vmul.f32 0.25, %v300_v41  ;;  %v2679_v41 = vmul.f32 0.25, %v160_v53 }
  0x75   : > { %4189 = vst [vmem:[#allocation85_spill] sm:$0xff] %v2564_v10  ;;  %v817_v47 = vadd.f32 %v711_v12, %v2596_v51  ;;  %1409 = vrot.lane.b32.xlu1 %v818_v30, %s2015_s12  ;;  %v303_v12 = vadd.f32 %v2615_v40, %v2613_v18  ;;  %v2645_v30 = vmul.f32 0.25, %v158_v33  ;;  %v164_v33 = vld [vmem:[%s2040_s11 + $0x178] sm:$0x3] }
  0x76   : > { %4190 = vst [vmem:[#allocation86_spill] sm:$0xff] %v2569_v56  ;;  %1399 = vrot.lane.b32.xlu2 %v813_v60, %s2015_s12  ;;  %v2621_v56 = vmul.f32 0.75, %v301_v27  ;;  %v2632_v60 = vmul.f32 0.25, %v304_v44  ;;  %v2635_v27 = vmul.f32 0.25, %v2611_v32 }
  0x77   : > { %4192 = vst [vmem:[#allocation87_spill] sm:$0xff] %v2575_v2  ;;  %v2651_v2 = vmul.f32 0.25, %v156_v11  ;;  %1407 = vrot.lane.b32.xlu0 %v817_v47, %s2015_s12  ;;  %v2657_v10 = vmul.f32 0.25, %v303_v12  ;;  %v2664_v11 = vmul.f32 0.75, %v2500_v21  ;;  %v2681_v21 = vmul.f32 0.25, %v161_v19 }
  0x78   : > { %4193 = vst [vmem:[#allocation88_spill] sm:$0xff] %v2583_v62  ;;  %v718_v62 = vsel %vm658_vm0, %v715_v61, %v4204_v9  ;;  %v2639_v9 = vmul.f32 0.75, %v160_v53 }
  0x79   : > { %4194 = vst [vmem:[#allocation89_spill] sm:$0xff] %v2585_v36  ;;  %v159_v36 = vld [vmem:[%s2040_s11 + $0x150] sm:$0xff] }
  0x7a   : > { %4195 = vst [vmem:[#allocation90_spill] sm:$0xff] %v2587_v52  ;;  %v714_v52 = vrot.slane %v2602_v37, 1 }
  0x7b   : > { %4196 = vst [vmem:[#allocation91_spill] sm:$0xff] %v2589_v26  ;;  %v816_v26 = vadd.f32 %v4205_v0, %v2605_v17  ;;  %v2649_v0 = vmul.f32 0.75, %v159_v36 }
  0x7c   : > { %4198 = vst [vmem:[#allocation92_spill] sm:$0xff] %v2596_v51  ;;  %v2641_v51 = vmul.f32 0.75, %v161_v19 }
  0x7d   : > { %4199 = vst [vmem:[#allocation93_spill] sm:$0xff] %v2602_v37  ;;  %v2643_v37 = vmul.f32 0.25, %v157_v13  ;;  %v163_v13 = vld [vmem:[%s2040_s11 + $0x170] sm:$0xff] }
  0x7e   : > { %4200 = vst [vmem:[#allocation94_spill] sm:$0xff] %v2605_v17  ;;  %v716_v17 = vsel %vm658_vm0, %v714_v52, %v715_v61  ;;  %1405 = vrot.lane.b32.xlu2 %v816_v26, %s2015_s12  ;;  %v306_v61 = vadd.f32 %v2651_v2, %v2649_v0  ;;  %v2677_v26 = vmul.f32 0.75, %v164_v33 }
  0x7f   : > { %4201 = vst [vmem:[#allocation95_spill] sm:$0xff] %v2613_v18  ;;  %v821_v18 = vadd.f32 %v718_v62, %v2621_v56  ;;  %v307_v47 = vadd.f32 %v2643_v37, %v2639_v9  ;;  %v2670_v62 = vadd.f32 %v2645_v30, %v2641_v51  ;;  %v820_v52 = vadd.f32 %v716_v17, %v2647_v57 }
  0x80   : > { %4202 = vst [vmem:[#allocation96_spill] sm:$0xff] %v2615_v40  ;;  %v720_v40 = vrot.slane %v2632_v60, 1  ;;  %v4220_v17 = vrot.slane %v2635_v27, 1  ;;  %v2699_v19 = vmul.f32 0.25, %v306_v61 }
  0x81   : > { %4203 = vst [vmem:[#allocation97_spill] sm:$0xff] %v2621_v56  ;;  %v2675_v56 = vmul.f32 0.75, %v163_v13  ;;  %1415 = vrot.lane.b32.xlu1 %v821_v18, %s2015_s12  ;;  %v2697_v53 = vmul.f32 0.25, %v2670_v62  ;;  %v2703_v18 = vmul.f32 0.25, %v159_v36  ;;  %1413 = vrot.lane.b32.xlu0 %v820_v52, %s2015_s12  ;;  %v4227_v36 = vrot.slane %v2076_v34, 7 }
  0x82   : > { %4206 = vst [vmem:[#allocation98_spill] sm:$0xff] %v2632_v60  ;;  %v162_v60 = vld [vmem:[%s2040_s11 + $0x168] sm:$0xff] }
  0x83   : > { %4207 = vst [vmem:[#allocation99_spill] sm:$0xff] %v2639_v9  ;;  %v2685_v9 = vmul.f32 0.75, %v304_v44  ;;  %v2701_v44 = vmul.f32 0.75, %v162_v60 }
  0x84   : > { %4208 = vst [vmem:[#allocation100_spill] sm:$0xff] %v2641_v51  ;;  %v719_v51 = vrot.slane %v2657_v10, 1 }
  0x85   : > { %4209 = vst [vmem:[#allocation101_spill] sm:$0xff] %v2643_v37 }
  0x86   : > { %4210 = vst [vmem:[#allocation102_spill] sm:$0xff] %v2645_v30  ;;  %v2694_v30 = vmul.f32 0.25, %v307_v47  ;;  %v721_v37 = vsel %vm658_vm0, %v719_v51, %v720_v40  ;;  %v724_v51 = vrot.slane %v2699_v19, 1 }
  0x87   : > { %4211 = vst [vmem:[#allocation103_spill] sm:$0xff] %v2647_v57  ;;  %v723_v57 = vsel %vm658_vm0, %v720_v40, %v4220_v17  ;;  %v2706_v17 = vmul.f32 0.75, %v303_v12  ;;  %v2735_v40 = vmul.f32 0.75, %v307_v47 }
  0x88   : > { %4212 = vst [vmem:[#allocation104_spill] sm:$0xff] %v2649_v0  ;;  %v4221_v0 = vrot.slane %v2521_v55, 1  ;;  %v310_v55 = vadd.f32 %v2679_v41, %v2675_v56  ;;  %v725_v12 = vrot.slane %v2694_v30, 1 }
  0x89   : > { %4213 = vst [vmem:[#allocation105_spill] sm:$0xff] %v2651_v2  ;;  %v823_v34 = vadd.f32 %v721_v37, %v2706_v17  ;;  %v4230_v37 = vrot.slane %v2697_v53, 1 }
  0x8a   : > { %4214 = vst [vmem:[#allocation106_spill] sm:$0xff] %v2657_v10  ;;  %v819_v2 = vadd.f32 %v4221_v0, %v2664_v11  ;;  %v2712_v0 = vadd.f32 %v2681_v21, %v2677_v26  ;;  %v824_v10 = vadd.f32 %v723_v57, %v2685_v9  ;;  %v166_v57 = vld [vmem:[%s2040_s11 + $0x188] sm:$0xff] }
  0x8b   : > { %4215 = vst [vmem:[#allocation107_spill] sm:$0xff] %v2664_v11  ;;  %v4226_v11 = vrot.slane %v2067_v28, 7  ;;  %v309_v28 = vadd.f32 %v2703_v18, %v2701_v44  ;;  %v728_v47 = vsel %vm658_vm0, %v725_v12, %v4230_v37  ;;  %1419 = vrot.lane.b32.xlu0 %v823_v34, %s2015_s12  ;;  %v2769_v37 = vmul.f32 0.25, %v162_v60  ;;  %v1358_v34 = vpop.permute.xlu2 %1357 }
  0x8c   : > { %4216 = vst [vmem:[#allocation108_spill] sm:$0xff] %v2675_v56  ;;  %1411 = vrot.lane.b32.xlu2 %v819_v2, %s2015_s12  ;;  %v2727_v56 = vmul.f32 0.75, %v2555_v49  ;;  %v2737_v2 = vmul.f32 0.25, %v310_v55  ;;  %1421 = vrot.lane.b32.xlu1 %v824_v10, %s2015_s12  ;;  %v2743_v49 = vmul.f32 0.75, %v166_v57  ;;  %v726_v10 = vsel %vm658_vm0, %v724_v51, %v725_v12 }
  0x8d   : > { %4217 = vst [vmem:[#allocation109_spill] sm:$0xff] %v2677_v26  ;;  %v2721_v52 = vsel %vm481_vm1, %v4227_v36, %v4226_v11  ;;  %v2740_v11 = vmul.f32 0.25, %v2712_v0  ;;  %v2747_v26 = vmul.f32 0.25, %v163_v13  ;;  %v2761_v57 = vmul.f32 0.25, %v309_v28 }
  0x8e   : > { %4218 = vst [vmem:[#allocation110_spill] sm:$0xff] %v2681_v21  ;;  %v2758_v21 = vmul.f32 0.75, %v306_v61  ;;  %v2780_v12 = vmul.f32 0.75, %v2611_v32 }
  0x8f   : > { %4219 = vst [vmem:[#allocation111_spill] sm:$0xff] %v2685_v9  ;;  %v167_v9 = vld [vmem:[%s2040_s11 + $0x190] sm:$0x3]  ;;  %v4044_v13 = vrot.slane %v2740_v11, 1  ;;  %v313_v61 = vadd.f32 %v2747_v26, %v2743_v49 }
  0x90   : > { %4222 = vst [vmem:[#allocation112_spill] sm:$0xff] %v2699_v19  ;;  %v2745_v36 = vmul.f32 0.75, %v167_v9  ;;  %v2749_v19 = vmul.f32 0.25, %v164_v33  ;;  %v730_v9 = vrot.slane %v2737_v2, 1  ;;  %v826_v60 = vadd.f32 %v726_v10, %v2758_v21 }
  0x91   : > { %4223 = vst [vmem:[#allocation113_spill] sm:$0xff] %v2701_v44  ;;  %v165_v44 = vld [vmem:[%s2040_s11 + $0x180] sm:$0xff] }
  0x92   : > { %4224 = vst [vmem:[#allocation114_spill] sm:$0xff] %v2703_v18  ;;  %v2767_v33 = vmul.f32 0.75, %v165_v44  ;;  %v2788_v44 = vmul.f32 0.75, %v310_v55  ;;  %v733_v51 = vsel %vm658_vm0, %v730_v9, %v4044_v13  ;;  %v4234_v13 = vrot.slane %v2635_v27, 1 }
  0x93   : > { %4225 = vst [vmem:[#allocation115_spill] sm:$0xff] %v2706_v17  ;;  %v4231_v17 = vrot.slane %v2578_v54, 1  ;;  %v827_v54 = vadd.f32 %v728_v47, %v2735_v40  ;;  %v1497_v47 = vsel %vm1491_vm2, %v2155_v29, %v1358_v34  ;;  %1425 = vrot.lane.b32.xlu0 %v826_v60, %s2015_s12  ;;  %v2829_v60 = vmul.f32 0.75, %v313_v61 }
  0x94   : > { %4228 = vst [vmem:[#allocation116_spill] sm:$0xff] %v2743_v49  ;;  %v312_v32 = vadd.f32 %v2769_v37, %v2767_v33  ;;  %v825_v49 = vadd.f32 %v4234_v13, %v2780_v12  ;;  %v2824_v13 = vmul.f32 0.75, %v2670_v62 }
  0x95   : > { %4229 = vst [vmem:[#allocation117_spill] sm:$0xff] %v2745_v36  ;;  %v822_v18 = vadd.f32 %v4231_v17, %v2727_v56  ;;  %v2776_v17 = vadd.f32 %v2749_v19, %v2745_v36  ;;  %1427 = vrot.lane.b32.xlu1 %v827_v54, %s2015_s12  ;;  %v2799_v36 = vmul.f32 0.25, %v313_v61  ;;  %v830_v54 = vadd.f32 %v733_v51, %v2788_v44  ;;  %v1364_v51 = vpop.permute.xlu2 %1363 }
  0x96   : > { %4232 = vst [vmem:[#allocation118_spill] sm:$0xff] %v2758_v21  ;;  %v2817_v10 = vmul.f32 0.25, %v312_v32 }
  0x97   : > { %4233 = vst [vmem:[#allocation119_spill] sm:$0xff] %v2767_v33  ;;  %1417 = vrot.lane.b32.xlu2 %v822_v18, %s2015_s12  ;;  %v729_v18 = vrot.slane %v2761_v57, 1  ;;  %v2802_v55 = vmul.f32 0.25, %v2776_v17  ;;  %v2812_v33 = vmul.f32 0.75, %v309_v28  ;;  %v735_v34 = vrot.slane %v2799_v36, 1 }
  0x98   : > { %1548 = vst.msk [vmem:[%s2785_s16 + $0x2f] sm:$0x1] %vm1544_vm3, %v1497_v47  ;;  %v4235_v47 = vrot.slane %v2124_v1, 7  ;;  %v322_v28 = vadd.f32 %v2099_v48, %v2046_v4  ;;  %v734_v62 = vrot.slane %v2817_v10, 1  ;;  %v321_v4 = vadd.f32 %v2117_v58, %v2052_v15 }
  0x99   : > { %v731_v29 = vsel %vm658_vm0, %v729_v18, %v730_v9  ;;  %v4048_v21 = vrot.slane %v2802_v55, 1  ;;  %v485_v18 = vrot.slane %v2082_v38, 7  ;;  %v4236_v48 = vrot.slane %v2697_v53, 1 }
  0x9a   : > { %v586_v27 = vadd.f32 %v4235_v47, %v2183_v5  ;;  %v829_v9 = vadd.f32 %v731_v29, %v2812_v33  ;;  %v2845_v61 = vmul.f32 0.25, %v322_v28  ;;  %v4237_v29 = vrot.slane %v2089_v43, 7 }
  0x9b   : > { %v738_v5 = vsel %vm658_vm0, %v735_v34, %v4048_v21  ;;  %v828_v38 = vadd.f32 %v4236_v48, %v2824_v13  ;;  %v1352_v21 = vpop.permute.xlu1 %1351  ;;  %v2856_v58 = vmul.f32 0.75, %v312_v32  ;;  %v325_v32 = vadd.f32 %v2145_v24, %v2063_v23 }
  0x9c   : > { %v487_v47 = vsel %vm481_vm1, %v485_v18, %v4237_v29  ;;  %1431 = vrot.lane.b32.xlu0 %v829_v9, %s2015_s12  ;;  %v1494_v15 = vsel %vm1491_vm2, %v2094_v45, %v1352_v21  ;;  %v833_v53 = vadd.f32 %v738_v5, %v2829_v60  ;;  %v1124_v9 = vrot.slane %v2845_v61, 1 }
  0x9d   : > { %1433 = vrot.lane.b32.xlu1 %v830_v54, %s2015_s12  ;;  %v2848_v54 = vmul.f32 0.25, %v2058_v20  ;;  %1545 = vst.msk [vmem:[%s2785_s16 + $0xf] sm:$0x1] %vm1544_vm3, %v1494_v15  ;;  %v582_v43 = vadd.f32 %v487_v47, %v2226_v8  ;;  %v2869_v21 = vmul.f32 0.75, %v2712_v0  ;;  %v324_v8 = vadd.f32 %v2166_v42, %v2061_v22  ;;  %v1356_v48 = vpop.permute.xlu2 %1355 }
  0x9e   : > { %v488_v0 = vrot.slane %v2137_v14, 7  ;;  %v492_v22 = vrot.slane %v2176_v59, 7  ;;  %v2896_v42 = vmul.f32 0.25, %v325_v32  ;;  %v579_v29 = vadd.f32 %v2721_v52, %v2078_v35 }
  0x9f   : > { %1423 = vrot.lane.b32.xlu2 %v825_v49, %s2015_s12  ;;  %v1500_v49 = vsel %vm1491_vm2, %v586_v27, %v1364_v51  ;;  %v736_v27 = vsel %vm658_vm0, %v734_v62, %v735_v34  ;;  %v2862_v51 = vmul.f32 0.25, %v321_v4  ;;  %v1126_v45 = vrot.slane %v2848_v54, 1 }
  0xa0   : > { %1551 = vst.msk [vmem:[%s2785_s16 + $0x4f] sm:$0x1] %vm1544_vm3, %v1500_v49  ;;  %v1348_v49 = vpop.permute.xlu0 %1347  ;;  %v832_v5 = vadd.f32 %v736_v27, %v2856_v58  ;;  %v581_v62 = vadd.f32 %v485_v18, %v2096_v46  ;;  %v4238_v46 = vrot.slane %v2740_v11, 1  ;;  %v2903_v59 = vmul.f32 0.75, %v321_v4 }
  0xa1   : > { %v1492_v34 = vsel %vm1491_vm2, %v2105_v50, %v1348_v49  ;;  %v1123_v23 = vrot.slane %v2862_v51, 1  ;;  %v1496_v50 = vsel %vm1491_vm2, %v582_v43, %v1356_v48  ;;  %v1127_v24 = vsel %vm658_vm0, %v1124_v9, %v1126_v45 }
  0xa2   : > { %1541 = vst.msk [vmem:[%s2785_s16 - $0x1] sm:$0xfe] %vm1540_vm4, %v1492_v34  ;;  %v831_v14 = vadd.f32 %v4238_v46, %v2869_v21  ;;  %v2905_v47 = vmul.f32 0.25, %v324_v8  ;;  %v4239_v11 = vrot.slane %v2124_v1, 7  ;;  %v328_v27 = vadd.f32 %v2185_v6, %v2074_v31  ;;  %v4240_v6 = vld [vmem:[#allocation5_spill] sm:$0xff] }
  0xa3   : > { %1547 = vst.msk [vmem:[%s2785_s16 + $0x27] sm:$0xff] %vm1542_vm5, %v1496_v50  ;;  %v1354_v18 = vpop.permute.xlu1 %1353  ;;  %v2916_v43 = vadd.f32 %v2189_v7, %v2084_v39  ;;  %v1125_v52 = vsel %vm658_vm0, %v1123_v23, %v1124_v9  ;;  %v589_v4 = vadd.f32 %v492_v22, %v2295_v3  ;;  %v1129_v1 = vrot.slane %v2896_v42, 1  ;;  %v4241_v9 = vld [vmem:[#allocation13_spill] sm:$0xff] }
  0xa4   : > { %1437 = vrot.lane.b32.xlu0 %v832_v5, %s2015_s12  ;;  %v1495_v15 = vsel %vm1491_vm2, %v581_v62, %v1354_v18  ;;  %v2927_v31 = vmul.f32 0.75, %v2776_v17  ;;  %v1128_v5 = vrot.slane %v2905_v47, 1  ;;  %v491_v62 = vrot.slane %v4241_v9, 7  ;;  %v4242_v17 = vld [vmem:[#allocation2_spill] sm:$0xff] }
  0xa5   : > { %1439 = vrot.lane.b32.xlu1 %v833_v53, %s2015_s12  ;;  %v490_v53 = vsel %vm481_vm1, %v488_v0, %v4239_v11  ;;  %1546 = vst.msk [vmem:[%s2785_s16 + $0x1f] sm:$0xfe] %vm1540_vm4, %v1495_v15  ;;  %v1251_v3 = vadd.f32 %v1125_v52, %v2903_v59  ;;  %v1370_v48 = vpop.permute.xlu2 %1369  ;;  %v2936_v23 = vmul.f32 0.25, %v328_v27  ;;  %v2939_v50 = vmul.f32 0.25, %v2916_v43 }
  0xa6   : > { %v585_v7 = vadd.f32 %v490_v53, %v4240_v6  ;;  %v1503_v18 = vsel %vm1491_vm2, %v589_v4, %v1370_v48  ;;  %v4246_v53 = vrot.slane %v2802_v55, 1  ;;  %v1130_v6 = vsel %vm658_vm0, %v1128_v5, %v1129_v1  ;;  %v4252_v5 = vld [vmem:[#allocation19_spill] sm:$0xff] }
  0xa7   : > { %1429 = vrot.lane.b32.xlu2 %v828_v38, %s2015_s12  ;;  %v2883_v38 = vmul.f32 0.75, %v322_v28  ;;  %v2899_v28 = vmul.f32 0.25, %v2139_v16  ;;  %1554 = vst.msk [vmem:[%s2785_s16 + $0x6f] sm:$0x1] %vm1544_vm3, %v1503_v18  ;;  %v493_v4 = vsel %vm481_vm1, %v491_v62, %v492_v22  ;;  %v1134_v48 = vrot.slane %v2936_v23, 1 }
  0xa8   : > { %v1350_v49 = vpop.permute.xlu0 %1349  ;;  %v834_v52 = vadd.f32 %v4246_v53, %v2927_v31 }
  0xa9   : > { %v1252_v35 = vadd.f32 %v1127_v24, %v2883_v38  ;;  %v4050_v34 = vrot.slane %v2899_v28, 1  ;;  %v1493_v39 = vsel %vm1491_vm2, %v579_v29, %v1350_v49  ;;  %v4243_v24 = vld [vmem:[#allocation11_spill] sm:$0xff]  ;;  %v4245_v29 = vld [vmem:[#allocation14_spill] sm:$0xff] }
  0xaa   : > { %1543 = vst.msk [vmem:[%s2785_s16 + $0x7] sm:$0xff] %vm1542_vm5, %v1493_v39  ;;  %v327_v46 = vadd.f32 %v4243_v24, %v4242_v17  ;;  %v495_v15 = vrot.slane %v4245_v29, 7  ;;  %v4247_v39 = vld [vmem:[#allocation7_spill] sm:$0xff]  ;;  %v4049_v17 = vrot.slane %v2939_v50, 1  ;;  %v4254_v29 = vld [vmem:[#allocation20_spill] sm:$0xff] }
  0xab   : > { %v1132_v11 = vsel %vm658_vm0, %v1129_v1, %v4050_v34  ;;  %v1362_v49 = vpop.permute.xlu1 %1361  ;;  %v4251_v1 = vld [vmem:[#allocation3_spill] sm:$0xff]  ;;  %v4268_v34 = vld [vmem:[#allocation9_spill] sm:$0xff] }
  0xac   : > { %1639 = vrot.lane.b32.xlu0 %v1251_v3, %s2015_s12  ;;  %v1499_v9 = vsel %vm1491_vm2, %v585_v7, %v1362_v49  ;;  %v2965_v55 = vmul.f32 0.25, %v327_v46  ;;  %v331_v22 = vadd.f32 %v4252_v5, %v4251_v1  ;;  %v2975_v7 = vmul.f32 0.75, %v2058_v20  ;;  %v4253_v3 = vld [vmem:[#allocation4_spill] sm:$0xff]  ;;  %v4257_v5 = vld [vmem:[#allocation6_spill] sm:$0xff] }
  0xad   : > { %1641 = vrot.lane.b32.xlu1 %v1252_v35, %s2015_s12  ;;  %v584_v35 = vadd.f32 %v488_v0, %v4247_v39  ;;  %1550 = vst.msk [vmem:[%s2785_s16 + $0x47] sm:$0xff] %vm1542_vm5, %v1499_v9  ;;  %v4250_v0 = vld [vmem:[#allocation43_spill] sm:$0xff]  ;;  %v2979_v53 = vadd.f32 %v4254_v29, %v4253_v3  ;;  %v4255_v39 = vld [vmem:[#allocation12_spill] sm:$0xff]  ;;  %v1137_v20 = vsel %vm658_vm0, %v1134_v48, %v4049_v17  ;;  %v1376_v1 = vpop.permute.xlu2 %1375  ;;  %v4258_v3 = vld [vmem:[#allocation22_spill] sm:$0xff] }
  0xae   : > { %4249 = vst [vmem:[#allocation2_spill] sm:$0xff] %v2965_v55  ;;  %v592_v24 = vadd.f32 %v495_v15, %v4250_v0  ;;  %v588_v9 = vadd.f32 %v493_v4, %v4255_v39  ;;  %v2986_v0 = vmul.f32 0.75, %v328_v27  ;;  %v330_v29 = vadd.f32 %v4258_v3, %v4257_v5  ;;  %v4261_v27 = vld [vmem:[#allocation24_spill] sm:$0xff]  ;;  %v4262_v3 = vld [vmem:[#allocation15_spill] sm:$0xff] }
  0xaf   : > { %1435 = vrot.lane.b32.xlu2 %v831_v14, %s2015_s12  ;;  %v2944_v14 = vmul.f32 0.75, %v325_v32  ;;  %v2957_v32 = vmul.f32 0.75, %v324_v8  ;;  %v1253_v39 = vadd.f32 %v1126_v45, %v2975_v7  ;;  %v3006_v17 = vmul.f32 0.25, %v2979_v53 }
  0xb0   : > { %v1360_v18 = vpop.permute.xlu0 %1359  ;;  %4256 = vst [vmem:[#allocation11_spill] sm:$0xff] %v2986_v0 }
  0xb1   : > { %4244 = vst [vmem:[#allocation5_spill] sm:$0xff] %v2944_v14  ;;  %v1255_v8 = vadd.f32 %v1132_v11, %v2944_v14  ;;  %v1498_v49 = vsel %vm1491_vm2, %v584_v35, %v1360_v18  ;;  %v1254_v11 = vadd.f32 %v1130_v6, %v2957_v32  ;;  %v1506_v35 = vsel %vm1491_vm2, %v592_v24, %v1376_v1  ;;  %v4259_v6 = vld [vmem:[#allocation18_spill] sm:$0xff] }
  0xb2   : > { %4248 = vst [vmem:[#allocation13_spill] sm:$0xff] %v2957_v32  ;;  %v494_v4 = vrot.slane %v4259_v6, 7  ;;  %v2997_v18 = vmul.f32 0.25, %v331_v22  ;;  %v1258_v1 = vadd.f32 %v1137_v20, %v2986_v0  ;;  %v3012_v6 = vmul.f32 0.75, %v327_v46  ;;  %v4266_v20 = vld [vmem:[#allocation8_spill] sm:$0xff]  ;;  %v4270_v0 = vld [vmem:[#allocation10_spill] sm:$0xff] }
  0xb3   : > { %1549 = vst.msk [vmem:[%s2785_s16 + $0x3f] sm:$0xfe] %vm1540_vm4, %v1498_v49  ;;  %v498_v49 = vrot.slane %v4261_v27, 7  ;;  %v1368_v5 = vpop.permute.xlu1 %1367  ;;  %v3025_v46 = vmul.f32 0.75, %v2139_v16 }
  0xb4   : > { %4260 = vst [vmem:[#allocation14_spill] sm:$0xff] %v2997_v18  ;;  %1645 = vrot.lane.b32.xlu0 %v1254_v11, %s2015_s12  ;;  %v1502_v24 = vsel %vm1491_vm2, %v588_v9, %v1368_v5  ;;  %v496_v45 = vsel %vm481_vm1, %v494_v4, %v495_v15  ;;  %v1139_v27 = vrot.slane %v2997_v18, 1  ;;  %v4267_v5 = vld [vmem:[#allocation27_spill] sm:$0xff] }
  0xb5   : > { %1647 = vrot.lane.b32.xlu1 %v1255_v8, %s2015_s12  ;;  %1557 = vst.msk [vmem:[%s2785_s16 + $0x8f] sm:$0x1] %vm1544_vm3, %v1506_v35  ;;  %v587_v8 = vadd.f32 %v491_v62, %v4262_v3  ;;  %v3014_v35 = vmul.f32 0.25, %v330_v29  ;;  %v4265_v62 = vld [vmem:[#allocation53_spill] sm:$0xff]  ;;  %v4272_v9 = vld [vmem:[#allocation23_spill] sm:$0xff] }
  0xb6   : > { %4263 = vst [vmem:[#allocation7_spill] sm:$0xff] %v3012_v6  ;;  %v595_v3 = vadd.f32 %v498_v49, %v4265_v62  ;;  %v4271_v62 = vld [vmem:[#allocation32_spill] sm:$0xff]  ;;  %v591_v16 = vadd.f32 %v496_v45, %v4272_v9  ;;  %v4277_v45 = vrot.slane %v2899_v28, 1 }
  0xb7   : > { %1441 = vrot.lane.b32.xlu2 %v834_v52, %s2015_s12  ;;  %v1133_v52 = vrot.slane %v2965_v55, 1  ;;  %4264 = vst [vmem:[#allocation43_spill] sm:$0xff] %v3014_v35  ;;  %v333_v32 = vadd.f32 %v4271_v62, %v4270_v0  ;;  %v1138_v18 = vrot.slane %v3014_v35, 1  ;;  %v1382_v55 = vpop.permute.xlu2 %1381  ;;  %v3061_v62 = vmul.f32 0.75, %v330_v29  ;;  %v4282_v28 = vld [vmem:[#allocation16_spill] sm:$0xff] }
  0xb8   : > { %1553 = vst.msk [vmem:[%s2785_s16 + $0x67] sm:$0xff] %vm1542_vm5, %v1502_v24  ;;  %v1366_v11 = vpop.permute.xlu0 %1365  ;;  %v334_v24 = vadd.f32 %v4267_v5, %v4266_v20  ;;  %v3042_v20 = vmul.f32 0.75, %v331_v22  ;;  %v4274_v5 = vld [vmem:[#allocation30_spill] sm:$0xff]  ;;  %v1256_v9 = vadd.f32 %v4277_v45, %v3025_v46  ;;  %v4285_v35 = vld [vmem:[#allocation36_spill] sm:$0xff] }
  0xb9   : > { %v1135_v54 = vsel %vm658_vm0, %v1133_v52, %v1134_v48  ;;  %v4269_v48 = vld [vmem:[#allocation28_spill] sm:$0xff]  ;;  %v1501_v15 = vsel %vm1491_vm2, %v587_v8, %v1366_v11  ;;  %v497_v8 = vrot.slane %v4274_v5, 7  ;;  %v4275_v11 = vld [vmem:[#allocation38_spill] sm:$0xff]  ;;  %4280 = vst [vmem:[#allocation4_spill] sm:$0xff] %v3061_v62  ;;  %v3063_v5 = vmul.f32 0.25, %v333_v32 }
  0xba   : > { %v3031_v52 = vadd.f32 %v4269_v48, %v4268_v34  ;;  %1552 = vst.msk [vmem:[%s2785_s16 + $0x5f] sm:$0xfe] %vm1540_vm4, %v1501_v15  ;;  %v1509_v34 = vsel %vm1491_vm2, %v595_v3, %v1382_v55  ;;  %v501_v0 = vrot.slane %v4275_v11, 7  ;;  %v4276_v48 = vrot.slane %v3006_v17, 1  ;;  %v4279_v3 = vld [vmem:[#allocation29_spill] sm:$0xff] }
  0xbb   : > { %4273 = vst [vmem:[#allocation3_spill] sm:$0xff] %v3042_v20  ;;  %v1374_v55 = vpop.permute.xlu1 %1373  ;;  %v590_v15 = vadd.f32 %v494_v4, %v4279_v3  ;;  %v1140_v11 = vsel %vm658_vm0, %v1138_v18, %v1139_v27  ;;  %v499_v4 = vsel %vm481_vm1, %v497_v8, %v498_v49  ;;  %v4286_v49 = vld [vmem:[#allocation40_spill] sm:$0xff] }
  0xbc   : > { %1560 = vst.msk [vmem:[%s2785_s16 + $0xaf] sm:$0x1] %vm1544_vm3, %v1509_v34  ;;  %v3058_v22 = vmul.f32 0.25, %v3031_v52  ;;  %v1505_v34 = vsel %vm1491_vm2, %v591_v16, %v1374_v55  ;;  %v3083_v16 = vmul.f32 0.75, %v2916_v43  ;;  %v500_v55 = vrot.slane %v4286_v49, 7  ;;  %v4289_v43 = vld [vmem:[#allocation21_spill] sm:$0xff] }
  0xbd   : > { %1653 = vrot.lane.b32.xlu1 %v1258_v1, %s2015_s12  ;;  %v3055_v1 = vmul.f32 0.25, %v334_v24  ;;  %4281 = vst [vmem:[#allocation20_spill] sm:$0xff] %v3063_v5 }
  0xbe   : > { %1556 = vst.msk [vmem:[%s2785_s16 + $0x87] sm:$0xff] %vm1542_vm5, %v1505_v34 }
  0xbf   : > { %1643 = vrot.lane.b32.xlu2 %v1253_v39, %s2015_s12  ;;  %v1257_v39 = vadd.f32 %v1135_v54, %v3012_v6  ;;  %v1142_v54 = vsel %vm658_vm0, %v1139_v27, %v4276_v48  ;;  %4278 = vst [vmem:[#allocation19_spill] sm:$0xff] %v3055_v1  ;;  %v4283_v48 = vld [vmem:[#allocation35_spill] sm:$0xff]  ;;  %v4284_v6 = vld [vmem:[#allocation17_spill] sm:$0xff]  ;;  %v1144_v18 = vrot.slane %v3055_v1, 1  ;;  %v1388_v34 = vpop.permute.xlu2 %1387  ;;  %v4290_v27 = vld [vmem:[#allocation42_spill] sm:$0xff] }
  0xc0   : > { %v337_v45 = vadd.f32 %v4283_v48, %v4282_v28  ;;  %v3072_v14 = vadd.f32 %v4285_v35, %v4284_v6  ;;  %v1261_v29 = vadd.f32 %v1142_v54, %v3042_v20  ;;  %v1372_v3 = vpop.permute.xlu0 %1371  ;;  %v1260_v35 = vadd.f32 %v1140_v11, %v3061_v62 }
  0xc1   : > { %1651 = vrot.lane.b32.xlu0 %v1257_v39, %s2015_s12  ;;  %v598_v39 = vadd.f32 %v501_v0, %v2449_v63  ;;  %v1504_v6 = vsel %vm1491_vm2, %v590_v15, %v1372_v3  ;;  %v1143_v54 = vrot.slane %v3063_v5, 1  ;;  %v4287_v63 = vld [vmem:[#allocation37_spill] sm:$0xff]  ;;  %v336_v20 = vadd.f32 %v4290_v27, %v4289_v43  ;;  %v4292_v3 = vld [vmem:[#allocation46_spill] sm:$0xff]  ;;  %v4295_v43 = vld [vmem:[#allocation39_spill] sm:$0xff] }
  0xc2   : > { %1555 = vst.msk [vmem:[%s2785_s16 + $0x7f] sm:$0xfe] %vm1540_vm4, %v1504_v6  ;;  %v3092_v28 = vmul.f32 0.25, %v337_v45  ;;  %v3095_v48 = vmul.f32 0.25, %v3072_v14  ;;  %v3100_v15 = vmul.f32 0.75, %v334_v24  ;;  %v504_v6 = vrot.slane %v4292_v3, 7 }
  0xc3   : > { %v1512_v11 = vsel %vm1491_vm2, %v598_v39, %v1388_v34  ;;  %v1380_v27 = vpop.permute.xlu1 %1379  ;;  %v3113_v24 = vmul.f32 0.75, %v333_v32  ;;  %v1145_v5 = vsel %vm658_vm0, %v1143_v54, %v1144_v18  ;;  %v502_v39 = vsel %vm481_vm1, %v500_v55, %v501_v0  ;;  %v4299_v54 = vld [vmem:[#allocation48_spill] sm:$0xff] }
  0xc4   : > { %4288 = vst [vmem:[#allocation12_spill] sm:$0xff] %v3092_v28  ;;  %v4062_v3 = vrot.slane %v3095_v48, 1 }
  0xc5   : > { %1659 = vrot.lane.b32.xlu1 %v1261_v29, %s2015_s12  ;;  %4291 = vst [vmem:[#allocation6_spill] sm:$0xff] %v3100_v15  ;;  %v593_v29 = vadd.f32 %v497_v8, %v4295_v43  ;;  %v601_v8 = vadd.f32 %v504_v6, %v2515_v25 }
  0xc6   : > { %1563 = vst.msk [vmem:[%s2785_s16 + $0xcf] sm:$0x1] %vm1544_vm3, %v1512_v11  ;;  %v1149_v11 = vrot.slane %v3092_v28, 1 }
  0xc7   : > { %1649 = vrot.lane.b32.xlu2 %v1256_v9, %s2015_s12  ;;  %v594_v9 = vadd.f32 %v499_v4, %v4287_v63  ;;  %v4293_v4 = vrot.slane %v3058_v22, 1  ;;  %v4294_v63 = vrot.slane %v2939_v50, 1  ;;  %4296 = vst [vmem:[#allocation22_spill] sm:$0xff] %v3113_v24  ;;  %v3121_v50 = vmul.f32 0.25, %v336_v20 }
  0xc9   : > { %v1147_v49 = vsel %vm658_vm0, %v1144_v18, %v4293_v4  ;;  %v1259_v62 = vadd.f32 %v4294_v63, %v3083_v16  ;;  %1657 = vrot.lane.b32.xlu0 %v1260_v35, %s2015_s12  ;;  %v1508_v34 = vsel %vm1491_vm2, %v594_v9, %v1380_v27  ;;  %4297 = vst [vmem:[#allocation18_spill] sm:$0xff] %v3121_v50  ;;  %v4298_v18 = vld [vmem:[#allocation25_spill] sm:$0xff]  ;;  %v1378_v4 = vpop.permute.xlu0 %1377  ;;  %v3131_v35 = vmul.f32 0.75, %v2979_v53  ;;  %v4301_v9 = vld [vmem:[#allocation26_spill] sm:$0xff] }
  0xca   : > { %1559 = vst.msk [vmem:[%s2785_s16 + $0xa7] sm:$0xff] %vm1542_vm5, %v1508_v34  ;;  %v1264_v32 = vadd.f32 %v1147_v49, %v3100_v15  ;;  %v340_v0 = vadd.f32 %v4299_v54, %v4298_v18  ;;  %v4302_v63 = vld [vmem:[#allocation49_spill] sm:$0xff]  ;;  %v1507_v43 = vsel %vm1491_vm2, %v593_v29, %v1378_v4  ;;  %v1263_v49 = vadd.f32 %v1145_v5, %v3113_v24  ;;  %v4303_v34 = vld [vmem:[#allocation44_spill] sm:$0xff]  ;;  %v1394_v54 = vpop.permute.xlu2 %1393  ;;  %v4305_v15 = vld [vmem:[#allocation31_spill] sm:$0xff] }
  0xcb   : > { %4300 = vst [vmem:[#allocation24_spill] sm:$0xff] %v3131_v35  ;;  %v3135_v27 = vadd.f32 %v4302_v63, %v4301_v9  ;;  %v597_v25 = vadd.f32 %v502_v39, %v4303_v34  ;;  %v3142_v18 = vmul.f32 0.75, %v337_v45  ;;  %v1152_v53 = vsel %vm658_vm0, %v1149_v11, %v4062_v3  ;;  %v4306_v9 = vld [vmem:[#allocation51_spill] sm:$0xff]  ;;  %v4307_v29 = vld [vmem:[#allocation54_spill] sm:$0xff]  ;;  %v4309_v45 = vld [vmem:[#allocation57_spill] sm:$0xff] }
  0xcc   : > { %1558 = vst.msk [vmem:[%s2785_s16 + $0x9f] sm:$0xfe] %vm1540_vm4, %v1507_v43  ;;  %v339_v63 = vadd.f32 %v4306_v9, %v4305_v15  ;;  %v1515_v5 = vsel %vm1491_vm2, %v601_v8, %v1394_v54  ;;  %v503_v39 = vrot.slane %v4307_v29, 7  ;;  %v3153_v4 = vmul.f32 0.25, %v340_v0  ;;  %v1386_v15 = vpop.permute.xlu1 %1385  ;;  %v4311_v9 = vld [vmem:[#allocation52_spill] sm:$0xff] }
  0xcd   : > { %4304 = vst [vmem:[#allocation15_spill] sm:$0xff] %v3142_v18  ;;  %1665 = vrot.lane.b32.xlu1 %v1264_v32, %s2015_s12  ;;  %v507_v43 = vrot.slane %v4309_v45, 7  ;;  %v4310_v34 = vrot.slane %v3006_v17, 1  ;;  %v3162_v24 = vmul.f32 0.25, %v3135_v27  ;;  %v596_v32 = vadd.f32 %v500_v55, %v4311_v9  ;;  %v4314_v55 = vld [vmem:[#allocation85_spill] sm:$0xff] }
  0xce   : > { %4308 = vst [vmem:[#allocation53_spill] sm:$0xff] %v3153_v4  ;;  %v1511_v8 = vsel %vm1491_vm2, %v597_v25, %v1386_v15  ;;  %v1267_v54 = vadd.f32 %v1152_v53, %v3142_v18  ;;  %v3168_v29 = vmul.f32 0.75, %v336_v20  ;;  %v505_v45 = vsel %vm481_vm1, %v503_v39, %v504_v6  ;;  %v4316_v53 = vld [vmem:[#allocation33_spill] sm:$0xff]  ;;  %v4317_v15 = vld [vmem:[#allocation60_spill] sm:$0xff]  ;;  %v4318_v18 = vld [vmem:[#allocation34_spill] sm:$0xff] }
  0xcf   : > { %1655 = vrot.lane.b32.xlu2 %v1259_v62, %s2015_s12  ;;  %v1148_v62 = vrot.slane %v3121_v50, 1  ;;  %1566 = vst.msk [vmem:[%s2785_s16 + $0xef] sm:$0x1] %vm1544_vm3, %v1515_v5  ;;  %v1262_v3 = vadd.f32 %v4310_v34, %v3131_v35  ;;  %v3170_v5 = vmul.f32 0.25, %v339_v63  ;;  %v1154_v34 = vrot.slane %v3153_v4, 1  ;;  %v4320_v4 = vld [vmem:[#allocation41_spill] sm:$0xff] }
  0xd0   : > { %4312 = vst [vmem:[#allocation8_spill] sm:$0xff] %v3168_v29  ;;  %v604_v9 = vadd.f32 %v507_v43, %v4314_v55  ;;  %v3181_v20 = vmul.f32 0.75, %v3031_v52  ;;  %v4321_v55 = vld [vmem:[#allocation63_spill] sm:$0xff] }
  0xd1   : > { %1663 = vrot.lane.b32.xlu0 %v1263_v49, %s2015_s12  ;;  %4313 = vst [vmem:[#allocation27_spill] sm:$0xff] %v3170_v5  ;;  %v1150_v17 = vsel %vm658_vm0, %v1148_v62, %v1149_v11  ;;  %v1384_v49 = vpop.permute.xlu0 %1383  ;;  %v4319_v11 = vld [vmem:[#allocation61_spill] sm:$0xff]  ;;  %v342_v50 = vadd.f32 %v4321_v55, %v4320_v4  ;;  %v4322_v25 = vld [vmem:[#allocation55_spill] sm:$0xff]  ;;  %v1153_v28 = vrot.slane %v3170_v5, 1  ;;  %v3217_v55 = vmul.f32 0.75, %v339_v63  ;;  %v4335_v5 = vld [vmem:[#allocation68_spill] sm:$0xff] }
  0xd2   : > { %1562 = vst.msk [vmem:[%s2785_s16 + $0xc7] sm:$0xff] %vm1542_vm5, %v1511_v8  ;;  %v343_v8 = vadd.f32 %v4317_v15, %v4316_v53  ;;  %v3187_v62 = vadd.f32 %v4319_v11, %v4318_v18  ;;  %v1510_v6 = vsel %vm1491_vm2, %v596_v32, %v1384_v49  ;;  %v600_v52 = vadd.f32 %v505_v45, %v4322_v25  ;;  %v1400_v1 = vpop.permute.xlu2 %1399  ;;  %v4324_v15 = vld [vmem:[#allocation58_spill] sm:$0xff]  ;;  %v4325_v49 = vld [vmem:[#allocation71_spill] sm:$0xff] }
  0xd3   : > { %4315 = vst [vmem:[#allocation9_spill] sm:$0xff] %v3181_v20  ;;  %v3198_v53 = vmul.f32 0.75, %v340_v0  ;;  %v1518_v18 = vsel %vm1491_vm2, %v604_v9, %v1400_v1  ;;  %v506_v32 = vrot.slane %v4324_v15, 7  ;;  %v510_v4 = vrot.slane %v4325_v49, 7  ;;  %v4329_v9 = vld [vmem:[#allocation64_spill] sm:$0xff] }
  0xd4   : > { %1561 = vst.msk [vmem:[%s2785_s16 + $0xbf] sm:$0xfe] %vm1540_vm4, %v1510_v6  ;;  %v4326_v11 = vrot.slane %v3162_v24, 1  ;;  %v4327_v45 = vrot.slane %v3058_v22, 1  ;;  %v3214_v0 = vmul.f32 0.25, %v3187_v62  ;;  %v1392_v1 = vpop.permute.xlu1 %1391  ;;  %v599_v6 = vadd.f32 %v503_v39, %v4329_v9  ;;  %v4332_v22 = vld [vmem:[#allocation45_spill] sm:$0xff] }
  0xd5   : > { %1671 = vrot.lane.b32.xlu1 %v1267_v54, %s2015_s12  ;;  %4323 = vst [vmem:[#allocation28_spill] sm:$0xff] %v3198_v53  ;;  %v3211_v54 = vmul.f32 0.25, %v343_v8  ;;  %v3219_v15 = vmul.f32 0.25, %v342_v50  ;;  %v1155_v49 = vsel %vm658_vm0, %v1153_v28, %v1154_v34  ;;  %v508_v39 = vsel %vm481_vm1, %v506_v32, %v507_v43  ;;  %v4336_v9 = vld [vmem:[#allocation94_spill] sm:$0xff]  ;;  %v4337_v43 = vld [vmem:[#allocation72_spill] sm:$0xff] }
  0xd6   : > { %1569 = vst.msk [vmem:[%s2785_s16 + $0x10f] sm:$0x1] %vm1544_vm3, %v1518_v18  ;;  %v1265_v25 = vadd.f32 %v4327_v45, %v3181_v20  ;;  %v1514_v18 = vsel %vm1491_vm2, %v600_v52, %v1392_v1  ;;  %v3239_v52 = vmul.f32 0.75, %v3072_v14  ;;  %v509_v1 = vrot.slane %v4337_v43, 7  ;;  %v4340_v14 = vld [vmem:[#allocation50_spill] sm:$0xff] }
  0xd7   : > { %1661 = vrot.lane.b32.xlu2 %v1262_v3, %s2015_s12  ;;  %v1266_v3 = vadd.f32 %v1150_v17, %v3168_v29  ;;  %v1157_v17 = vsel %vm658_vm0, %v1154_v34, %v4326_v11  ;;  %4328 = vst [vmem:[#allocation10_spill] sm:$0xff] %v3211_v54  ;;  %v4333_v11 = vld [vmem:[#allocation67_spill] sm:$0xff]  ;;  %v1159_v28 = vrot.slane %v3211_v54, 1  ;;  %v4341_v34 = vld [vmem:[#allocation74_spill] sm:$0xff] }
  0xd8   : > { %4330 = vst [vmem:[#allocation32_spill] sm:$0xff] %v3217_v55  ;;  %v346_v45 = vadd.f32 %v4333_v11, %v4332_v22  ;;  %v4334_v29 = vld [vmem:[#allocation47_spill] sm:$0xff]  ;;  %v1270_v63 = vadd.f32 %v1157_v17, %v3198_v53  ;;  %v1158_v17 = vrot.slane %v3219_v15, 1  ;;  %v345_v53 = vadd.f32 %v4341_v34, %v4340_v14  ;;  %v4346_v14 = vld [vmem:[#allocation70_spill] sm:$0xff] }
  0xd9   : > { %4331 = vst [vmem:[#allocation23_spill] sm:$0xff] %v3219_v15  ;;  %1669 = vrot.lane.b32.xlu0 %v1266_v3, %s2015_s12  ;;  %v3228_v20 = vadd.f32 %v4335_v5, %v4334_v29  ;;  %v607_v3 = vadd.f32 %v510_v4, %v4336_v9  ;;  %v1390_v35 = vpop.permute.xlu0 %1389  ;;  %v1269_v5 = vadd.f32 %v1155_v49, %v3217_v55  ;;  %v4343_v49 = vld [vmem:[#allocation75_spill] sm:$0xff] }
  0xda   : > { %1565 = vst.msk [vmem:[%s2785_s16 + $0xe7] sm:$0xff] %vm1542_vm5, %v1514_v18  ;;  %v1513_v29 = vsel %vm1491_vm2, %v599_v6, %v1390_v35  ;;  %v4338_v18 = vld [vmem:[#allocation69_spill] sm:$0xff]  ;;  %v1406_v22 = vpop.permute.xlu2 %1405  ;;  %v3248_v11 = vmul.f32 0.25, %v346_v45  ;;  %v3256_v35 = vmul.f32 0.75, %v343_v8  ;;  %v3269_v8 = vmul.f32 0.75, %v342_v50 }
  0xdb   : > { %1564 = vst.msk [vmem:[%s2785_s16 + $0xdf] sm:$0xfe] %vm1540_vm4, %v1513_v29  ;;  %v3251_v9 = vmul.f32 0.25, %v3228_v20  ;;  %v1521_v6 = vsel %vm1491_vm2, %v607_v3, %v1406_v22  ;;  %v513_v29 = vrot.slane %v4343_v49, 7  ;;  %v1160_v15 = vsel %vm658_vm0, %v1158_v17, %v1159_v28  ;;  %v4351_v17 = vld [vmem:[#allocation78_spill] sm:$0xff]  ;;  %v4354_v49 = vld [vmem:[#allocation80_spill] sm:$0xff] }
  0xdc   : > { %4339 = vst [vmem:[#allocation30_spill] sm:$0xff] %v3248_v11  ;;  %v1398_v34 = vpop.permute.xlu1 %1397  ;;  %v511_v3 = vsel %vm481_vm1, %v509_v1, %v510_v4 }
  0xdd   : > { %1677 = vrot.lane.b32.xlu1 %v1270_v63, %s2015_s12  ;;  %4342 = vst [vmem:[#allocation38_spill] sm:$0xff] %v3256_v35  ;;  %v602_v63 = vadd.f32 %v506_v32, %v4346_v14  ;;  %v4349_v32 = vld [vmem:[#allocation107_spill] sm:$0xff] }
  0xde   : > { %1572 = vst.msk [vmem:[%s2785_s16 + $0x12f] sm:$0x1] %vm1544_vm3, %v1521_v6  ;;  %v1164_v6 = vrot.slane %v3248_v11, 1  ;;  %v4357_v11 = vld [vmem:[#allocation62_spill] sm:$0xff] }
  0xdf   : > { %1667 = vrot.lane.b32.xlu2 %v1265_v25, %s2015_s12  ;;  %v603_v25 = vadd.f32 %v508_v39, %v4338_v18  ;;  %v4344_v39 = vrot.slane %v3214_v0, 1  ;;  %v4345_v18 = vrot.slane %v3095_v48, 1  ;;  %4347 = vst [vmem:[#allocation29_spill] sm:$0xff] %v3269_v8  ;;  %v3277_v48 = vmul.f32 0.25, %v345_v53 }
  0xe1   : > { %v1162_v43 = vsel %vm658_vm0, %v1159_v28, %v4344_v39  ;;  %v1268_v55 = vadd.f32 %v4345_v18, %v3239_v52  ;;  %1675 = vrot.lane.b32.xlu0 %v1269_v5, %s2015_s12  ;;  %v1517_v22 = vsel %vm1491_vm2, %v603_v25, %v1398_v34  ;;  %4348 = vst [vmem:[#allocation16_spill] sm:$0xff] %v3277_v48  ;;  %v4350_v28 = vld [vmem:[#allocation56_spill] sm:$0xff]  ;;  %v1396_v18 = vpop.permute.xlu0 %1395  ;;  %v3287_v5 = vmul.f32 0.75, %v3135_v27  ;;  %v4352_v25 = vld [vmem:[#allocation59_spill] sm:$0xff] }
  0xe2   : > { %1568 = vst.msk [vmem:[%s2785_s16 + $0x107] sm:$0xff] %vm1542_vm5, %v1517_v22  ;;  %v1273_v50 = vadd.f32 %v1162_v43, %v3256_v35  ;;  %v610_v39 = vadd.f32 %v513_v29, %v4349_v32  ;;  %v349_v4 = vadd.f32 %v4351_v17, %v4350_v28  ;;  %v4353_v34 = vld [vmem:[#allocation79_spill] sm:$0xff]  ;;  %v1516_v22 = vsel %vm1491_vm2, %v602_v63, %v1396_v18  ;;  %v4359_v63 = vld [vmem:[#allocation82_spill] sm:$0xff] }
  0xe3   : > { %v3291_v14 = vadd.f32 %v4353_v34, %v4352_v25  ;;  %v1272_v43 = vadd.f32 %v1160_v15, %v3269_v8  ;;  %v606_v32 = vadd.f32 %v511_v3, %v4354_v49  ;;  %1567 = vst.msk [vmem:[%s2785_s16 + $0xff] sm:$0xfe] %vm1540_vm4, %v1516_v22  ;;  %v3298_v28 = vmul.f32 0.75, %v346_v45  ;;  %v4358_v25 = vld [vmem:[#allocation84_spill] sm:$0xff]  ;;  %v4361_v45 = vld [vmem:[#allocation87_spill] sm:$0xff] }
  0xe4   : > { %v1163_v17 = vrot.slane %v3277_v48, 1  ;;  %v348_v34 = vadd.f32 %v4358_v25, %v4357_v11  ;;  %v512_v3 = vrot.slane %v4359_v63, 7  ;;  %v3309_v49 = vmul.f32 0.25, %v349_v4  ;;  %v1404_v11 = vpop.permute.xlu1 %1403  ;;  %v4363_v25 = vld [vmem:[#allocation81_spill] sm:$0xff] }
  0xe5   : > { %4355 = vst [vmem:[#allocation35_spill] sm:$0xff] %v3298_v28  ;;  %1683 = vrot.lane.b32.xlu1 %v1273_v50, %s2015_s12  ;;  %v516_v18 = vrot.slane %v4361_v45, 7  ;;  %v4362_v22 = vrot.slane %v3162_v24, 1  ;;  %v3318_v8 = vmul.f32 0.25, %v3291_v14  ;;  %v605_v50 = vadd.f32 %v509_v1, %v4363_v25 }
  0xe6   : > { %v1412_v35 = vpop.permute.xlu2 %1411  ;;  %4360 = vst [vmem:[#allocation17_spill] sm:$0xff] %v3309_v49  ;;  %v3324_v63 = vmul.f32 0.75, %v345_v53  ;;  %v1165_v24 = vsel %vm658_vm0, %v1163_v17, %v1164_v6  ;;  %v514_v45 = vsel %vm481_vm1, %v512_v3, %v513_v29  ;;  %v3337_v53 = vmul.f32 0.75, %v3187_v62 }
  0xe7   : > { %1673 = vrot.lane.b32.xlu2 %v1268_v55, %s2015_s12  ;;  %v4356_v55 = vrot.slane %v3251_v9, 1  ;;  %v1524_v15 = vsel %vm1491_vm2, %v610_v39, %v1412_v35  ;;  %v1520_v35 = vsel %vm1491_vm2, %v606_v32, %v1404_v11  ;;  %v613_v1 = vadd.f32 %v516_v18, %v2727_v56  ;;  %v4368_v11 = vld [vmem:[#allocation90_spill] sm:$0xff]  ;;  %v4372_v56 = vld [vmem:[#allocation96_spill] sm:$0xff] }
  0xe8   : > { %1575 = vst.msk [vmem:[%s2785_s16 + $0x14f] sm:$0x1] %vm1544_vm3, %v1524_v15  ;;  %v3326_v15 = vmul.f32 0.25, %v348_v34  ;;  %v4373_v32 = vld [vmem:[#allocation86_spill] sm:$0xff] }
  0xe9   : > { %v1167_v27 = vsel %vm658_vm0, %v1164_v6, %v4356_v55  ;;  %v1271_v55 = vadd.f32 %v4362_v22, %v3287_v5  ;;  %1681 = vrot.lane.b32.xlu0 %v1272_v43, %s2015_s12  ;;  %4364 = vst [vmem:[#allocation36_spill] sm:$0xff] %v3324_v63  ;;  %v1169_v22 = vrot.slane %v3309_v49, 1  ;;  %v1402_v43 = vpop.permute.xlu0 %1401  ;;  %v4370_v6 = vld [vmem:[#allocation91_spill] sm:$0xff]  ;;  %v609_v62 = vadd.f32 %v514_v45, %v4373_v32 }
  0xea   : > { %v1276_v39 = vadd.f32 %v1167_v27, %v3298_v28  ;;  %4365 = vst [vmem:[#allocation40_spill] sm:$0xff] %v3326_v15  ;;  %v4367_v27 = vld [vmem:[#allocation65_spill] sm:$0xff]  ;;  %v1519_v29 = vsel %vm1491_vm2, %v605_v50, %v1402_v43  ;;  %v1168_v48 = vrot.slane %v3326_v15, 1  ;;  %v4375_v43 = vld [vmem:[#allocation98_spill] sm:$0xff]  ;;  %v4377_v45 = vrot.slane %v3214_v0, 1 }
  0xeb   : > { %1571 = vst.msk [vmem:[%s2785_s16 + $0x127] sm:$0xff] %vm1542_vm5, %v1520_v35  ;;  %v352_v25 = vadd.f32 %v4368_v11, %v4367_v27  ;;  %v4369_v35 = vld [vmem:[#allocation66_spill] sm:$0xff]  ;;  %v4371_v28 = vld [vmem:[#allocation73_spill] sm:$0xff]  ;;  %v3354_v27 = vmul.f32 0.75, %v349_v4 }
  0xec   : > { %4366 = vst [vmem:[#allocation37_spill] sm:$0xff] %v3337_v53  ;;  %v3343_v17 = vadd.f32 %v4370_v6, %v4369_v35  ;;  %v351_v49 = vadd.f32 %v4372_v56, %v4371_v28  ;;  %v4374_v35 = vld [vmem:[#allocation93_spill] sm:$0xff]  ;;  %v519_v28 = vrot.slane %v4375_v43, 7  ;;  %v4376_v6 = vrot.slane %v3318_v8, 1  ;;  %v4381_v43 = vld [vmem:[#allocation76_spill] sm:$0xff]  ;;  %v4384_v15 = vld [vmem:[#allocation102_spill] sm:$0xff] }
  0xed   : > { %1570 = vst.msk [vmem:[%s2785_s16 + $0x11f] sm:$0xfe] %vm1540_vm4, %v1519_v29  ;;  %1689 = vrot.lane.b32.xlu1 %v1276_v39, %s2015_s12  ;;  %v515_v50 = vrot.slane %v4374_v35, 7  ;;  %v1274_v32 = vadd.f32 %v4377_v45, %v3337_v53  ;;  %v3367_v39 = vmul.f32 0.25, %v352_v25  ;;  %v3373_v56 = vmul.f32 0.75, %v348_v34 }
  0xee   : > { %v3370_v4 = vmul.f32 0.25, %v3343_v17  ;;  %v3375_v35 = vmul.f32 0.25, %v351_v49  ;;  %v1170_v0 = vsel %vm658_vm0, %v1168_v48, %v1169_v22 }
  0xef   : > { %1679 = vrot.lane.b32.xlu2 %v1271_v55, %s2015_s12  ;;  %v1275_v55 = vadd.f32 %v1165_v24, %v3324_v63  ;;  %v1172_v24 = vsel %vm658_vm0, %v1169_v22, %v4376_v6  ;;  %4379 = vst [vmem:[#allocation21_spill] sm:$0xff] %v3373_v56  ;;  %v4382_v6 = vld [vmem:[#allocation101_spill] sm:$0xff]  ;;  %v1174_v48 = vrot.slane %v3367_v39, 1 }
  0xf0   : > { %4380 = vst [vmem:[#allocation42_spill] sm:$0xff] %v3375_v35  ;;  %v355_v45 = vadd.f32 %v4382_v6, %v4381_v43  ;;  %v4383_v63 = vld [vmem:[#allocation77_spill] sm:$0xff]  ;;  %v1279_v34 = vadd.f32 %v1172_v24, %v3354_v27  ;;  %v4088_v22 = vrot.slane %v3370_v4, 1  ;;  %v1173_v24 = vrot.slane %v3375_v35, 1  ;;  %v4386_v43 = vld [vmem:[#allocation83_spill] sm:$0xff] }
  0xf1   : > { %v1418_v54 = vpop.permute.xlu2 %1417  ;;  %1687 = vrot.lane.b32.xlu0 %v1275_v55, %s2015_s12  ;;  %v3384_v53 = vadd.f32 %v4384_v15, %v4383_v63  ;;  %v616_v55 = vadd.f32 %v519_v28, %v2780_v12  ;;  %v1278_v15 = vadd.f32 %v1170_v0, %v3373_v56  ;;  %v4385_v12 = vld [vmem:[#allocation97_spill] sm:$0xff]  ;;  %v3425_v35 = vmul.f32 0.75, %v351_v49 }
  0xf2   : > { %v1527_v11 = vsel %vm1491_vm2, %v613_v1, %v1418_v54  ;;  %v1410_v54 = vpop.permute.xlu1 %1409  ;;  %v4378_v1 = vld [vmem:[#allocation92_spill] sm:$0xff] }
  0xf3   : > { %1578 = vst.msk [vmem:[%s2785_s16 + $0x16f] sm:$0x1] %vm1544_vm3, %v1527_v11  ;;  %v608_v29 = vadd.f32 %v512_v3, %v4378_v1  ;;  %v1523_v11 = vsel %vm1491_vm2, %v609_v62, %v1410_v54  ;;  %v517_v3 = vsel %vm481_vm1, %v515_v50, %v516_v18  ;;  %v1408_v1 = vpop.permute.xlu0 %1407  ;;  %v3395_v62 = vmul.f32 0.75, %v3228_v20  ;;  %v4387_v20 = vld [vmem:[#allocation105_spill] sm:$0xff] }
  0xf4   : > { %1574 = vst.msk [vmem:[%s2785_s16 + $0x147] sm:$0xff] %vm1542_vm5, %v1523_v11  ;;  %v612_v18 = vadd.f32 %v517_v3, %v4385_v12  ;;  %v3406_v11 = vmul.f32 0.25, %v3384_v53  ;;  %v354_v6 = vadd.f32 %v4387_v20, %v4386_v43  ;;  %v522_v3 = vrot.slane %v2694_v30, 7 }
  0xf5   : > { %v1522_v63 = vsel %vm1491_vm2, %v608_v29, %v1408_v1  ;;  %1695 = vrot.lane.b32.xlu1 %v1279_v34, %s2015_s12  ;;  %v3411_v29 = vmul.f32 0.75, %v352_v25  ;;  %v4388_v1 = vld [vmem:[#allocation106_spill] sm:$0xff]  ;;  %v1177_v12 = vsel %vm658_vm0, %v1174_v48, %v4088_v22  ;;  %v4389_v43 = vrot.slane %v3251_v9, 1  ;;  %v4390_v25 = vld [vmem:[#allocation103_spill] sm:$0xff]  ;;  %4391 = vst [vmem:[#allocation46_spill] sm:$0xff] %v3425_v35 }
  0xf6   : > { %1573 = vst.msk [vmem:[%s2785_s16 + $0x13f] sm:$0xfe] %vm1540_vm4, %v1522_v63  ;;  %v518_v63 = vrot.slane %v4388_v1, 7  ;;  %v611_v56 = vadd.f32 %v515_v50, %v4390_v25  ;;  %v3432_v1 = vmul.f32 0.25, %v354_v6  ;;  %v619_v50 = vadd.f32 %v522_v3, %v2824_v13  ;;  %v4396_v13 = vld [vmem:[#allocation114_spill] sm:$0xff] }
  0xf7   : > { %1685 = vrot.lane.b32.xlu2 %v1274_v32, %s2015_s12  ;;  %v3403_v32 = vmul.f32 0.25, %v355_v45  ;;  %v1277_v20 = vadd.f32 %v4389_v43, %v3395_v62  ;;  %v1282_v9 = vadd.f32 %v1177_v12, %v3411_v29  ;;  %v4393_v43 = vld [vmem:[#allocation89_spill] sm:$0xff] }
  0xf8   : > { %v520_v49 = vsel %vm481_vm1, %v518_v63, %v519_v28 }
  0xf9   : > { %v1424_v54 = vpop.permute.xlu2 %1423  ;;  %1693 = vrot.lane.b32.xlu0 %v1278_v15, %s2015_s12 }
  0xfa   : > { %v1530_v0 = vsel %vm1491_vm2, %v616_v55, %v1424_v54  ;;  %v1416_v34 = vpop.permute.xlu1 %1415  ;;  %v1175_v55 = vsel %vm658_vm0, %v1173_v24, %v1174_v48  ;;  %v1179_v54 = vrot.slane %v3403_v32, 1  ;;  %v4392_v48 = vld [vmem:[#allocation88_spill] sm:$0xff] }
  0xfb   : > { %1581 = vst.msk [vmem:[%s2785_s16 + $0x18f] sm:$0x1] %vm1544_vm3, %v1530_v0  ;;  %v1526_v30 = vsel %vm1491_vm2, %v612_v18, %v1416_v34  ;;  %v4089_v0 = vrot.slane %v3406_v11, 1  ;;  %v358_v15 = vadd.f32 %v2679_v41, %v4392_v48  ;;  %v1414_v24 = vpop.permute.xlu0 %1413  ;;  %v3443_v18 = vmul.f32 0.75, %v3291_v14  ;;  %v4394_v34 = vld [vmem:[#allocation110_spill] sm:$0xff]  ;;  %v4397_v41 = vld [vmem:[#allocation111_spill] sm:$0xff] }
  0xfc   : > { %1577 = vst.msk [vmem:[%s2785_s16 + $0x167] sm:$0xff] %vm1542_vm5, %v1526_v30  ;;  %v3447_v25 = vadd.f32 %v4394_v34, %v4393_v43  ;;  %v1525_v12 = vsel %vm1491_vm2, %v611_v56, %v1414_v24  ;;  %v1281_v28 = vadd.f32 %v1175_v55, %v3425_v35  ;;  %v4395_v30 = vld [vmem:[#allocation95_spill] sm:$0xff]  ;;  %v615_v48 = vadd.f32 %v520_v49, %v4397_v41  ;;  %v4398_v55 = vld [vmem:[#allocation112_spill] sm:$0xff] }
  0xfd   : > { %v357_v22 = vadd.f32 %v4396_v13, %v4395_v30  ;;  %1576 = vst.msk [vmem:[%s2785_s16 + $0x15f] sm:$0xfe] %vm1540_vm4, %v1525_v12  ;;  %v1182_v14 = vsel %vm658_vm0, %v1179_v54, %v4089_v0  ;;  %v1178_v43 = vrot.slane %v3432_v1, 1  ;;  %1701 = vrot.lane.b32.xlu1 %v1282_v9, %s2015_s12  ;;  %v521_v24 = vrot.slane %v4398_v55, 7  ;;  %v4400_v0 = vld [vmem:[#allocation115_spill] sm:$0xff] }
  0xfe   : > { %v3465_v30 = vmul.f32 0.25, %v358_v15  ;;  %v525_v49 = vrot.slane %v2737_v2, 7  ;;  %v3474_v13 = vmul.f32 0.25, %v3447_v25  ;;  %v614_v9 = vadd.f32 %v518_v63, %v4400_v0 }
  0xff   : > { %1691 = vrot.lane.b32.xlu2 %v1277_v20, %s2015_s12  ;;  %v3456_v20 = vmul.f32 0.75, %v355_v45  ;;  %v4399_v45 = vrot.slane %v3318_v8, 1  ;;  %v3477_v35 = vmul.f32 0.25, %v357_v22  ;;  %v1180_v8 = vsel %vm658_vm0, %v1178_v43, %v1179_v54  ;;  %v4403_v54 = vld [vmem:[#allocation100_spill] sm:$0xff] }
 0x100   : > { %v1184_v63 = vrot.slane %v3465_v30, 1  ;;  %v622_v0 = vadd.f32 %v525_v49, %v2869_v21 }
 0x101   : > { %v1430_v34 = vpop.permute.xlu2 %1429  ;;  %v1280_v12 = vadd.f32 %v4399_v45, %v3443_v18  ;;  %1699 = vrot.lane.b32.xlu0 %v1281_v28, %s2015_s12  ;;  %v1285_v2 = vadd.f32 %v1182_v14, %v3456_v20  ;;  %v4402_v14 = vld [vmem:[#allocation99_spill] sm:$0xff]  ;;  %v1183_v21 = vrot.slane %v3477_v35, 1  ;;  %v4404_v45 = vld [vmem:[#allocation104_spill] sm:$0xff] }
 0x102   : > { %v1533_v56 = vsel %vm1491_vm2, %v619_v50, %v1430_v34  ;;  %v1422_v41 = vpop.permute.xlu1 %1421  ;;  %v3482_v34 = vmul.f32 0.75, %v354_v6  ;;  %v3493_v6 = vmul.f32 0.75, %v3343_v17  ;;  %v361_v55 = vadd.f32 %v2747_v26, %v4402_v14 }
 0x103   : > { %1584 = vst.msk [vmem:[%s2785_s16 + $0x1af] sm:$0x1] %vm1544_vm3, %v1533_v56  ;;  %v1529_v50 = vsel %vm1491_vm2, %v615_v48, %v1422_v41  ;;  %v523_v56 = vsel %vm481_vm1, %v521_v24, %v522_v3  ;;  %v1420_v28 = vpop.permute.xlu0 %1419  ;;  %v4091_v48 = vrot.slane %v3474_v13, 1  ;;  %v3499_v3 = vadd.f32 %v2749_v19, %v4403_v54  ;;  %v2005_v19 = vld [vmem:[%s2040_s11 + $0x190] sm:$0x3] }
 0x104   : > { %4401 = vst [vmem:[#allocation39_spill] sm:$0xff] %v3482_v34  ;;  %v1528_v43 = vsel %vm1491_vm2, %v614_v9, %v1420_v28  ;;  %v1284_v17 = vadd.f32 %v1180_v8, %v3482_v34  ;;  %v618_v41 = vadd.f32 %v523_v56, %v2735_v40  ;;  %v317_v54 = vmul.f32 0.25, %v2005_v19  ;;  %v4408_v19 = vld [vmem:[#allocation108_spill] sm:$0xff]  ;;  %v2006_v34 = vld [vmem:[%s2040_s11 + $0x180] sm:$0xff] }
 0x105   : > { %1580 = vst.msk [vmem:[%s2785_s16 + $0x187] sm:$0xff] %vm1542_vm5, %v1529_v50  ;;  %v2004_v50 = vld [vmem:[%s2040_s11 + $0x188] sm:$0xff]  ;;  %1707 = vrot.lane.b32.xlu1 %v1285_v2, %s2015_s12  ;;  %v3514_v9 = vmul.f32 0.75, %v358_v15  ;;  %v1187_v40 = vsel %vm658_vm0, %v1184_v63, %v4091_v48  ;;  %v4405_v8 = vrot.slane %v3370_v4, 1  ;;  %v3527_v15 = vmul.f32 0.25, %v361_v55 }
 0x106   : > { %1579 = vst.msk [vmem:[%s2785_s16 + $0x17f] sm:$0xfe] %vm1540_vm4, %v1528_v43  ;;  %v316_v14 = vmul.f32 0.25, %v2004_v50  ;;  %v528_v43 = vrot.slane %v2799_v36, 7  ;;  %v3530_v56 = vmul.f32 0.25, %v3499_v3  ;;  %v3533_v36 = vmul.f32 0.75, %v357_v22 }
 0x107   : > { %1697 = vrot.lane.b32.xlu2 %v1280_v12, %s2015_s12  ;;  %v3505_v12 = vadd.f32 %v2769_v37, %v4404_v45  ;;  %v524_v37 = vrot.slane %v2761_v57, 7  ;;  %v1283_v2 = vadd.f32 %v4405_v8, %v3493_v6  ;;  %v4409_v8 = vld [vmem:[#allocation109_spill] sm:$0xff]  ;;  %v315_v22 = vmul.f32 0.25, %v2006_v34 }
 0x108   : > { %4407 = vst [vmem:[#allocation25_spill] sm:$0xff] %v3533_v36  ;;  %v3543_v48 = vadd.f32 %v317_v54, %v4409_v8  ;;  %v3555_v54 = vmul.f32 0.75, %v3384_v53 }
 0x109   : > { %v1436_v26 = vpop.permute.xlu2 %1435  ;;  %v3537_v50 = vmul.f32 0.25, %v3505_v12  ;;  %1705 = vrot.lane.b32.xlu0 %v1284_v17, %s2015_s12 }
 0x10a   : > { %v1536_v28 = vsel %vm1491_vm2, %v622_v0, %v1436_v26  ;;  %v1428_v57 = vpop.permute.xlu1 %1427  ;;  %v4406_v0 = vld [vmem:[#allocation118_spill] sm:$0xff]  ;;  %v1185_v26 = vsel %vm658_vm0, %v1183_v21, %v1184_v63  ;;  %v526_v63 = vsel %vm481_vm1, %v524_v37, %v525_v49  ;;  %v625_v21 = vadd.f32 %v528_v43, %v2927_v31 }
 0x10b   : > { %1587 = vst.msk [vmem:[%s2785_s16 + $0x1cf] sm:$0x1] %vm1544_vm3, %v1536_v28  ;;  %v617_v45 = vadd.f32 %v521_v24, %v4406_v0  ;;  %v1532_v4 = vsel %vm1491_vm2, %v618_v41, %v1428_v57  ;;  %v364_v28 = vadd.f32 %v316_v14, %v4408_v19  ;;  %v1288_v24 = vadd.f32 %v1187_v40, %v3514_v9  ;;  %v1426_v17 = vpop.permute.xlu0 %1425  ;;  %v169_v49 = vld [vmem:[%s2040_s11 + $0x1a0] sm:$0xff]  ;;  %v170_v0 = vld [vmem:[%s2040_s11 + $0x1a8] sm:$0x3]  ;;  %v4410_v19 = vld [vmem:[#allocation113_spill] sm:$0xff] }
 0x10c   : > { %1583 = vst.msk [vmem:[%s2785_s16 + $0x1a7] sm:$0xff] %vm1542_vm5, %v1532_v4  ;;  %v1189_v41 = vrot.slane %v3527_v15, 1  ;;  %v1191_v14 = vrot.slane %v3530_v56, 1  ;;  %v1287_v57 = vadd.f32 %v1185_v26, %v3533_v36  ;;  %v1188_v40 = vrot.slane %v3537_v50, 1 }
 0x10d   : > { %v1531_v34 = vsel %vm1491_vm2, %v617_v45, %v1426_v17  ;;  %v621_v31 = vadd.f32 %v526_v63, %v2788_v44  ;;  %v3565_v4 = vmul.f32 0.25, %v364_v28  ;;  %v3568_v53 = vmul.f32 0.25, %v3543_v48  ;;  %1713 = vrot.lane.b32.xlu1 %v1288_v24, %s2015_s12 }
 0x10e   : > { %1582 = vst.msk [vmem:[%s2785_s16 + $0x19f] sm:$0xfe] %vm1540_vm4, %v1531_v34  ;;  %v363_v45 = vadd.f32 %v315_v22, %v4410_v19  ;;  %v3572_v26 = vmul.f32 0.75, %v361_v55  ;;  %v527_v17 = vrot.slane %v2817_v10, 7  ;;  %v948_v34 = vrot.slane %v2845_v61, 7  ;;  %v168_v19 = vld [vmem:[%s2040_s11 + $0x198] sm:$0xff] }
 0x10f   : > { %1703 = vrot.lane.b32.xlu2 %v1283_v2, %s2015_s12  ;;  %v1192_v44 = vsel %vm658_vm0, %v1189_v41, %v1191_v14  ;;  %v4411_v22 = vrot.slane %v3406_v11, 1  ;;  %v319_v24 = vmul.f32 0.25, %v169_v49  ;;  %v320_v55 = vmul.f32 0.25, %v170_v0 }
 0x110   : > { %v3588_v10 = vmul.f32 0.75, %v3505_v12  ;;  %v1190_v61 = vsel %vm658_vm0, %v1188_v40, %v1189_v41  ;;  %v1196_v11 = vrot.slane %v3568_v53, 1  ;;  %v3595_v49 = vmul.f32 0.25, %v363_v45 }
 0x111   : > { %v1442_v2 = vpop.permute.xlu2 %1441  ;;  %v1286_v63 = vadd.f32 %v4411_v22, %v3555_v54  ;;  %1711 = vrot.lane.b32.xlu0 %v1287_v57, %s2015_s12  ;;  %v529_v12 = vsel %vm481_vm1, %v527_v17, %v528_v43  ;;  %v318_v41 = vmul.f32 0.25, %v168_v19  ;;  %v4412_v57 = vld [vmem:[#allocation116_spill] sm:$0xff]  ;;  %v3615_v43 = vmul.f32 0.75, %v364_v28 }
 0x112   : > { %v1539_v8 = vsel %vm1491_vm2, %v625_v21, %v1442_v2  ;;  %v1434_v36 = vpop.permute.xlu1 %1433  ;;  %v620_v21 = vadd.f32 %v524_v37, %v2812_v33  ;;  %v1291_v33 = vadd.f32 %v1192_v44, %v3572_v26  ;;  %v1045_v37 = vadd.f32 %v948_v34, %v2975_v7 }
 0x113   : > { %1590 = vst.msk [vmem:[%s2785_s16 + $0x1ef] sm:$0x1] %vm1544_vm3, %v1539_v8  ;;  %v1535_v2 = vsel %vm1491_vm2, %v621_v31, %v1434_v36  ;;  %v1194_v8 = vrot.slane %v3565_v4, 1  ;;  %v1432_v40 = vpop.permute.xlu0 %1431  ;;  %v3604_v36 = vmul.f32 0.75, %v3447_v25  ;;  %v367_v0 = vadd.f32 %v319_v24, %v4412_v57  ;;  %v4413_v31 = vld [vmem:[#allocation117_spill] sm:$0xff] }
 0x114   : > { %1586 = vst.msk [vmem:[%s2785_s16 + $0x1c7] sm:$0xff] %vm1542_vm5, %v1535_v2  ;;  %v3608_v22 = vadd.f32 %v320_v55, %v4413_v31  ;;  %v1534_v2 = vsel %vm1491_vm2, %v620_v21, %v1432_v40  ;;  %v1290_v44 = vadd.f32 %v1190_v61, %v3588_v10  ;;  %v624_v7 = vadd.f32 %v529_v12, %v2829_v60  ;;  %v4414_v21 = vld [vmem:[#allocation119_spill] sm:$0xff] }
 0x115   : > { %1585 = vst.msk [vmem:[%s2785_s16 + $0x1bf] sm:$0xfe] %vm1540_vm4, %v1534_v2  ;;  %v1197_v25 = vsel %vm658_vm0, %v1194_v8, %v1196_v11  ;;  %1719 = vrot.lane.b32.xlu1 %v1291_v33, %s2015_s12  ;;  %v947_v19 = vrot.slane %v2862_v51, 7  ;;  %v366_v61 = vadd.f32 %v318_v41, %v4414_v21  ;;  %v951_v60 = vrot.slane %v2896_v42, 7 }
 0x116   : > { %v4415_v28 = vrot.slane %v3474_v13, 1  ;;  %v3631_v40 = vmul.f32 0.25, %v367_v0  ;;  %v3634_v57 = vmul.f32 0.25, %v3608_v22  ;;  %v1294_v42 = vadd.f32 %v1197_v25, %v3615_v43 }
 0x117   : > { %1709 = vrot.lane.b32.xlu2 %v1286_v63, %s2015_s12  ;;  %v1193_v63 = vrot.slane %v3595_v49, 1  ;;  %v3640_v41 = vmul.f32 0.75, %v363_v45  ;;  %v949_v31 = vsel %vm481_vm1, %v947_v19, %v948_v34  ;;  %v3646_v2 = vmul.f32 0.25, %v366_v61 }
 0x118   : > { %v1289_v12 = vadd.f32 %v4415_v28, %v3604_v36  ;;  %v3653_v45 = vmul.f32 0.75, %v3499_v3  ;;  %v950_v3 = vrot.slane %v2905_v47, 7  ;;  %v954_v21 = vrot.slane %v2936_v23, 7 }
 0x119   : > { %v1644_v24 = vpop.permute.xlu2 %1643  ;;  %1717 = vrot.lane.b32.xlu0 %v1290_v44, %s2015_s12  ;;  %v1195_v13 = vsel %vm658_vm0, %v1193_v63, %v1194_v8  ;;  %v1201_v44 = vrot.slane %v3634_v57, 1  ;;  %v1044_v8 = vadd.f32 %v949_v31, %v2883_v38  ;;  %v1198_v63 = vrot.slane %v3646_v2, 1 }
 0x11a   : > { %v1785_v55 = vsel %vm1491_vm2, %v1045_v37, %v1644_v24  ;;  %v1440_v33 = vpop.permute.xlu1 %1439  ;;  %v623_v37 = vadd.f32 %v527_v17, %v2856_v58  ;;  %v1048_v24 = vadd.f32 %v951_v60, %v3025_v46  ;;  %v1199_v17 = vrot.slane %v3631_v40, 1 }
 0x11b   : > { %1945 = vst.msk [vmem:[%s2785_s16 + $0x1f] sm:$0x1] %vm1544_vm3, %v1785_v55  ;;  %v1538_v51 = vsel %vm1491_vm2, %v624_v7, %v1440_v33  ;;  %v1438_v58 = vpop.permute.xlu0 %1437  ;;  %v1293_v34 = vadd.f32 %v1195_v13, %v3640_v41  ;;  %v3660_v46 = vmul.f32 0.75, %v367_v0  ;;  %v1292_v38 = vadd.f32 %v1191_v14, %v3653_v45 }
 0x11c   : > { %1589 = vst.msk [vmem:[%s2785_s16 + $0x1e7] sm:$0xff] %vm1542_vm5, %v1538_v51  ;;  %v1537_v7 = vsel %vm1491_vm2, %v623_v37, %v1438_v58  ;;  %v1202_v28 = vsel %vm658_vm0, %v1199_v17, %v1201_v44  ;;  %v3676_v33 = vmul.f32 0.75, %v366_v61  ;;  %v1200_v23 = vsel %vm658_vm0, %v1198_v63, %v1199_v17  ;;  %v4416_v51 = vld [vmem:[#allocation5_spill] sm:$0xff]  ;;  %v4420_v63 = vld [vmem:[#allocation24_spill] sm:$0xff] }
 0x11d   : > { %1588 = vst.msk [vmem:[%s2785_s16 + $0x1df] sm:$0xfe] %vm1540_vm4, %v1537_v7  ;;  %1725 = vrot.lane.b32.xlu1 %v1294_v42, %s2015_s12  ;;  %v1297_v47 = vadd.f32 %v1202_v28, %v3660_v46  ;;  %v952_v56 = vsel %vm481_vm1, %v950_v3, %v951_v60  ;;  %v1051_v14 = vadd.f32 %v954_v21, %v3083_v16  ;;  %v4417_v60 = vld [vmem:[#allocation2_spill] sm:$0xff]  ;;  %v4419_v7 = vld [vmem:[#allocation13_spill] sm:$0xff]  ;;  %v3711_v53 = vmul.f32 0.75, %v3608_v22 }
 0x11e   : > { %v1296_v61 = vadd.f32 %v1200_v23, %v3676_v33  ;;  %v1047_v42 = vadd.f32 %v952_v56, %v4416_v51  ;;  %v953_v31 = vrot.slane %v4417_v60, 7  ;;  %v4425_v51 = vld [vmem:[#allocation9_spill] sm:$0xff] }
 0x11f   : > { %1715 = vrot.lane.b32.xlu2 %v1289_v12, %s2015_s12  ;;  %v1043_v12 = vadd.f32 %v947_v19, %v2903_v59  ;;  %v3686_v59 = vmul.f32 0.75, %v3543_v48  ;;  %v1298_v56 = vadd.f32 %v1201_v44, %v3711_v53  ;;  %v4426_v44 = vld [vmem:[#allocation3_spill] sm:$0xff] }
 0x121   : > { %v1650_v25 = vpop.permute.xlu2 %1649  ;;  %1723 = vrot.lane.b32.xlu0 %v1293_v34, %s2015_s12  ;;  %v1295_v58 = vadd.f32 %v1196_v11, %v3686_v59  ;;  %v1046_v34 = vadd.f32 %v950_v3, %v4419_v7  ;;  %v4421_v3 = vld [vmem:[#allocation11_spill] sm:$0xff]  ;;  %v4428_v7 = vld [vmem:[#allocation12_spill] sm:$0xff] }
 0x122   : > { %v1788_v55 = vsel %vm1491_vm2, %v1048_v24, %v1650_v25  ;;  %v1642_v0 = vpop.permute.xlu1 %1641  ;;  %v4418_v24 = vld [vmem:[#allocation14_spill] sm:$0xff]  ;;  %v955_v25 = vsel %vm481_vm1, %v953_v31, %v954_v21  ;;  %v4422_v21 = vld [vmem:[#allocation43_spill] sm:$0xff] }
 0x123   : > { %1948 = vst.msk [vmem:[%s2785_s16 + $0x3f] sm:$0x1] %vm1544_vm3, %v1788_v55  ;;  %v1784_v57 = vsel %vm1491_vm2, %v1044_v8, %v1642_v0  ;;  %v1640_v37 = vpop.permute.xlu0 %1639  ;;  %v957_v48 = vrot.slane %v4418_v24, 7 }
 0x124   : > { %1944 = vst.msk [vmem:[%s2785_s16 + $0x17] sm:$0xff] %vm1542_vm5, %v1784_v57  ;;  %v1783_v19 = vsel %vm1491_vm2, %v1043_v12, %v1640_v37  ;;  %v956_v57 = vrot.slane %v4422_v21, 7 }
 0x125   : > { %1943 = vst.msk [vmem:[%s2785_s16 + $0xf] sm:$0xfe] %vm1540_vm4, %v1783_v19  ;;  %1731 = vrot.lane.b32.xlu1 %v1297_v47, %s2015_s12  ;;  %v1054_v55 = vadd.f32 %v957_v48, %v4420_v63  ;;  %v4423_v47 = vld [vmem:[#allocation19_spill] sm:$0xff] }
 0x126   : > { %v960_v23 = vrot.slane %v4423_v47, 7 }
 0x127   : > { %1721 = vrot.lane.b32.xlu2 %v1292_v38, %s2015_s12  ;;  %v1050_v38 = vadd.f32 %v955_v25, %v4421_v3 }
 0x129   : > { %v1656_v13 = vpop.permute.xlu2 %1655  ;;  %1729 = vrot.lane.b32.xlu0 %v1296_v61, %s2015_s12  ;;  %v958_v61 = vsel %vm481_vm1, %v956_v57, %v957_v48 }
 0x12a   : > { %v1791_v16 = vsel %vm1491_vm2, %v1051_v14, %v1656_v13  ;;  %v1648_v17 = vpop.permute.xlu1 %1647  ;;  %v4424_v14 = vld [vmem:[#allocation7_spill] sm:$0xff]  ;;  %v1053_v60 = vadd.f32 %v958_v61, %v4426_v44 }
 0x12b   : > { %1951 = vst.msk [vmem:[%s2785_s16 + $0x5f] sm:$0x1] %vm1544_vm3, %v1791_v16  ;;  %v1787_v8 = vsel %vm1491_vm2, %v1047_v42, %v1648_v17  ;;  %v1646_v28 = vpop.permute.xlu0 %1645  ;;  %v1049_v37 = vadd.f32 %v953_v31, %v4424_v14  ;;  %v1057_v42 = vadd.f32 %v960_v23, %v4425_v51 }
 0x12c   : > { %1947 = vst.msk [vmem:[%s2785_s16 + $0x37] sm:$0xff] %vm1542_vm5, %v1787_v8  ;;  %v1786_v11 = vsel %vm1491_vm2, %v1046_v34, %v1646_v28  ;;  %v963_v34 = vrot.slane %v4428_v7, 7  ;;  %v4429_v8 = vld [vmem:[#allocation4_spill] sm:$0xff] }
 0x12d   : > { %1946 = vst.msk [vmem:[%s2785_s16 + $0x2f] sm:$0xfe] %vm1540_vm4, %v1786_v11  ;;  %v1052_v25 = vadd.f32 %v956_v57, %v4429_v8  ;;  %v4431_v57 = vld [vmem:[#allocation18_spill] sm:$0xff] }
 0x12e   : > { %v1060_v28 = vadd.f32 %v963_v34, %v3239_v52  ;;  %v962_v47 = vrot.slane %v4431_v57, 7  ;;  %v4433_v52 = vld [vmem:[#allocation22_spill] sm:$0xff] }
 0x12f   : > { %1727 = vrot.lane.b32.xlu2 %v1295_v58, %s2015_s12  ;;  %v4427_v58 = vld [vmem:[#allocation20_spill] sm:$0xff]  ;;  %v4441_v57 = vld [vmem:[#allocation30_spill] sm:$0xff] }
 0x130   : > { %v959_v17 = vrot.slane %v4427_v58, 7  ;;  %v4436_v58 = vld [vmem:[#allocation10_spill] sm:$0xff] }
 0x131   : > { %v1662_v0 = vpop.permute.xlu2 %1661 }
 0x132   : > { %v1794_v12 = vsel %vm1491_vm2, %v1054_v55, %v1662_v0  ;;  %v1654_v22 = vpop.permute.xlu1 %1653  ;;  %v961_v55 = vsel %vm481_vm1, %v959_v17, %v960_v23  ;;  %v1055_v14 = vadd.f32 %v959_v17, %v4433_v52  ;;  %v969_v17 = vrot.slane %v4436_v58, 7 }
 0x133   : > { %1954 = vst.msk [vmem:[%s2785_s16 + $0x7f] sm:$0x1] %vm1544_vm3, %v1794_v12  ;;  %v1790_v19 = vsel %vm1491_vm2, %v1050_v38, %v1654_v22  ;;  %v1652_v13 = vpop.permute.xlu0 %1651  ;;  %v4430_v38 = vld [vmem:[#allocation6_spill] sm:$0xff] }
 0x134   : > { %1950 = vst.msk [vmem:[%s2785_s16 + $0x57] sm:$0xff] %vm1542_vm5, %v1790_v19  ;;  %v1789_v16 = vsel %vm1491_vm2, %v1049_v37, %v1652_v13  ;;  %v1056_v0 = vadd.f32 %v961_v55, %v4430_v38  ;;  %v964_v19 = vsel %vm481_vm1, %v962_v47, %v963_v34  ;;  %v4434_v13 = vld [vmem:[#allocation15_spill] sm:$0xff] }
 0x135   : > { %1949 = vst.msk [vmem:[%s2785_s16 + $0x4f] sm:$0xfe] %vm1540_vm4, %v1789_v16  ;;  %v1059_v16 = vadd.f32 %v964_v19, %v4434_v13 }
 0x137   : > { %1733 = vrot.lane.b32.xlu2 %v1298_v56, %s2015_s12  ;;  %v4432_v56 = vld [vmem:[#allocation53_spill] sm:$0xff] }
 0x138   : > { %v966_v22 = vrot.slane %v4432_v56, 7 }
 0x139   : > { %v1668_v31 = vpop.permute.xlu2 %1667 }
 0x13a   : > { %v1797_v24 = vsel %vm1491_vm2, %v1057_v42, %v1668_v31  ;;  %v1660_v48 = vpop.permute.xlu1 %1659  ;;  %v1063_v61 = vadd.f32 %v966_v22, %v3287_v5  ;;  %v4435_v31 = vld [vmem:[#allocation27_spill] sm:$0xff]  ;;  %v4437_v5 = vld [vmem:[#allocation8_spill] sm:$0xff] }
 0x13b   : > { %1957 = vst.msk [vmem:[%s2785_s16 + $0x9f] sm:$0x1] %vm1544_vm3, %v1797_v24  ;;  %v1793_v63 = vsel %vm1491_vm2, %v1053_v60, %v1660_v48  ;;  %v1658_v11 = vpop.permute.xlu0 %1657  ;;  %v965_v24 = vrot.slane %v4435_v31, 7  ;;  %v1058_v34 = vadd.f32 %v962_v47, %v4437_v5  ;;  %v972_v47 = vrot.slane %v4441_v57, 7  ;;  %v4445_v31 = vld [vmem:[#allocation17_spill] sm:$0xff] }
 0x13c   : > { %1953 = vst.msk [vmem:[%s2785_s16 + $0x77] sm:$0xff] %vm1542_vm5, %v1793_v63  ;;  %v1792_v3 = vsel %vm1491_vm2, %v1052_v25, %v1658_v11  ;;  %v4438_v25 = vld [vmem:[#allocation37_spill] sm:$0xff]  ;;  %v4439_v11 = vld [vmem:[#allocation28_spill] sm:$0xff] }
 0x13d   : > { %1952 = vst.msk [vmem:[%s2785_s16 + $0x6f] sm:$0xfe] %vm1540_vm4, %v1792_v3  ;;  %v967_v8 = vsel %vm481_vm1, %v965_v24, %v966_v22  ;;  %v1066_v63 = vadd.f32 %v969_v17, %v4438_v25  ;;  %v4442_v22 = vld [vmem:[#allocation32_spill] sm:$0xff]  ;;  %v4447_v25 = vld [vmem:[#allocation35_spill] sm:$0xff] }
 0x13e   : > { %v1062_v3 = vadd.f32 %v967_v8, %v4439_v11  ;;  %v4448_v11 = vld [vmem:[#allocation40_spill] sm:$0xff] }
 0x141   : > { %v1674_v12 = vpop.permute.xlu2 %1673 }
 0x142   : > { %v1800_v21 = vsel %vm1491_vm2, %v1060_v28, %v1674_v12  ;;  %v1666_v23 = vpop.permute.xlu1 %1665  ;;  %v4440_v12 = vld [vmem:[#allocation23_spill] sm:$0xff] }
 0x143   : > { %1960 = vst.msk [vmem:[%s2785_s16 + $0xbf] sm:$0x1] %vm1544_vm3, %v1800_v21  ;;  %v1796_v37 = vsel %vm1491_vm2, %v1056_v0, %v1666_v23  ;;  %v1664_v51 = vpop.permute.xlu0 %1663  ;;  %v968_v21 = vrot.slane %v4440_v12, 7  ;;  %v1061_v23 = vadd.f32 %v965_v24, %v4442_v22  ;;  %v975_v24 = vrot.slane %v4445_v31, 7 }
 0x144   : > { %1956 = vst.msk [vmem:[%s2785_s16 + $0x97] sm:$0xff] %vm1542_vm5, %v1796_v37  ;;  %v1795_v42 = vsel %vm1491_vm2, %v1055_v14, %v1664_v51  ;;  %v1069_v37 = vadd.f32 %v972_v47, %v3395_v62  ;;  %v4443_v51 = vld [vmem:[#allocation38_spill] sm:$0xff]  ;;  %v4446_v62 = vld [vmem:[#allocation29_spill] sm:$0xff] }
 0x145   : > { %1955 = vst.msk [vmem:[%s2785_s16 + $0x8f] sm:$0xfe] %vm1540_vm4, %v1795_v42  ;;  %v970_v14 = vsel %vm481_vm1, %v968_v21, %v969_v17  ;;  %v1064_v17 = vadd.f32 %v968_v21, %v4446_v62 }
 0x146   : > { %v1065_v42 = vadd.f32 %v970_v14, %v4443_v51  ;;  %v4450_v14 = vld [vmem:[#allocation42_spill] sm:$0xff] }
 0x149   : > { %v1680_v44 = vpop.permute.xlu2 %1679 }
 0x14a   : > { %v1803_v60 = vsel %vm1491_vm2, %v1063_v61, %v1680_v44  ;;  %v1672_v7 = vpop.permute.xlu1 %1671  ;;  %v4444_v44 = vld [vmem:[#allocation16_spill] sm:$0xff] }
 0x14b   : > { %1963 = vst.msk [vmem:[%s2785_s16 + $0xdf] sm:$0x1] %vm1544_vm3, %v1803_v60  ;;  %v1799_v48 = vsel %vm1491_vm2, %v1059_v16, %v1672_v7  ;;  %v1670_v55 = vpop.permute.xlu0 %1669  ;;  %v971_v60 = vrot.slane %v4444_v44, 7 }
 0x14c   : > { %1959 = vst.msk [vmem:[%s2785_s16 + $0xb7] sm:$0xff] %vm1542_vm5, %v1799_v48  ;;  %v1798_v28 = vsel %vm1491_vm2, %v1058_v34, %v1670_v55  ;;  %v1072_v34 = vadd.f32 %v975_v24, %v3443_v18  ;;  %v4449_v18 = vld [vmem:[#allocation36_spill] sm:$0xff] }
 0x14d   : > { %1958 = vst.msk [vmem:[%s2785_s16 + $0xaf] sm:$0xfe] %vm1540_vm4, %v1798_v28  ;;  %v973_v5 = vsel %vm481_vm1, %v971_v60, %v972_v47  ;;  %v1067_v12 = vadd.f32 %v971_v60, %v4449_v18 }
 0x151   : > { %v1686_v38 = vpop.permute.xlu2 %1685 }
 0x152   : > { %v1806_v0 = vsel %vm1491_vm2, %v1066_v63, %v1686_v38  ;;  %v1678_v56 = vpop.permute.xlu1 %1677  ;;  %v1068_v63 = vadd.f32 %v973_v5, %v4447_v25  ;;  %v978_v38 = vrot.slane %v3367_v39, 7  ;;  %v983_v25 = vrot.slane %v3477_v35, 7 }
 0x153   : > { %1966 = vst.msk [vmem:[%s2785_s16 + $0xff] sm:$0x1] %vm1544_vm3, %v1806_v0  ;;  %v1802_v52 = vsel %vm1491_vm2, %v1062_v3, %v1678_v56  ;;  %v1676_v19 = vpop.permute.xlu0 %1675  ;;  %v974_v3 = vrot.slane %v4448_v11, 7 }
 0x154   : > { %1962 = vst.msk [vmem:[%s2785_s16 + $0xd7] sm:$0xff] %vm1542_vm5, %v1802_v52  ;;  %v1801_v61 = vsel %vm1491_vm2, %v1061_v23, %v1676_v19  ;;  %v1075_v47 = vadd.f32 %v978_v38, %v3493_v6  ;;  %v981_v19 = vrot.slane %v3403_v32, 7  ;;  %v4451_v6 = vld [vmem:[#allocation21_spill] sm:$0xff] }
 0x155   : > { %1961 = vst.msk [vmem:[%s2785_s16 + $0xcf] sm:$0xfe] %vm1540_vm4, %v1801_v61  ;;  %v976_v57 = vsel %vm481_vm1, %v974_v3, %v975_v24  ;;  %v1070_v51 = vadd.f32 %v974_v3, %v4451_v6  ;;  %v980_v24 = vrot.slane %v3432_v1, 7 }
 0x156   : > { %v1071_v39 = vadd.f32 %v976_v57, %v3354_v27 }
 0x159   : > { %v1692_v13 = vpop.permute.xlu2 %1691 }
 0x15a   : > { %v1809_v16 = vsel %vm1491_vm2, %v1069_v37, %v1692_v13  ;;  %v1684_v58 = vpop.permute.xlu1 %1683  ;;  %v977_v37 = vrot.slane %v4450_v14, 7  ;;  %v1078_v13 = vadd.f32 %v981_v19, %v3555_v54  ;;  %v4452_v54 = vld [vmem:[#allocation46_spill] sm:$0xff]  ;;  %v989_v14 = vrot.slane %v3595_v49, 7 }
 0x15b   : > { %1969 = vst.msk [vmem:[%s2785_s16 + $0x11f] sm:$0x1] %vm1544_vm3, %v1809_v16  ;;  %v1805_v7 = vsel %vm1491_vm2, %v1065_v42, %v1684_v58  ;;  %v1682_v48 = vpop.permute.xlu0 %1681  ;;  %v984_v58 = vrot.slane %v3465_v30, 7 }
 0x15c   : > { %1965 = vst.msk [vmem:[%s2785_s16 + $0xf7] sm:$0xff] %vm1542_vm5, %v1805_v7  ;;  %v1804_v8 = vsel %vm1491_vm2, %v1064_v17, %v1682_v48  ;;  %v979_v27 = vsel %vm481_vm1, %v977_v37, %v978_v38  ;;  %v1073_v17 = vadd.f32 %v977_v37, %v4452_v54  ;;  %v993_v37 = vrot.slane %v3631_v40, 7 }
 0x15d   : > { %1964 = vst.msk [vmem:[%s2785_s16 + $0xef] sm:$0xfe] %vm1540_vm4, %v1804_v8  ;;  %v1074_v32 = vadd.f32 %v979_v27, %v3411_v29  ;;  %v982_v29 = vsel %vm481_vm1, %v980_v24, %v981_v19  ;;  %v1081_v5 = vadd.f32 %v984_v58, %v3604_v36  ;;  %v4453_v36 = vld [vmem:[#allocation39_spill] sm:$0xff]  ;;  %v992_v27 = vrot.slane %v3646_v2, 7 }
 0x15e   : > { %v1077_v30 = vadd.f32 %v982_v29, %v3456_v20  ;;  %v985_v20 = vsel %vm481_vm1, %v983_v25, %v984_v58  ;;  %v1090_v6 = vadd.f32 %v993_v37, %v3711_v53  ;;  %v1085_v53 = vadd.f32 %v989_v14, %v3640_v41 }
 0x161   : > { %v1698_v55 = vpop.permute.xlu2 %1697 }
 0x162   : > { %v1812_v28 = vsel %vm1491_vm2, %v1072_v34, %v1698_v55  ;;  %v1690_v0 = vpop.permute.xlu1 %1689 }
 0x163   : > { %1972 = vst.msk [vmem:[%s2785_s16 + $0x13f] sm:$0x1] %vm1544_vm3, %v1812_v28  ;;  %v1808_v21 = vsel %vm1491_vm2, %v1068_v63, %v1690_v0  ;;  %v1688_v56 = vpop.permute.xlu0 %1687  ;;  %v987_v63 = vrot.slane %v3527_v15, 7  ;;  %v1076_v28 = vadd.f32 %v980_v24, %v4453_v36  ;;  %v1080_v15 = vadd.f32 %v985_v20, %v3514_v9 }
 0x164   : > { %1968 = vst.msk [vmem:[%s2785_s16 + $0x117] sm:$0xff] %vm1542_vm5, %v1808_v21  ;;  %v1807_v22 = vsel %vm1491_vm2, %v1067_v12, %v1688_v56  ;;  %v986_v12 = vrot.slane %v3537_v50, 7  ;;  %v990_v21 = vrot.slane %v3565_v4, 7 }
 0x165   : > { %1967 = vst.msk [vmem:[%s2785_s16 + $0x10f] sm:$0xfe] %vm1540_vm4, %v1807_v22  ;;  %v1084_v3 = vadd.f32 %v987_v63, %v3653_v45  ;;  %v4454_v45 = vld [vmem:[#allocation25_spill] sm:$0xff] }
 0x166   : > { %v988_v9 = vsel %vm481_vm1, %v986_v12, %v987_v63  ;;  %v1087_v22 = vadd.f32 %v990_v21, %v3686_v59  ;;  %v1082_v59 = vadd.f32 %v986_v12, %v3588_v10 }
 0x167   : > { %v1083_v4 = vadd.f32 %v988_v9, %v3572_v26  ;;  %v991_v26 = vsel %vm481_vm1, %v989_v14, %v990_v21 }
 0x168   : > { %v1086_v40 = vadd.f32 %v991_v26, %v3615_v43 }
 0x169   : > { %v1704_v23 = vpop.permute.xlu2 %1703 }
 0x16a   : > { %v1815_v52 = vsel %vm1491_vm2, %v1075_v47, %v1704_v23  ;;  %v1696_v61 = vpop.permute.xlu1 %1695  ;;  %v1079_v47 = vadd.f32 %v983_v25, %v4454_v45 }
 0x16b   : > { %1975 = vst.msk [vmem:[%s2785_s16 + $0x15f] sm:$0x1] %vm1544_vm3, %v1815_v52  ;;  %v1811_v42 = vsel %vm1491_vm2, %v1071_v39, %v1696_v61  ;;  %v1694_v16 = vpop.permute.xlu0 %1693 }
 0x16c   : > { %1971 = vst.msk [vmem:[%s2785_s16 + $0x137] sm:$0xff] %vm1542_vm5, %v1811_v42  ;;  %v1810_v44 = vsel %vm1491_vm2, %v1070_v51, %v1694_v16 }
 0x16d   : > { %1970 = vst.msk [vmem:[%s2785_s16 + $0x12f] sm:$0xfe] %vm1540_vm4, %v1810_v44  ;;  %v994_v44 = vsel %vm481_vm1, %v992_v27, %v993_v37 }
 0x171   : > { %v1710_v60 = vpop.permute.xlu2 %1709 }
 0x172   : > { %v1818_v31 = vsel %vm1491_vm2, %v1078_v13, %v1710_v60  ;;  %v1702_v62 = vpop.permute.xlu1 %1701  ;;  %v1089_v60 = vadd.f32 %v994_v44, %v3660_v46 }
 0x173   : > { %1978 = vst.msk [vmem:[%s2785_s16 + $0x17f] sm:$0x1] %vm1544_vm3, %v1818_v31  ;;  %v1814_v7 = vsel %vm1491_vm2, %v1074_v32, %v1702_v62  ;;  %v1700_v34 = vpop.permute.xlu0 %1699  ;;  %v1088_v31 = vadd.f32 %v992_v27, %v3676_v33 }
 0x174   : > { %1974 = vst.msk [vmem:[%s2785_s16 + $0x157] sm:$0xff] %vm1542_vm5, %v1814_v7  ;;  %v1813_v1 = vsel %vm1491_vm2, %v1073_v17, %v1700_v34 }
 0x175   : > { %1973 = vst.msk [vmem:[%s2785_s16 + $0x14f] sm:$0xfe] %vm1540_vm4, %v1813_v1 }
 0x179   : > { %v1716_v48 = vpop.permute.xlu2 %1715 }
 0x17a   : > { %v1821_v8 = vsel %vm1491_vm2, %v1081_v5, %v1716_v48  ;;  %v1708_v55 = vpop.permute.xlu1 %1707 }
 0x17b   : > { %1981 = vst.msk [vmem:[%s2785_s16 + $0x19f] sm:$0x1] %vm1544_vm3, %v1821_v8  ;;  %v1817_v11 = vsel %vm1491_vm2, %v1077_v30, %v1708_v55  ;;  %v1706_v38 = vpop.permute.xlu0 %1705 }
 0x17c   : > { %1977 = vst.msk [vmem:[%s2785_s16 + $0x177] sm:$0xff] %vm1542_vm5, %v1817_v11  ;;  %v1816_v35 = vsel %vm1491_vm2, %v1076_v28, %v1706_v38 }
 0x17d   : > { %1976 = vst.msk [vmem:[%s2785_s16 + $0x16f] sm:$0xfe] %vm1540_vm4, %v1816_v35 }
 0x181   : > { %v1722_v0 = vpop.permute.xlu2 %1721 }
 0x182   : > { %v1824_v18 = vsel %vm1491_vm2, %v1084_v3, %v1722_v0  ;;  %v1714_v57 = vpop.permute.xlu1 %1713 }
 0x183   : > { %1984 = vst.msk [vmem:[%s2785_s16 + $0x1bf] sm:$0x1] %vm1544_vm3, %v1824_v18  ;;  %v1820_v56 = vsel %vm1491_vm2, %v1080_v15, %v1714_v57  ;;  %v1712_v39 = vpop.permute.xlu0 %1711 }
 0x184   : > { %1980 = vst.msk [vmem:[%s2785_s16 + $0x197] sm:$0xff] %vm1542_vm5, %v1820_v56  ;;  %v1819_v50 = vsel %vm1491_vm2, %v1079_v47, %v1712_v39 }
 0x185   : > { %1979 = vst.msk [vmem:[%s2785_s16 + $0x18f] sm:$0xfe] %vm1540_vm4, %v1819_v50 }
 0x189   : > { %v1728_v23 = vpop.permute.xlu2 %1727 }
 0x18a   : > { %v1827_v52 = vsel %vm1491_vm2, %v1087_v22, %v1728_v23  ;;  %v1720_v19 = vpop.permute.xlu1 %1719 }
 0x18b   : > { %1987 = vst.msk [vmem:[%s2785_s16 + $0x1df] sm:$0x1] %vm1544_vm3, %v1827_v52  ;;  %v1823_v61 = vsel %vm1491_vm2, %v1083_v4, %v1720_v19  ;;  %v1718_v51 = vpop.permute.xlu0 %1717 }
 0x18c   : > { %1983 = vst.msk [vmem:[%s2785_s16 + $0x1b7] sm:$0xff] %vm1542_vm5, %v1823_v61  ;;  %v1822_v49 = vsel %vm1491_vm2, %v1082_v59, %v1718_v51 }
 0x18d   : > { %1982 = vst.msk [vmem:[%s2785_s16 + $0x1af] sm:$0xfe] %vm1540_vm4, %v1822_v49 }
 0x191   : > { %v1734_v42 = vpop.permute.xlu2 %1733 }
 0x192   : > { %v1830_v10 = vsel %vm1491_vm2, %v1090_v6, %v1734_v42  ;;  %v1726_v13 = vpop.permute.xlu1 %1725 }
 0x193   : > { %1990 = vst.msk [vmem:[%s2785_s16 + $0x1ff] sm:$0x1] %vm1544_vm3, %v1830_v10  ;;  %v1826_v16 = vsel %vm1491_vm2, %v1086_v40, %v1726_v13  ;;  %v1724_v32 = vpop.permute.xlu0 %1723 }
 0x194   : > { %1986 = vst.msk [vmem:[%s2785_s16 + $0x1d7] sm:$0xff] %vm1542_vm5, %v1826_v16  ;;  %v1825_v43 = vsel %vm1491_vm2, %v1085_v53, %v1724_v32 }
 0x195   : > { %1985 = vst.msk [vmem:[%s2785_s16 + $0x1cf] sm:$0xfe] %vm1540_vm4, %v1825_v43 }
 0x19a   : > { %v1732_v2 = vpop.permute.xlu1 %1731 }
 0x19b   : > { %v1829_v24 = vsel %vm1491_vm2, %v1089_v60, %v1732_v2  ;;  %v1730_v41 = vpop.permute.xlu0 %1729 }
 0x19c   : > { %1989 = vst.msk [vmem:[%s2785_s16 + $0x1f7] sm:$0xff] %vm1542_vm5, %v1829_v24  ;;  %v1828_v58 = vsel %vm1491_vm2, %v1088_v31, %v1730_v41 }
 0x19d   : > { %1988 = vst.msk [vmem:[%s2785_s16 + $0x1ef] sm:$0xfe] %vm1540_vm4, %v1828_v58 }
 0x19e PF: > { %s11_s6 = sadd.s32 1, %s2013_s6  }
 0x19f   : > { %p8_p4 = scmp.ge.s32.totalorder %s11_s6, 4  }
 0x1a1   :  { %10 = sbr.rel (!%p8_p4) target bundleno = 1 (0x1), region = 55 }

</bundles_post_ra>
